<compile_context>
chip_gen: v7x
topology: tpu7x:2x2x1
jax: 0.10.0
libtpu: 0.0.40
codegen_flags: <defaults>
</compile_context>

<pallas_src>
from functools import partial

import jax
import jax.numpy as jnp
from jax.experimental import pallas as pl
from jax.experimental.pallas import tpu as pltpu


# ---------------------------------------------------------------------------
# Fused Block kernel: one grid step == one batch element.
# ---------------------------------------------------------------------------
def _block_kernel(
    x_ref,                                    # (1, N, C)
    g1_ref, be1_ref,                          # LayerNorm1 (1, C) each
    wq_ref, wkv_ref,                          # (C, C), (C, 2C)
    wp_ref, bp_ref,                           # (C, C), (1, C)
    g2_ref, be2_ref,                          # LayerNorm2 (1, C) each
    w1_ref, bf1_ref,                          # (C, Dh), (1, Dh)
    wdw_ref, bdw_ref,                         # (9, Dh), (1, Dh)  depthwise 3x3
    w2_ref, bf2_ref,                          # (Dh, C), (1, C)
    o_ref,                                    # (1, N, C)
    pad_ref,                                  # VMEM scratch (H+2, W+2, Dh)
    *, num_heads, scale, eps, H, W,
):
    f32 = jnp.float32
    x = x_ref[0].astype(f32)                  # (N, C)
    N, C = x.shape
    hd = C // num_heads
    Dh = w1_ref.shape[1]

    # ---------------- LayerNorm 1 ----------------
    mu = jnp.mean(x, axis=-1, keepdims=True)
    xc = x - mu
    var = jnp.mean(xc * xc, axis=-1, keepdims=True)
    xn = xc * jax.lax.rsqrt(var + eps) * g1_ref[...] + be1_ref[...]

    # ---------------- Attention ----------------
    q = jnp.dot(xn, wq_ref[...], preferred_element_type=f32)       # (N, C)
    kv = jnp.dot(xn, wkv_ref[...], preferred_element_type=f32)     # (N, 2C)
    k = kv[:, :C]
    v = kv[:, C:]

    attn_proj = jnp.zeros((N, C), f32)
    for h in range(num_heads):
        lo, hi = h * hd, (h + 1) * hd
        qh = q[:, lo:hi]                                            # (N, hd)
        kh = k[:, lo:hi]
        vh = v[:, lo:hi]
        # scores = qh @ kh^T  (contract on hd)
        s = jax.lax.dot_general(
            qh, kh, (((1,), (1,)), ((), ())), preferred_element_type=f32
        ) * scale                                                   # (N, N)
        s = s - jnp.max(s, axis=-1, keepdims=True)
        p = jnp.exp(s)
        p = p / jnp.sum(p, axis=-1, keepdims=True)
        oh = jnp.dot(p, vh, preferred_element_type=f32)             # (N, hd)
        # fold the head's slice of the output projection in directly
        attn_proj = attn_proj + jnp.dot(
            oh, wp_ref[lo:hi, :], preferred_element_type=f32
        )

    x = x + attn_proj + bp_ref[...]            # residual 1

    # ---------------- LayerNorm 2 ----------------
    mu2 = jnp.mean(x, axis=-1, keepdims=True)
    xc2 = x - mu2
    var2 = jnp.mean(xc2 * xc2, axis=-1, keepdims=True)
    xn2 = xc2 * jax.lax.rsqrt(var2 + eps) * g2_ref[...] + be2_ref[...]

    # ---------------- MLP: fc1 ----------------
    h1 = jnp.dot(xn2, w1_ref[...], preferred_element_type=f32) + bf1_ref[...]  # (N, Dh)

    # ------- 3x3 depthwise conv (stride=1, pad=1), halo built in VMEM scratch -------
    pad_ref[...] = jnp.zeros_like(pad_ref)
    pad_ref[1:H + 1, 1:W + 1, :] = h1.reshape(H, W, Dh)
    acc = jnp.zeros((H, W, Dh), f32)
    for dy in range(3):
        for dx in range(3):
            tap = dy * 3 + dx
            w_tap = wdw_ref[tap:tap + 1, :].reshape(1, 1, Dh)
            acc = acc + pad_ref[dy:dy + H, dx:dx + W, :] * w_tap

    h_dw = acc.reshape(N, Dh) + bdw_ref[...]
    h_act = jax.nn.gelu(h_dw)                  # tanh-approx GELU (see TODO above)

    # ---------------- MLP: fc2 + residual ----------------
    y = jnp.dot(h_act, w2_ref[...], preferred_element_type=f32) + bf2_ref[...]
    o_ref[0] = (x + y).astype(o_ref.dtype)


def block_forward(x, p, H, W, *, num_heads, eps=1e-5):
    """x: (B, N, C) token layout, N == H * W."""
    B, N, C = x.shape
    assert N == H * W, "N must equal H*W"
    assert C % num_heads == 0
    Dh = p["w1"].shape[1]
    hd = C // num_heads
    scale = float(hd) ** -0.5

    kernel = partial(_block_kernel, num_heads=num_heads, scale=scale,
                     eps=eps, H=H, W=W)

    wdw9 = p["wdw"].reshape(9, Dh)

    return pl.pallas_call(
        kernel,
        out_shape=jax.ShapeDtypeStruct((B, N, C), jnp.float32),
        grid=(B,),
        in_specs=[
            pl.BlockSpec((1, N, C), lambda b: (b, 0, 0)),      # x
            pl.BlockSpec((1, C), lambda b: (0, 0)),            # gamma1
            pl.BlockSpec((1, C), lambda b: (0, 0)),            # beta1
            pl.BlockSpec((C, C), lambda b: (0, 0)),            # wq
            pl.BlockSpec((C, 2 * C), lambda b: (0, 0)),        # wkv
            pl.BlockSpec((C, C), lambda b: (0, 0)),            # wproj
            pl.BlockSpec((1, C), lambda b: (0, 0)),            # bproj
            pl.BlockSpec((1, C), lambda b: (0, 0)),            # gamma2
            pl.BlockSpec((1, C), lambda b: (0, 0)),            # beta2
            pl.BlockSpec((C, Dh), lambda b: (0, 0)),           # w1 (fc1)
            pl.BlockSpec((1, Dh), lambda b: (0, 0)),           # b1 (fc1)
            pl.BlockSpec((9, Dh), lambda b: (0, 0)),           # dw weight (9 taps)
            pl.BlockSpec((1, Dh), lambda b: (0, 0)),           # dw bias
            pl.BlockSpec((Dh, C), lambda b: (0, 0)),           # w2 (fc2)
            pl.BlockSpec((1, C), lambda b: (0, 0)),            # b2 (fc2)
        ],
        out_specs=pl.BlockSpec((1, N, C), lambda b: (b, 0, 0)),
        scratch_shapes=[pltpu.VMEM((H + 2, W + 2, Dh), jnp.float32)],
        compiler_params=pltpu.CompilerParams(dimension_semantics=("parallel",)),
    )(x, p["g1"], p["b1"], p["wq"], p["wkv"], p["wproj"], p["bproj"],
      p["g2"], p["b2"], p["w1"], p["bf1"], wdw9, p["bdw"], p["w2"], p["bf2"])


# ---------------------------------------------------------------------------
# Parameter construction (random; mirrors the PyTorch module's parameter shapes,
# already transposed to right-multiply layout).
# ---------------------------------------------------------------------------
def init_block_params(key, dim, mlp_ratio):
    Dh = int(dim * mlp_ratio)
    ks = jax.random.split(key, 14)

    def rnd(k, shape, std=0.02):
        return std * jax.random.normal(k, shape, jnp.float32)

    p = {}
    p["g1"] = (1.0 + 0.1 * jax.random.normal(ks[0], (dim,), jnp.float32)).reshape(1, dim)
    p["b1"] = rnd(ks[1], (1, dim), 0.1)
    p["wq"] = rnd(ks[2], (dim, dim))                    # torch q.weight (dim,dim)^T
    p["wkv"] = rnd(ks[3], (dim, 2 * dim))               # torch kv.weight (2dim,dim)^T
    p["wproj"] = rnd(ks[4], (dim, dim))
    p["bproj"] = rnd(ks[5], (1, dim), 0.02)
    p["g2"] = (1.0 + 0.1 * jax.random.normal(ks[6], (dim,), jnp.float32)).reshape(1, dim)
    p["b2"] = rnd(ks[7], (1, dim), 0.1)
    p["w1"] = rnd(ks[8], (dim, Dh))                     # fc1.weight^T
    p["bf1"] = rnd(ks[9], (1, Dh), 0.02)
    p["wdw"] = rnd(ks[10], (3, 3, Dh), (2.0 / 9.0) ** 0.5)   # dwconv weight (Dh,1,3,3)->(3,3,Dh)
    p["bdw"] = rnd(ks[11], (1, Dh), 0.02)
    p["w2"] = rnd(ks[12], (Dh, dim))                    # fc2.weight^T
    p["bf2"] = rnd(ks[13], (1, dim), 0.02)
    return p


# ---------------------------------------------------------------------------
# Pure-JAX reference (high precision) for correctness checking
# ---------------------------------------------------------------------------
def _layernorm(x, g, b, eps=1e-5):
    mu = jnp.mean(x, axis=-1, keepdims=True)
    var = jnp.mean((x - mu) ** 2, axis=-1, keepdims=True)
    return (x - mu) * jax.lax.rsqrt(var + eps) * g + b


def block_ref(x, p, H, W, *, num_heads):
    prec = jax.lax.Precision.HIGHEST
    B, N, C = x.shape
    hd = C // num_heads
    scale = float(hd) ** -0.5

    # --- attention branch ---
    xn = _layernorm(x, p["g1"], p["b1"])
    q = jnp.einsum("bnc,cd->bnd", xn, p["wq"], precision=prec)
    kv = jnp.einsum("bnc,cd->bnd", xn, p["wkv"], precision=prec)
    k, v = kv[..., :C], kv[..., C:]
    qh = q.reshape(B, N, num_heads, hd).transpose(0, 2, 1, 3)
    kh = k.reshape(B, N, num_heads, hd).transpose(0, 2, 1, 3)
    vh = v.reshape(B, N, num_heads, hd).transpose(0, 2, 1, 3)
    s = jnp.einsum("bhqd,bhkd->bhqk", qh, kh, precision=prec) * scale
    a = jax.nn.softmax(s, axis=-1)
    o = jnp.einsum("bhqk,bhkd->bhqd", a, vh, precision=prec)
    o = o.transpose(0, 2, 1, 3).reshape(B, N, C)
    o = jnp.einsum("bnc,cd->bnd", o, p["wproj"], precision=prec) + p["bproj"]
    x = x + o

    # --- MLP branch ---
    xn = _layernorm(x, p["g2"], p["b2"])
    h = jnp.einsum("bnc,cd->bnd", xn, p["w1"], precision=prec) + p["bf1"]
    Dh = h.shape[-1]
    h3 = h.reshape(B, H, W, Dh)
    hp = jnp.pad(h3, ((0, 0), (1, 1), (1, 1), (0, 0)))
    acc = jnp.zeros_like(h3)
    for dy in range(3):
        for dx in range(3):
            acc = acc + hp[:, dy:dy + H, dx:dx + W, :] * p["wdw"][dy, dx]
    acc = acc + p["bdw"][0]
    h = jax.nn.gelu(acc).reshape(B, N, Dh)
    y = jnp.einsum("bnd,dc->bnc", h, p["w2"], precision=prec) + p["bf2"]
    return x + y


if __name__ == "__main__":
    key = jax.random.PRNGKey(0)
    kx, kp = jax.random.split(key)

    B, H, W = 2, 8, 8
    dim, num_heads, mlp_ratio = 64, 4, 4.0
    N = H * W

    x = jax.random.normal(kx, (B, N, dim), jnp.float32)
    params = init_block_params(kp, dim, mlp_ratio)

    out = block_forward(x, params, H, W, num_heads=num_heads)
    out = jax.block_until_ready(out)

    ref = block_ref(x, params, H, W, num_heads=num_heads)
    assert out.shape == (B, N, dim)
    err = float(jnp.max(jnp.abs(out - ref)))
    assert err < 1e-3, f"max abs error {err}"

    print("KERNEL_OK")
</pallas_src>

<mosaic_0001>
module attributes {stable_mosaic.version = 11 : i64} {
  func.func @_block_kernel(%arg0: i32, %arg1: memref<1x64x64xf32, #tpu.memory_space<vmem>>, %arg2: memref<1x64xf32, #tpu.memory_space<vmem>>, %arg3: memref<1x64xf32, #tpu.memory_space<vmem>>, %arg4: memref<64x64xf32, #tpu.memory_space<vmem>>, %arg5: memref<64x128xf32, #tpu.memory_space<vmem>>, %arg6: memref<64x64xf32, #tpu.memory_space<vmem>>, %arg7: memref<1x64xf32, #tpu.memory_space<vmem>>, %arg8: memref<1x64xf32, #tpu.memory_space<vmem>>, %arg9: memref<1x64xf32, #tpu.memory_space<vmem>>, %arg10: memref<64x256xf32, #tpu.memory_space<vmem>>, %arg11: memref<1x256xf32, #tpu.memory_space<vmem>>, %arg12: memref<9x256xf32, #tpu.memory_space<vmem>>, %arg13: memref<1x256xf32, #tpu.memory_space<vmem>>, %arg14: memref<256x64xf32, #tpu.memory_space<vmem>>, %arg15: memref<1x64xf32, #tpu.memory_space<vmem>>, %arg16: memref<1x64x64xf32, #tpu.memory_space<vmem>>, %arg17: memref<10x10x256xf32, #tpu.memory_space<vmem>>) attributes {dimension_semantics = [#tpu.dimension_semantics<parallel>], iteration_bounds = array<i64: 2>, scalar_prefetch = 0 : i64, scratch_operands = 1 : i64, tpu.core_type = #tpu.core_type<tc>, window_params = [{transform_indices = @transform_0, window_bounds = array<i64: 1, 64, 64>}, {pipeline_mode = #tpu.pipeline_mode<synchronous>, transform_indices = @transform_1, window_bounds = array<i64: 1, 64>}, {pipeline_mode = #tpu.pipeline_mode<synchronous>, transform_indices = @transform_2, window_bounds = array<i64: 1, 64>}, {pipeline_mode = #tpu.pipeline_mode<synchronous>, transform_indices = @transform_3, window_bounds = array<i64: 64, 64>}, {pipeline_mode = #tpu.pipeline_mode<synchronous>, transform_indices = @transform_4, window_bounds = array<i64: 64, 128>}, {pipeline_mode = #tpu.pipeline_mode<synchronous>, transform_indices = @transform_5, window_bounds = array<i64: 64, 64>}, {pipeline_mode = #tpu.pipeline_mode<synchronous>, transform_indices = @transform_6, window_bounds = array<i64: 1, 64>}, {pipeline_mode = #tpu.pipeline_mode<synchronous>, transform_indices = @transform_7, window_bounds = array<i64: 1, 64>}, {pipeline_mode = #tpu.pipeline_mode<synchronous>, transform_indices = @transform_8, window_bounds = array<i64: 1, 64>}, {pipeline_mode = #tpu.pipeline_mode<synchronous>, transform_indices = @transform_9, window_bounds = array<i64: 64, 256>}, {pipeline_mode = #tpu.pipeline_mode<synchronous>, transform_indices = @transform_10, window_bounds = array<i64: 1, 256>}, {pipeline_mode = #tpu.pipeline_mode<synchronous>, transform_indices = @transform_11, window_bounds = array<i64: 9, 256>}, {pipeline_mode = #tpu.pipeline_mode<synchronous>, transform_indices = @transform_12, window_bounds = array<i64: 1, 256>}, {pipeline_mode = #tpu.pipeline_mode<synchronous>, transform_indices = @transform_13, window_bounds = array<i64: 256, 64>}, {pipeline_mode = #tpu.pipeline_mode<synchronous>, transform_indices = @transform_14, window_bounds = array<i64: 1, 64>}, {transform_indices = @transform_15, window_bounds = array<i64: 1, 64, 64>}]} {
    %c0 = arith.constant 0 : index
    %c0_0 = arith.constant 0 : index
    %c0_1 = arith.constant 0 : index
    %0 = vector.load %arg1[%c0, %c0_0, %c0_1] : memref<1x64x64xf32, #tpu.memory_space<vmem>>, vector<1x64x64xf32>
    %1 = vector.shape_cast %0 : vector<1x64x64xf32> to vector<64x64xf32>
    %cst = arith.constant dense<0.000000e+00> : vector<64xf32>
    %2 = vector.multi_reduction <add>, %1, %cst [1] : vector<64x64xf32> to vector<64xf32>
    %3 = vector.shape_cast %2 : vector<64xf32> to vector<64x1xf32>
    %cst_2 = arith.constant 6.400000e+01 : f32
    %4 = vector.broadcast %cst_2 : f32 to vector<64x1xf32>
    %5 = arith.divf %3, %4 : vector<64x1xf32>
    %6 = vector.broadcast %5 : vector<64x1xf32> to vector<64x64xf32>
    %7 = arith.subf %1, %6 : vector<64x64xf32>
    %8 = arith.mulf %7, %7 : vector<64x64xf32>
    %cst_3 = arith.constant dense<0.000000e+00> : vector<64xf32>
    %9 = vector.multi_reduction <add>, %8, %cst_3 [1] : vector<64x64xf32> to vector<64xf32>
    %10 = vector.shape_cast %9 : vector<64xf32> to vector<64x1xf32>
    %cst_4 = arith.constant 6.400000e+01 : f32
    %11 = vector.broadcast %cst_4 : f32 to vector<64x1xf32>
    %12 = arith.divf %10, %11 : vector<64x1xf32>
    %cst_5 = arith.constant 9.99999974E-6 : f32
    %13 = vector.broadcast %cst_5 : f32 to vector<64x1xf32>
    %14 = arith.addf %12, %13 : vector<64x1xf32>
    %15 = math.rsqrt %14 : vector<64x1xf32>
    %16 = vector.broadcast %15 : vector<64x1xf32> to vector<64x64xf32>
    %17 = arith.mulf %7, %16 : vector<64x64xf32>
    %c0_6 = arith.constant 0 : index
    %c0_7 = arith.constant 0 : index
    %18 = vector.load %arg2[%c0_6, %c0_7] : memref<1x64xf32, #tpu.memory_space<vmem>>, vector<1x64xf32>
    %19 = vector.broadcast %18 : vector<1x64xf32> to vector<64x64xf32>
    %20 = arith.mulf %17, %19 : vector<64x64xf32>
    %c0_8 = arith.constant 0 : index
    %c0_9 = arith.constant 0 : index
    %21 = vector.load %arg3[%c0_8, %c0_9] : memref<1x64xf32, #tpu.memory_space<vmem>>, vector<1x64xf32>
    %22 = vector.broadcast %21 : vector<1x64xf32> to vector<64x64xf32>
    %23 = arith.addf %20, %22 : vector<64x64xf32>
    %c0_10 = arith.constant 0 : index
    %c0_11 = arith.constant 0 : index
    %24 = vector.load %arg4[%c0_10, %c0_11] : memref<64x64xf32, #tpu.memory_space<vmem>>, vector<64x64xf32>
    %cst_12 = arith.constant dense<0.000000e+00> : vector<64x64xf32>
    %25 = tpu.matmul %23, %24, %cst_12 {dimension_numbers = #tpu.dot_dimension_numbers<[1], [0], [0], [1], [0, 0, 1, 1], [], []>} : vector<64x64xf32>, vector<64x64xf32>, vector<64x64xf32> -> vector<64x64xf32>
    %c0_13 = arith.constant 0 : index
    %c0_14 = arith.constant 0 : index
    %26 = vector.load %arg5[%c0_13, %c0_14] : memref<64x128xf32, #tpu.memory_space<vmem>>, vector<64x128xf32>
    %cst_15 = arith.constant dense<0.000000e+00> : vector<64x128xf32>
    %27 = tpu.matmul %23, %26, %cst_15 {dimension_numbers = #tpu.dot_dimension_numbers<[1], [0], [0], [1], [0, 0, 1, 1], [], []>} : vector<64x64xf32>, vector<64x128xf32>, vector<64x128xf32> -> vector<64x128xf32>
    %28 = vector.extract_strided_slice %27 {offsets = [0, 0], sizes = [64, 64], strides = [1, 1]} : vector<64x128xf32> to vector<64x64xf32>
    %29 = vector.extract_strided_slice %27 {offsets = [0, 64], sizes = [64, 64], strides = [1, 1]} : vector<64x128xf32> to vector<64x64xf32>
    %cst_16 = arith.constant 0.000000e+00 : f32
    %30 = vector.broadcast %cst_16 : f32 to vector<64x64xf32>
    %31 = vector.extract_strided_slice %25 {offsets = [0, 0], sizes = [64, 16], strides = [1, 1]} : vector<64x64xf32> to vector<64x16xf32>
    %32 = vector.extract_strided_slice %28 {offsets = [0, 0], sizes = [64, 16], strides = [1, 1]} : vector<64x64xf32> to vector<64x16xf32>
    %33 = vector.extract_strided_slice %29 {offsets = [0, 0], sizes = [64, 16], strides = [1, 1]} : vector<64x64xf32> to vector<64x16xf32>
    %cst_17 = arith.constant dense<0.000000e+00> : vector<64x64xf32>
    %34 = tpu.matmul %31, %32, %cst_17 {dimension_numbers = #tpu.dot_dimension_numbers<[1], [1], [0], [0], [0, 0, 1, 0], [], []>} : vector<64x16xf32>, vector<64x16xf32>, vector<64x64xf32> -> vector<64x64xf32>
    %cst_18 = arith.constant 2.500000e-01 : f32
    %35 = vector.broadcast %cst_18 : f32 to vector<64x64xf32>
    %36 = arith.mulf %34, %35 : vector<64x64xf32>
    %cst_19 = arith.constant dense<0xFF800000> : vector<64xf32>
    %37 = vector.multi_reduction <maximumf>, %36, %cst_19 [1] : vector<64x64xf32> to vector<64xf32>
    %38 = vector.shape_cast %37 : vector<64xf32> to vector<64x1xf32>
    %39 = vector.broadcast %38 : vector<64x1xf32> to vector<64x64xf32>
    %40 = arith.subf %36, %39 : vector<64x64xf32>
    %41 = math.exp %40 : vector<64x64xf32>
    %cst_20 = arith.constant dense<0.000000e+00> : vector<64xf32>
    %42 = vector.multi_reduction <add>, %41, %cst_20 [1] : vector<64x64xf32> to vector<64xf32>
    %43 = vector.shape_cast %42 : vector<64xf32> to vector<64x1xf32>
    %44 = vector.broadcast %43 : vector<64x1xf32> to vector<64x64xf32>
    %45 = arith.divf %41, %44 : vector<64x64xf32>
    %cst_21 = arith.constant dense<0.000000e+00> : vector<64x16xf32>
    %46 = tpu.matmul %45, %33, %cst_21 {dimension_numbers = #tpu.dot_dimension_numbers<[1], [0], [0], [1], [0, 0, 1, 1], [], []>} : vector<64x64xf32>, vector<64x16xf32>, vector<64x16xf32> -> vector<64x16xf32>
    %c0_22 = arith.constant 0 : index
    %c0_23 = arith.constant 0 : index
    %47 = vector.load %arg6[%c0_22, %c0_23] : memref<64x64xf32, #tpu.memory_space<vmem>>, vector<16x64xf32>
    %cst_24 = arith.constant dense<0.000000e+00> : vector<64x64xf32>
    %48 = tpu.matmul %46, %47, %cst_24 {dimension_numbers = #tpu.dot_dimension_numbers<[1], [0], [0], [1], [0, 0, 1, 1], [], []>} : vector<64x16xf32>, vector<16x64xf32>, vector<64x64xf32> -> vector<64x64xf32>
    %49 = arith.addf %30, %48 : vector<64x64xf32>
    %50 = vector.extract_strided_slice %25 {offsets = [0, 16], sizes = [64, 16], strides = [1, 1]} : vector<64x64xf32> to vector<64x16xf32>
    %51 = vector.extract_strided_slice %28 {offsets = [0, 16], sizes = [64, 16], strides = [1, 1]} : vector<64x64xf32> to vector<64x16xf32>
    %52 = vector.extract_strided_slice %29 {offsets = [0, 16], sizes = [64, 16], strides = [1, 1]} : vector<64x64xf32> to vector<64x16xf32>
    %cst_25 = arith.constant dense<0.000000e+00> : vector<64x64xf32>
    %53 = tpu.matmul %50, %51, %cst_25 {dimension_numbers = #tpu.dot_dimension_numbers<[1], [1], [0], [0], [0, 0, 1, 0], [], []>} : vector<64x16xf32>, vector<64x16xf32>, vector<64x64xf32> -> vector<64x64xf32>
    %cst_26 = arith.constant 2.500000e-01 : f32
    %54 = vector.broadcast %cst_26 : f32 to vector<64x64xf32>
    %55 = arith.mulf %53, %54 : vector<64x64xf32>
    %cst_27 = arith.constant dense<0xFF800000> : vector<64xf32>
    %56 = vector.multi_reduction <maximumf>, %55, %cst_27 [1] : vector<64x64xf32> to vector<64xf32>
    %57 = vector.shape_cast %56 : vector<64xf32> to vector<64x1xf32>
    %58 = vector.broadcast %57 : vector<64x1xf32> to vector<64x64xf32>
    %59 = arith.subf %55, %58 : vector<64x64xf32>
    %60 = math.exp %59 : vector<64x64xf32>
    %cst_28 = arith.constant dense<0.000000e+00> : vector<64xf32>
    %61 = vector.multi_reduction <add>, %60, %cst_28 [1] : vector<64x64xf32> to vector<64xf32>
    %62 = vector.shape_cast %61 : vector<64xf32> to vector<64x1xf32>
    %63 = vector.broadcast %62 : vector<64x1xf32> to vector<64x64xf32>
    %64 = arith.divf %60, %63 : vector<64x64xf32>
    %cst_29 = arith.constant dense<0.000000e+00> : vector<64x16xf32>
    %65 = tpu.matmul %64, %52, %cst_29 {dimension_numbers = #tpu.dot_dimension_numbers<[1], [0], [0], [1], [0, 0, 1, 1], [], []>} : vector<64x64xf32>, vector<64x16xf32>, vector<64x16xf32> -> vector<64x16xf32>
    %c16 = arith.constant 16 : index
    %c0_30 = arith.constant 0 : index
    %66 = vector.load %arg6[%c16, %c0_30] : memref<64x64xf32, #tpu.memory_space<vmem>>, vector<16x64xf32>
    %cst_31 = arith.constant dense<0.000000e+00> : vector<64x64xf32>
    %67 = tpu.matmul %65, %66, %cst_31 {dimension_numbers = #tpu.dot_dimension_numbers<[1], [0], [0], [1], [0, 0, 1, 1], [], []>} : vector<64x16xf32>, vector<16x64xf32>, vector<64x64xf32> -> vector<64x64xf32>
    %68 = arith.addf %49, %67 : vector<64x64xf32>
    %69 = vector.extract_strided_slice %25 {offsets = [0, 32], sizes = [64, 16], strides = [1, 1]} : vector<64x64xf32> to vector<64x16xf32>
    %70 = vector.extract_strided_slice %28 {offsets = [0, 32], sizes = [64, 16], strides = [1, 1]} : vector<64x64xf32> to vector<64x16xf32>
    %71 = vector.extract_strided_slice %29 {offsets = [0, 32], sizes = [64, 16], strides = [1, 1]} : vector<64x64xf32> to vector<64x16xf32>
    %cst_32 = arith.constant dense<0.000000e+00> : vector<64x64xf32>
    %72 = tpu.matmul %69, %70, %cst_32 {dimension_numbers = #tpu.dot_dimension_numbers<[1], [1], [0], [0], [0, 0, 1, 0], [], []>} : vector<64x16xf32>, vector<64x16xf32>, vector<64x64xf32> -> vector<64x64xf32>
    %cst_33 = arith.constant 2.500000e-01 : f32
    %73 = vector.broadcast %cst_33 : f32 to vector<64x64xf32>
    %74 = arith.mulf %72, %73 : vector<64x64xf32>
    %cst_34 = arith.constant dense<0xFF800000> : vector<64xf32>
    %75 = vector.multi_reduction <maximumf>, %74, %cst_34 [1] : vector<64x64xf32> to vector<64xf32>
    %76 = vector.shape_cast %75 : vector<64xf32> to vector<64x1xf32>
    %77 = vector.broadcast %76 : vector<64x1xf32> to vector<64x64xf32>
    %78 = arith.subf %74, %77 : vector<64x64xf32>
    %79 = math.exp %78 : vector<64x64xf32>
    %cst_35 = arith.constant dense<0.000000e+00> : vector<64xf32>
    %80 = vector.multi_reduction <add>, %79, %cst_35 [1] : vector<64x64xf32> to vector<64xf32>
    %81 = vector.shape_cast %80 : vector<64xf32> to vector<64x1xf32>
    %82 = vector.broadcast %81 : vector<64x1xf32> to vector<64x64xf32>
    %83 = arith.divf %79, %82 : vector<64x64xf32>
    %cst_36 = arith.constant dense<0.000000e+00> : vector<64x16xf32>
    %84 = tpu.matmul %83, %71, %cst_36 {dimension_numbers = #tpu.dot_dimension_numbers<[1], [0], [0], [1], [0, 0, 1, 1], [], []>} : vector<64x64xf32>, vector<64x16xf32>, vector<64x16xf32> -> vector<64x16xf32>
    %c32 = arith.constant 32 : index
    %c0_37 = arith.constant 0 : index
    %85 = vector.load %arg6[%c32, %c0_37] : memref<64x64xf32, #tpu.memory_space<vmem>>, vector<16x64xf32>
    %cst_38 = arith.constant dense<0.000000e+00> : vector<64x64xf32>
    %86 = tpu.matmul %84, %85, %cst_38 {dimension_numbers = #tpu.dot_dimension_numbers<[1], [0], [0], [1], [0, 0, 1, 1], [], []>} : vector<64x16xf32>, vector<16x64xf32>, vector<64x64xf32> -> vector<64x64xf32>
    %87 = arith.addf %68, %86 : vector<64x64xf32>
    %88 = vector.extract_strided_slice %25 {offsets = [0, 48], sizes = [64, 16], strides = [1, 1]} : vector<64x64xf32> to vector<64x16xf32>
    %89 = vector.extract_strided_slice %28 {offsets = [0, 48], sizes = [64, 16], strides = [1, 1]} : vector<64x64xf32> to vector<64x16xf32>
    %90 = vector.extract_strided_slice %29 {offsets = [0, 48], sizes = [64, 16], strides = [1, 1]} : vector<64x64xf32> to vector<64x16xf32>
    %cst_39 = arith.constant dense<0.000000e+00> : vector<64x64xf32>
    %91 = tpu.matmul %88, %89, %cst_39 {dimension_numbers = #tpu.dot_dimension_numbers<[1], [1], [0], [0], [0, 0, 1, 0], [], []>} : vector<64x16xf32>, vector<64x16xf32>, vector<64x64xf32> -> vector<64x64xf32>
    %cst_40 = arith.constant 2.500000e-01 : f32
    %92 = vector.broadcast %cst_40 : f32 to vector<64x64xf32>
    %93 = arith.mulf %91, %92 : vector<64x64xf32>
    %cst_41 = arith.constant dense<0xFF800000> : vector<64xf32>
    %94 = vector.multi_reduction <maximumf>, %93, %cst_41 [1] : vector<64x64xf32> to vector<64xf32>
    %95 = vector.shape_cast %94 : vector<64xf32> to vector<64x1xf32>
    %96 = vector.broadcast %95 : vector<64x1xf32> to vector<64x64xf32>
    %97 = arith.subf %93, %96 : vector<64x64xf32>
    %98 = math.exp %97 : vector<64x64xf32>
    %cst_42 = arith.constant dense<0.000000e+00> : vector<64xf32>
    %99 = vector.multi_reduction <add>, %98, %cst_42 [1] : vector<64x64xf32> to vector<64xf32>
    %100 = vector.shape_cast %99 : vector<64xf32> to vector<64x1xf32>
    %101 = vector.broadcast %100 : vector<64x1xf32> to vector<64x64xf32>
    %102 = arith.divf %98, %101 : vector<64x64xf32>
    %cst_43 = arith.constant dense<0.000000e+00> : vector<64x16xf32>
    %103 = tpu.matmul %102, %90, %cst_43 {dimension_numbers = #tpu.dot_dimension_numbers<[1], [0], [0], [1], [0, 0, 1, 1], [], []>} : vector<64x64xf32>, vector<64x16xf32>, vector<64x16xf32> -> vector<64x16xf32>
    %c48 = arith.constant 48 : index
    %c0_44 = arith.constant 0 : index
    %104 = vector.load %arg6[%c48, %c0_44] : memref<64x64xf32, #tpu.memory_space<vmem>>, vector<16x64xf32>
    %cst_45 = arith.constant dense<0.000000e+00> : vector<64x64xf32>
    %105 = tpu.matmul %103, %104, %cst_45 {dimension_numbers = #tpu.dot_dimension_numbers<[1], [0], [0], [1], [0, 0, 1, 1], [], []>} : vector<64x16xf32>, vector<16x64xf32>, vector<64x64xf32> -> vector<64x64xf32>
    %106 = arith.addf %87, %105 : vector<64x64xf32>
    %107 = arith.addf %1, %106 : vector<64x64xf32>
    %c0_46 = arith.constant 0 : index
    %c0_47 = arith.constant 0 : index
    %108 = vector.load %arg7[%c0_46, %c0_47] : memref<1x64xf32, #tpu.memory_space<vmem>>, vector<1x64xf32>
    %109 = vector.broadcast %108 : vector<1x64xf32> to vector<64x64xf32>
    %110 = arith.addf %107, %109 : vector<64x64xf32>
    %cst_48 = arith.constant dense<0.000000e+00> : vector<64xf32>
    %111 = vector.multi_reduction <add>, %110, %cst_48 [1] : vector<64x64xf32> to vector<64xf32>
    %112 = vector.shape_cast %111 : vector<64xf32> to vector<64x1xf32>
    %cst_49 = arith.constant 6.400000e+01 : f32
    %113 = vector.broadcast %cst_49 : f32 to vector<64x1xf32>
    %114 = arith.divf %112, %113 : vector<64x1xf32>
    %115 = vector.broadcast %114 : vector<64x1xf32> to vector<64x64xf32>
    %116 = arith.subf %110, %115 : vector<64x64xf32>
    %117 = arith.mulf %116, %116 : vector<64x64xf32>
    %cst_50 = arith.constant dense<0.000000e+00> : vector<64xf32>
    %118 = vector.multi_reduction <add>, %117, %cst_50 [1] : vector<64x64xf32> to vector<64xf32>
    %119 = vector.shape_cast %118 : vector<64xf32> to vector<64x1xf32>
    %cst_51 = arith.constant 6.400000e+01 : f32
    %120 = vector.broadcast %cst_51 : f32 to vector<64x1xf32>
    %121 = arith.divf %119, %120 : vector<64x1xf32>
    %cst_52 = arith.constant 9.99999974E-6 : f32
    %122 = vector.broadcast %cst_52 : f32 to vector<64x1xf32>
    %123 = arith.addf %121, %122 : vector<64x1xf32>
    %124 = math.rsqrt %123 : vector<64x1xf32>
    %125 = vector.broadcast %124 : vector<64x1xf32> to vector<64x64xf32>
    %126 = arith.mulf %116, %125 : vector<64x64xf32>
    %c0_53 = arith.constant 0 : index
    %c0_54 = arith.constant 0 : index
    %127 = vector.load %arg8[%c0_53, %c0_54] : memref<1x64xf32, #tpu.memory_space<vmem>>, vector<1x64xf32>
    %128 = vector.broadcast %127 : vector<1x64xf32> to vector<64x64xf32>
    %129 = arith.mulf %126, %128 : vector<64x64xf32>
    %c0_55 = arith.constant 0 : index
    %c0_56 = arith.constant 0 : index
    %130 = vector.load %arg9[%c0_55, %c0_56] : memref<1x64xf32, #tpu.memory_space<vmem>>, vector<1x64xf32>
    %131 = vector.broadcast %130 : vector<1x64xf32> to vector<64x64xf32>
    %132 = arith.addf %129, %131 : vector<64x64xf32>
    %c0_57 = arith.constant 0 : index
    %c0_58 = arith.constant 0 : index
    %133 = vector.load %arg10[%c0_57, %c0_58] : memref<64x256xf32, #tpu.memory_space<vmem>>, vector<64x256xf32>
    %cst_59 = arith.constant dense<0.000000e+00> : vector<64x256xf32>
    %134 = tpu.matmul %132, %133, %cst_59 {dimension_numbers = #tpu.dot_dimension_numbers<[1], [0], [0], [1], [0, 0, 1, 1], [], []>} : vector<64x64xf32>, vector<64x256xf32>, vector<64x256xf32> -> vector<64x256xf32>
    %c0_60 = arith.constant 0 : index
    %c0_61 = arith.constant 0 : index
    %135 = vector.load %arg11[%c0_60, %c0_61] : memref<1x256xf32, #tpu.memory_space<vmem>>, vector<1x256xf32>
    %136 = vector.broadcast %135 : vector<1x256xf32> to vector<64x256xf32>
    %137 = arith.addf %134, %136 : vector<64x256xf32>
    %cst_62 = arith.constant 0.000000e+00 : f32
    %138 = vector.broadcast %cst_62 : f32 to vector<10x10x256xf32>
    %c0_63 = arith.constant 0 : index
    %c0_64 = arith.constant 0 : index
    %c0_65 = arith.constant 0 : index
    %139 = vector.load %arg17[%c0_63, %c0_64, %c0_65] : memref<10x10x256xf32, #tpu.memory_space<vmem>>, vector<10x10x256xf32>
    tpu.vector_store %arg17[%c0_63, %c0_64, %c0_65], %138 {strides = array<i32>} : memref<10x10x256xf32, #tpu.memory_space<vmem>>, vector<10x10x256xf32>,
    %140 = vector.shape_cast %137 : vector<64x256xf32> to vector<8x8x256xf32>
    %c1 = arith.constant 1 : index
    %c1_66 = arith.constant 1 : index
    %c0_67 = arith.constant 0 : index
    %141 = vector.load %arg17[%c1, %c1_66, %c0_67] : memref<10x10x256xf32, #tpu.memory_space<vmem>>, vector<8x8x256xf32>
    tpu.vector_store %arg17[%c1, %c1_66, %c0_67], %140 {strides = array<i32>} : memref<10x10x256xf32, #tpu.memory_space<vmem>>, vector<8x8x256xf32>,
    %cst_68 = arith.constant 0.000000e+00 : f32
    %142 = vector.broadcast %cst_68 : f32 to vector<8x8x256xf32>
    %c0_69 = arith.constant 0 : index
    %c0_70 = arith.constant 0 : index
    %143 = vector.load %arg12[%c0_69, %c0_70] : memref<9x256xf32, #tpu.memory_space<vmem>>, vector<1x256xf32>
    %144 = vector.shape_cast %143 : vector<1x256xf32> to vector<1x1x256xf32>
    %c0_71 = arith.constant 0 : index
    %c0_72 = arith.constant 0 : index
    %c0_73 = arith.constant 0 : index
    %145 = vector.load %arg17[%c0_71, %c0_72, %c0_73] : memref<10x10x256xf32, #tpu.memory_space<vmem>>, vector<8x8x256xf32>
    %146 = vector.broadcast %144 : vector<1x1x256xf32> to vector<8x8x256xf32>
    %147 = arith.mulf %145, %146 : vector<8x8x256xf32>
    %148 = arith.addf %142, %147 : vector<8x8x256xf32>
    %c1_74 = arith.constant 1 : index
    %c0_75 = arith.constant 0 : index
    %149 = vector.load %arg12[%c1_74, %c0_75] : memref<9x256xf32, #tpu.memory_space<vmem>>, vector<1x256xf32>
    %150 = vector.shape_cast %149 : vector<1x256xf32> to vector<1x1x256xf32>
    %c0_76 = arith.constant 0 : index
    %c1_77 = arith.constant 1 : index
    %c0_78 = arith.constant 0 : index
    %151 = vector.load %arg17[%c0_76, %c1_77, %c0_78] : memref<10x10x256xf32, #tpu.memory_space<vmem>>, vector<8x8x256xf32>
    %152 = vector.broadcast %150 : vector<1x1x256xf32> to vector<8x8x256xf32>
    %153 = arith.mulf %151, %152 : vector<8x8x256xf32>
    %154 = arith.addf %148, %153 : vector<8x8x256xf32>
    %c2 = arith.constant 2 : index
    %c0_79 = arith.constant 0 : index
    %155 = vector.load %arg12[%c2, %c0_79] : memref<9x256xf32, #tpu.memory_space<vmem>>, vector<1x256xf32>
    %156 = vector.shape_cast %155 : vector<1x256xf32> to vector<1x1x256xf32>
    %c0_80 = arith.constant 0 : index
    %c2_81 = arith.constant 2 : index
    %c0_82 = arith.constant 0 : index
    %157 = vector.load %arg17[%c0_80, %c2_81, %c0_82] : memref<10x10x256xf32, #tpu.memory_space<vmem>>, vector<8x8x256xf32>
    %158 = vector.broadcast %156 : vector<1x1x256xf32> to vector<8x8x256xf32>
    %159 = arith.mulf %157, %158 : vector<8x8x256xf32>
    %160 = arith.addf %154, %159 : vector<8x8x256xf32>
    %c3 = arith.constant 3 : index
    %c0_83 = arith.constant 0 : index
    %161 = vector.load %arg12[%c3, %c0_83] : memref<9x256xf32, #tpu.memory_space<vmem>>, vector<1x256xf32>
    %162 = vector.shape_cast %161 : vector<1x256xf32> to vector<1x1x256xf32>
    %c1_84 = arith.constant 1 : index
    %c0_85 = arith.constant 0 : index
    %c0_86 = arith.constant 0 : index
    %163 = vector.load %arg17[%c1_84, %c0_85, %c0_86] : memref<10x10x256xf32, #tpu.memory_space<vmem>>, vector<8x8x256xf32>
    %164 = vector.broadcast %162 : vector<1x1x256xf32> to vector<8x8x256xf32>
    %165 = arith.mulf %163, %164 : vector<8x8x256xf32>
    %166 = arith.addf %160, %165 : vector<8x8x256xf32>
    %c4 = arith.constant 4 : index
    %c0_87 = arith.constant 0 : index
    %167 = vector.load %arg12[%c4, %c0_87] : memref<9x256xf32, #tpu.memory_space<vmem>>, vector<1x256xf32>
    %168 = vector.shape_cast %167 : vector<1x256xf32> to vector<1x1x256xf32>
    %c1_88 = arith.constant 1 : index
    %c1_89 = arith.constant 1 : index
    %c0_90 = arith.constant 0 : index
    %169 = vector.load %arg17[%c1_88, %c1_89, %c0_90] : memref<10x10x256xf32, #tpu.memory_space<vmem>>, vector<8x8x256xf32>
    %170 = vector.broadcast %168 : vector<1x1x256xf32> to vector<8x8x256xf32>
    %171 = arith.mulf %169, %170 : vector<8x8x256xf32>
    %172 = arith.addf %166, %171 : vector<8x8x256xf32>
    %c5 = arith.constant 5 : index
    %c0_91 = arith.constant 0 : index
    %173 = vector.load %arg12[%c5, %c0_91] : memref<9x256xf32, #tpu.memory_space<vmem>>, vector<1x256xf32>
    %174 = vector.shape_cast %173 : vector<1x256xf32> to vector<1x1x256xf32>
    %c1_92 = arith.constant 1 : index
    %c2_93 = arith.constant 2 : index
    %c0_94 = arith.constant 0 : index
    %175 = vector.load %arg17[%c1_92, %c2_93, %c0_94] : memref<10x10x256xf32, #tpu.memory_space<vmem>>, vector<8x8x256xf32>
    %176 = vector.broadcast %174 : vector<1x1x256xf32> to vector<8x8x256xf32>
    %177 = arith.mulf %175, %176 : vector<8x8x256xf32>
    %178 = arith.addf %172, %177 : vector<8x8x256xf32>
    %c6 = arith.constant 6 : index
    %c0_95 = arith.constant 0 : index
    %179 = vector.load %arg12[%c6, %c0_95] : memref<9x256xf32, #tpu.memory_space<vmem>>, vector<1x256xf32>
    %180 = vector.shape_cast %179 : vector<1x256xf32> to vector<1x1x256xf32>
    %c2_96 = arith.constant 2 : index
    %c0_97 = arith.constant 0 : index
    %c0_98 = arith.constant 0 : index
    %181 = vector.load %arg17[%c2_96, %c0_97, %c0_98] : memref<10x10x256xf32, #tpu.memory_space<vmem>>, vector<8x8x256xf32>
    %182 = vector.broadcast %180 : vector<1x1x256xf32> to vector<8x8x256xf32>
    %183 = arith.mulf %181, %182 : vector<8x8x256xf32>
    %184 = arith.addf %178, %183 : vector<8x8x256xf32>
    %c7 = arith.constant 7 : index
    %c0_99 = arith.constant 0 : index
    %185 = vector.load %arg12[%c7, %c0_99] : memref<9x256xf32, #tpu.memory_space<vmem>>, vector<1x256xf32>
    %186 = vector.shape_cast %185 : vector<1x256xf32> to vector<1x1x256xf32>
    %c2_100 = arith.constant 2 : index
    %c1_101 = arith.constant 1 : index
    %c0_102 = arith.constant 0 : index
    %187 = vector.load %arg17[%c2_100, %c1_101, %c0_102] : memref<10x10x256xf32, #tpu.memory_space<vmem>>, vector<8x8x256xf32>
    %188 = vector.broadcast %186 : vector<1x1x256xf32> to vector<8x8x256xf32>
    %189 = arith.mulf %187, %188 : vector<8x8x256xf32>
    %190 = arith.addf %184, %189 : vector<8x8x256xf32>
    %c8 = arith.constant 8 : index
    %c0_103 = arith.constant 0 : index
    %191 = vector.load %arg12[%c8, %c0_103] : memref<9x256xf32, #tpu.memory_space<vmem>>, vector<1x256xf32>
    %192 = vector.shape_cast %191 : vector<1x256xf32> to vector<1x1x256xf32>
    %c2_104 = arith.constant 2 : index
    %c2_105 = arith.constant 2 : index
    %c0_106 = arith.constant 0 : index
    %193 = vector.load %arg17[%c2_104, %c2_105, %c0_106] : memref<10x10x256xf32, #tpu.memory_space<vmem>>, vector<8x8x256xf32>
    %194 = vector.broadcast %192 : vector<1x1x256xf32> to vector<8x8x256xf32>
    %195 = arith.mulf %193, %194 : vector<8x8x256xf32>
    %196 = arith.addf %190, %195 : vector<8x8x256xf32>
    %197 = vector.shape_cast %196 : vector<8x8x256xf32> to vector<64x256xf32>
    %c0_107 = arith.constant 0 : index
    %c0_108 = arith.constant 0 : index
    %198 = vector.load %arg13[%c0_107, %c0_108] : memref<1x256xf32, #tpu.memory_space<vmem>>, vector<1x256xf32>
    %199 = vector.broadcast %198 : vector<1x256xf32> to vector<64x256xf32>
    %200 = arith.addf %197, %199 : vector<64x256xf32>
    %201 = arith.mulf %200, %200 : vector<64x256xf32>
    %202 = arith.mulf %200, %201 : vector<64x256xf32>
    %cst_109 = arith.constant 4.471500e-02 : f32
    %203 = vector.broadcast %cst_109 : f32 to vector<64x256xf32>
    %204 = arith.mulf %203, %202 : vector<64x256xf32>
    %205 = arith.addf %200, %204 : vector<64x256xf32>
    %cst_110 = arith.constant 0.797884583 : f32
    %206 = vector.broadcast %cst_110 : f32 to vector<64x256xf32>
    %207 = arith.mulf %206, %205 : vector<64x256xf32>
    %208 = math.tanh %207 : vector<64x256xf32>
    %cst_111 = arith.constant 1.000000e+00 : f32
    %209 = vector.broadcast %cst_111 : f32 to vector<64x256xf32>
    %210 = arith.addf %209, %208 : vector<64x256xf32>
    %cst_112 = arith.constant 5.000000e-01 : f32
    %211 = vector.broadcast %cst_112 : f32 to vector<64x256xf32>
    %212 = arith.mulf %211, %210 : vector<64x256xf32>
    %213 = arith.mulf %200, %212 : vector<64x256xf32>
    %c0_113 = arith.constant 0 : index
    %c0_114 = arith.constant 0 : index
    %214 = vector.load %arg14[%c0_113, %c0_114] : memref<256x64xf32, #tpu.memory_space<vmem>>, vector<256x64xf32>
    %cst_115 = arith.constant dense<0.000000e+00> : vector<64x64xf32>
    %215 = tpu.matmul %213, %214, %cst_115 {dimension_numbers = #tpu.dot_dimension_numbers<[1], [0], [0], [1], [0, 0, 1, 1], [], []>} : vector<64x256xf32>, vector<256x64xf32>, vector<64x64xf32> -> vector<64x64xf32>
    %c0_116 = arith.constant 0 : index
    %c0_117 = arith.constant 0 : index
    %216 = vector.load %arg15[%c0_116, %c0_117] : memref<1x64xf32, #tpu.memory_space<vmem>>, vector<1x64xf32>
    %217 = vector.broadcast %216 : vector<1x64xf32> to vector<64x64xf32>
    %218 = arith.addf %215, %217 : vector<64x64xf32>
    %219 = arith.addf %110, %218 : vector<64x64xf32>
    %c0_118 = arith.constant 0 : index
    %c0_119 = arith.constant 0 : index
    %c0_120 = arith.constant 0 : index
    %220 = vector.load %arg16[%c0_118, %c0_119, %c0_120] : memref<1x64x64xf32, #tpu.memory_space<vmem>>, vector<1x64x64xf32>
    %221 = vector.shape_cast %220 : vector<1x64x64xf32> to vector<64x64xf32>
    %222 = vector.shape_cast %219 : vector<64x64xf32> to vector<1x64x64xf32>
    tpu.vector_store %arg16[%c0_118, %c0_119, %c0_120], %222 {strides = array<i32>} : memref<1x64x64xf32, #tpu.memory_space<vmem>>, vector<1x64x64xf32>,
    return
  }
  func.func @transform_0(%arg0: i32) -> (i32, i32, i32) {
    %c0_i32 = arith.constant 0 : i32
    %c0_i32_0 = arith.constant 0 : i32
    %c0_i32_1 = arith.constant 0 : i32
    return %arg0, %c0_i32, %c0_i32_0 : i32, i32, i32
  }
  func.func @transform_1(%arg0: i32) -> (i32, i32) {
    %c0_i32 = arith.constant 0 : i32
    %c0_i32_0 = arith.constant 0 : i32
    %c0_i32_1 = arith.constant 0 : i32
    return %c0_i32, %c0_i32_0 : i32, i32
  }
  func.func @transform_2(%arg0: i32) -> (i32, i32) {
    %c0_i32 = arith.constant 0 : i32
    %c0_i32_0 = arith.constant 0 : i32
    %c0_i32_1 = arith.constant 0 : i32
    return %c0_i32, %c0_i32_0 : i32, i32
  }
  func.func @transform_3(%arg0: i32) -> (i32, i32) {
    %c0_i32 = arith.constant 0 : i32
    %c0_i32_0 = arith.constant 0 : i32
    %c0_i32_1 = arith.constant 0 : i32
    return %c0_i32, %c0_i32_0 : i32, i32
  }
  func.func @transform_4(%arg0: i32) -> (i32, i32) {
    %c0_i32 = arith.constant 0 : i32
    %c0_i32_0 = arith.constant 0 : i32
    %c0_i32_1 = arith.constant 0 : i32
    return %c0_i32, %c0_i32_0 : i32, i32
  }
  func.func @transform_5(%arg0: i32) -> (i32, i32) {
    %c0_i32 = arith.constant 0 : i32
    %c0_i32_0 = arith.constant 0 : i32
    %c0_i32_1 = arith.constant 0 : i32
    return %c0_i32, %c0_i32_0 : i32, i32
  }
  func.func @transform_6(%arg0: i32) -> (i32, i32) {
    %c0_i32 = arith.constant 0 : i32
    %c0_i32_0 = arith.constant 0 : i32
    %c0_i32_1 = arith.constant 0 : i32
    return %c0_i32, %c0_i32_0 : i32, i32
  }
  func.func @transform_7(%arg0: i32) -> (i32, i32) {
    %c0_i32 = arith.constant 0 : i32
    %c0_i32_0 = arith.constant 0 : i32
    %c0_i32_1 = arith.constant 0 : i32
    return %c0_i32, %c0_i32_0 : i32, i32
  }
  func.func @transform_8(%arg0: i32) -> (i32, i32) {
    %c0_i32 = arith.constant 0 : i32
    %c0_i32_0 = arith.constant 0 : i32
    %c0_i32_1 = arith.constant 0 : i32
    return %c0_i32, %c0_i32_0 : i32, i32
  }
  func.func @transform_9(%arg0: i32) -> (i32, i32) {
    %c0_i32 = arith.constant 0 : i32
    %c0_i32_0 = arith.constant 0 : i32
    %c0_i32_1 = arith.constant 0 : i32
    return %c0_i32, %c0_i32_0 : i32, i32
  }
  func.func @transform_10(%arg0: i32) -> (i32, i32) {
    %c0_i32 = arith.constant 0 : i32
    %c0_i32_0 = arith.constant 0 : i32
    %c0_i32_1 = arith.constant 0 : i32
    return %c0_i32, %c0_i32_0 : i32, i32
  }
  func.func @transform_11(%arg0: i32) -> (i32, i32) {
    %c0_i32 = arith.constant 0 : i32
    %c0_i32_0 = arith.constant 0 : i32
    %c0_i32_1 = arith.constant 0 : i32
    return %c0_i32, %c0_i32_0 : i32, i32
  }
  func.func @transform_12(%arg0: i32) -> (i32, i32) {
    %c0_i32 = arith.constant 0 : i32
    %c0_i32_0 = arith.constant 0 : i32
    %c0_i32_1 = arith.constant 0 : i32
    return %c0_i32, %c0_i32_0 : i32, i32
  }
  func.func @transform_13(%arg0: i32) -> (i32, i32) {
    %c0_i32 = arith.constant 0 : i32
    %c0_i32_0 = arith.constant 0 : i32
    %c0_i32_1 = arith.constant 0 : i32
    return %c0_i32, %c0_i32_0 : i32, i32
  }
  func.func @transform_14(%arg0: i32) -> (i32, i32) {
    %c0_i32 = arith.constant 0 : i32
    %c0_i32_0 = arith.constant 0 : i32
    %c0_i32_1 = arith.constant 0 : i32
    return %c0_i32, %c0_i32_0 : i32, i32
  }
  func.func @transform_15(%arg0: i32) -> (i32, i32, i32) {
    %c0_i32 = arith.constant 0 : i32
    %c0_i32_0 = arith.constant 0 : i32
    %c0_i32_1 = arith.constant 0 : i32
    return %arg0, %c0_i32, %c0_i32_0 : i32, i32, i32
  }
}

</mosaic_0001>

<bundles_post_ra>
// kernel: tpu_custom_call.1
= control target key start
LH: loop header
LB: loop body
LE: loop exit
PB: predicated region body
PF: predicated region fallthrough
CT: control target
= control target key end

     0   :  { %s9143_s0 = inlined_call_operand.vmem [shape: f32[2,64,64], index: 0, kind: input, shape index: {}]   ;;  %s9144_s1 = inlined_call_operand.hbm [shape: f32[1,64], index: 1, kind: input, shape index: {}]   ;;  %s9145_s2 = inlined_call_operand.vmem [shape: f32[1,64], index: 2, kind: input, shape index: {}]   ;;  %s9146_s3 = inlined_call_operand.vmem [shape: f32[64,64], index: 3, kind: input, shape index: {}]   ;;  %s9147_s4 = inlined_call_operand.vmem [shape: f32[64,128], index: 4, kind: input, shape index: {}]   ;;  %s9148_s5 = inlined_call_operand.hbm [shape: f32[64,64], index: 5, kind: input, shape index: {}]   ;;  %s9149_s6 = inlined_call_operand.hbm [shape: f32[1,64], index: 6, kind: input, shape index: {}]   ;;  %s9150_s7 = inlined_call_operand.hbm [shape: f32[1,64], index: 7, kind: input, shape index: {}]   ;;  %s9151_s8 = inlined_call_operand.hbm [shape: f32[1,64], index: 8, kind: input, shape index: {}]   ;;  %s9152_s9 = inlined_call_operand.vmem [shape: f32[64,256], index: 9, kind: input, shape index: {}]   ;;  %s9153_s10 = inlined_call_operand.vmem [shape: f32[1,256], index: 10, kind: input, shape index: {}]   ;;  %s9154_s11 = inlined_call_operand.vmem [shape: f32[9,256], index: 11, kind: input, shape index: {}]   ;;  %s9155_s12 = inlined_call_operand.vmem [shape: f32[1,256], index: 12, kind: input, shape index: {}]   ;;  %s9156_s13 = inlined_call_operand.vmem [shape: f32[256,64], index: 13, kind: input, shape index: {}]   ;;  %s9157_s14 = inlined_call_operand.vmem [shape: f32[1,64], index: 14, kind: input, shape index: {}]   ;;  %s9158_s15 = inlined_call_operand.hbm [shape: f32[2,64,64], index: 15, kind: output, shape index: {}]  }
   0x1   :  { %9173 = sst [smem:[#allocation25_spill]] %s9155_s12 }
   0x2   :  { %9174 = sst [smem:[#allocation26_spill]] %s9157_s14 }
   0x3   :  { %9175 = sst [smem:[#allocation27_spill]] %s9158_s15 }
   0x4   :  { %20 = vsyncpa [#allocation4], 0 }
   0x5   :  { %21 = vsyncpa [#allocation7], 0 }
   0x6   :  { %22 = vsyncpa [#allocation10], 0 }
   0x7   :  { %23 = vsyncpa [#allocation5], 0 }
   0x8   :  { %25 = vsyncpa [#allocation5 + $0x1], 0  ;;  %s7196_s18 = smov 0   ;;  %s7198_s19 = smov 0  }
   0x9   :  { %s7200_s20 = smov 0   ;;  %s7202_s21 = smov 0  }
   0xa LB: > { %9176 = sst [smem:[#allocation17_spill]] %s7084_s18  ;;  %s7217_s22 = sadd.s32 4294967295, %s7096_s21   ;;  %s7096_s21 = sphi %s7202_s21, %s9208_s21   ;;  %s7092_s20 = sphi %s7200_s20, %s9211_s20   ;;  %s7088_s19 = sphi %s7198_s19, %s9210_s19   ;;  %s7084_s18 = sphi %s7196_s18, %s9209_s18  }
   0xb   : > { %9177 = sst [smem:[#allocation18_spill]] %s7088_s19  ;;  %s5369_s23 = sadd.s32 4294967294, %s7096_s21  }
   0xc   : > { %9178 = sst [smem:[#allocation19_spill]] %s7092_s20  ;;  %s7221_s24 = sadd.s32 1, %s7096_s21  }
   0xd   : > { %9179 = sst [smem:[#allocation20_spill]] %s7096_s21  ;;  %s358_s25 = sadd.s32 1, %s7092_s20 }
   0xe   : > { %9180 = sst [smem:[#allocation21_spill]] %s7221_s24  ;;  %s355_s26 = ssub.s32 %s7096_s21, %s7221_s24 }
   0xf   : > { %p368_p0 = scmp.ne.s32.totalorder %s7092_s20, %s7088_s19  ;;  %p356_p1 = scmp.eq.s32.totalorder %s355_s26, 0 }
  0x10   : > { %p369_p2 = scmp.eq.s32.totalorder %s7217_s22, 1  ;;  %p374_p3 = scmp.ne.s32.totalorder %s7088_s19, %s7084_s18 }
  0x11   : > { %p375_p4 = scmp.eq.s32.totalorder %s5369_s23, 1  ;;  %p5370_p7 = scmp.ge.s32.totalorder %s7096_s21, 1 }
  0x12   : > { %s7232_s27 = scalar_select %p356_p1, %s7092_s20, %s358_s25  }
  0x13   : > { %p7234_p5 = por %p369_p2, %p368_p0  ;;  %p7238_p6 = por %p375_p4, %p374_p3 }
  0x14   : > { %9181 = sst [smem:[#allocation22_spill]] %s7232_s27  ;;  %p382_p8 = scmp.lt.s32.totalorder %s7096_s21, 3 }
  0x15   : > { %s9182_s28 = scalar_select %p7234_p5, 1, 0 }
  0x16   : > { %s9184_s29 = scalar_select %p7238_p6, 1, 0 }
  0x17   : > { %9183 = sst [smem:[#allocation23_spill]] %s9182_s28  ;;  %p9166_p9 = scmp.eq.s32.totalorder %s7217_s22, 0 }
  0x18   : > { %9185 = sst [smem:[#allocation24_spill]] %s9184_s29  ;;  %p7245_p10 = pnand %p5370_p7, %p382_p8 }
  0x19   : > { %s7098_s16 = smov [#allocation6]   ;;  %s7099_s25 = smov [#allocation9]  }
  0x1a   : > { %s9186_s30 = scalar_select %p7245_p10, 1, 0 }
  0x1b   : > { %s414_s17 = sshll.u32 %s7098_s16, 4  ;;  %p6461_p11 = pneg %p7245_p10  ;;  %s7251_s17 = int_to_ptr.vmem [resolvable:$true] %s414_s17 }
  0x1c   : > { %s439_s26 = sshll.u32 %s7099_s25, 4  ;;  %s7100_s27 = smov [#allocation3]   ;;  %s7259_s26 = int_to_ptr.vmem [resolvable:$true] %s439_s26 }
  0x1d   : > { %p7255_p12 = pnand %p9166_p9, %p6461_p11  ;;  %s7261_s20 = sshll.u32 %s7100_s27, 4  ;;  %s396_s20 = int_to_ptr.vmem [resolvable:$true] %s7261_s20 }
  0x1e   : > { %s6882_s16 = scalar_lea.hbm %s9148_s5, 1024 }
  0x1f   : > { %p6883_p13 = scmp.ne.s32.totalorder %s9148_s5, %s6882_s16  ;;  %p7271_p0 = pneg %p7255_p12 }
  0x20   : > { %p6889_p3 = scmp.lt.u32.totalorder %s6882_s16, %s9148_s5 }
  0x21   : > { %p6885_p1 = pnand %p7271_p0, %p6883_p13 }
  0x23   : > { %p6886_p2 = pneg %p6885_p1 }
  0x25   : > { %p6891_p4 = pnand %p6889_p3, %p6886_p2 }
  0x27   : > { %6894 = shalt.err (!%p6891_p4)
}
  0x28   : > { %s6895_s18 = scalar_lea.vmem %s7251_s17, 1024  ;;  %p6903_p9 = scmp.lt.s32.totalorder %s7251_s17, %s7251_s17 }
  0x29   : > { %p6896_p7 = scmp.ne.s32.totalorder %s7251_s17, %s6895_s18  ;;  %p6904_p6 = scmp.lt.s32.totalorder %s6895_s18, %s6895_s18 }
  0x2b   : > { %p6898_p8 = pnand %p6896_p7, %p7271_p0  ;;  %p6905_p13 = por %p6904_p6, %p6903_p9 }
  0x2d   : > { %p6899_p11 = pneg %p6898_p8 }
  0x2f   : > { %p6906_p1 = pnand %p6905_p13, %p6899_p11 }
  0x31   : > { %6909 = shalt.err (!%p6906_p1)
}
  0x32   : > { %s7101_s21 = smov 128   ;;  %s7102_s24 = smov 8  }
  0x33   : > { %6467 = dma.hbm_to_vmem [thread:$0]  (!%p7255_p12), %s9148_s5, 1024, %s7251_s17, [#allocation7], %s7101_s21, %s7101_s21, %s7102_s24  }
  0x34   : > { %s6910_s28 = scalar_lea.hbm %s9150_s7, 16 }
  0x35   : > { %p6911_p6 = scmp.ne.s32.totalorder %s9150_s7, %s6910_s28  ;;  %p6917_p3 = scmp.lt.u32.totalorder %s6910_s28, %s9150_s7 }
  0x37   : > { %p6913_p9 = pnand %p6911_p6, %p7271_p0 }
  0x39   : > { %p6914_p2 = pneg %p6913_p9 }
  0x3b   : > { %p6919_p4 = pnand %p6917_p3, %p6914_p2 }
  0x3d   : > { %6922 = shalt.err (!%p6919_p4)
}
  0x3e   : > { %s6923_s17 = scalar_lea.vmem %s7259_s26, 16  ;;  %s6930_s14 = scalar_lea.vmem %s7259_s26, 32 }
  0x3f   : > { %p6924_p7 = scmp.ne.s32.totalorder %s7259_s26, %s6923_s17  ;;  %p6931_p13 = scmp.lt.s32.totalorder %s7259_s26, %s7259_s26 }
  0x40   : > { %p6932_p1 = scmp.lt.s32.totalorder %s6930_s14, %s6923_s17 }
  0x41   : > { %p6926_p8 = pnand %p6924_p7, %p7271_p0 }
  0x42   : > { %p6933_p6 = por %p6932_p1, %p6931_p13 }
  0x43   : > { %p6927_p11 = pneg %p6926_p8 }
  0x45   : > { %p6934_p9 = pnand %p6933_p6, %p6927_p11 }
  0x47   : > { %6937 = shalt.err (!%p6934_p9)
}
  0x48   : > { %6473 = dma.hbm_to_vmem [thread:$0]  (!%p7255_p12), %s9150_s7, 16, %s7259_s26, [#allocation10]  }
  0x49   : > { %s6938_s24 = scalar_lea.hbm %s9144_s1, 16 }
  0x4a   : > { %p6939_p2 = scmp.ne.s32.totalorder %s9144_s1, %s6938_s24  ;;  %p6945_p7 = scmp.lt.u32.totalorder %s6938_s24, %s9144_s1 }
  0x4c   : > { %p6941_p3 = pnand %p6939_p2, %p7271_p0 }
  0x4e   : > { %p6942_p4 = pneg %p6941_p3 }
  0x50   : > { %p6947_p8 = pnand %p6945_p7, %p6942_p4 }
  0x52   : > { %6950 = shalt.err (!%p6947_p8)
}
  0x53   : > { %s6951_s18 = scalar_lea.vmem %s396_s20, 16  ;;  %s6958_s26 = scalar_lea.vmem %s396_s20, 32 }
  0x54   : > { %p6952_p11 = scmp.ne.s32.totalorder %s396_s20, %s6951_s18  ;;  %p6959_p6 = scmp.lt.s32.totalorder %s396_s20, %s396_s20 }
  0x55   : > { %p6960_p9 = scmp.lt.s32.totalorder %s6958_s26, %s6951_s18 }
  0x56   : > { %p6954_p13 = pnand %p6952_p11, %p7271_p0 }
  0x57   : > { %p6961_p5 = por %p6960_p9, %p6959_p6 }
  0x58   : > { %p6955_p1 = pneg %p6954_p13 }
  0x5a   : > { %p6962_p10 = pnand %p6961_p5, %p6955_p1 }
  0x5c   : > { %6965 = shalt.err (!%p6962_p10)
}
  0x5d   : > { %6464 = dma.hbm_to_vmem [thread:$0]  (!%p7255_p12), %s9144_s1, 16, %s396_s20, [#allocation4]  }
  0x5e   : > { %s7103_s12 = smov [#allocation8]   ;;  %s7104_s28 = smov [#allocation11]  }
  0x5f   : > { %s428_s19 = sshll.u32 %s7103_s12, 4  ;;  %s450_s21 = sshll.u32 %s7104_s28, 4  ;;  %s429_s19 = int_to_ptr.vmem [resolvable:$true] %s428_s19  ;;  %s451_s21 = int_to_ptr.vmem [resolvable:$true] %s450_s21 }
  0x60   : > { %s6966_s16 = scalar_lea.hbm %s9149_s6, 16 }
  0x61   : > { %p6967_p5 = scmp.ne.s32.totalorder %s9149_s6, %s6966_s16  ;;  %p6973_p3 = scmp.lt.u32.totalorder %s6966_s16, %s9149_s6 }
  0x63   : > { %p6969_p10 = pnand %p6967_p5, %p7271_p0 }
  0x65   : > { %p6970_p2 = pneg %p6969_p10 }
  0x67   : > { %p6975_p4 = pnand %p6973_p3, %p6970_p2 }
  0x69   : > { %6978 = shalt.err (!%p6975_p4)
}
  0x6a   : > { %s6979_s20 = scalar_lea.vmem %s429_s19, 16  ;;  %s6986_s17 = scalar_lea.vmem %s429_s19, 32 }
  0x6b   : > { %p6980_p7 = scmp.ne.s32.totalorder %s429_s19, %s6979_s20  ;;  %p6987_p13 = scmp.lt.s32.totalorder %s429_s19, %s429_s19 }
  0x6c   : > { %p6988_p1 = scmp.lt.s32.totalorder %s6986_s17, %s6979_s20 }
  0x6d   : > { %p6982_p8 = pnand %p6980_p7, %p7271_p0 }
  0x6e   : > { %p6989_p6 = por %p6988_p1, %p6987_p13 }
  0x6f   : > { %p6983_p11 = pneg %p6982_p8 }
  0x71   : > { %p6990_p9 = pnand %p6989_p6, %p6983_p11 }
  0x73   : > { %6993 = shalt.err (!%p6990_p9)
}
  0x74   : > { %6470 = dma.hbm_to_vmem [thread:$0]  (!%p7255_p12), %s9149_s6, 16, %s429_s19, [#allocation7]  }
  0x75   : > { %s6994_s29 = scalar_lea.hbm %s9151_s8, 16 }
  0x76   : > { %p6995_p5 = scmp.ne.s32.totalorder %s9151_s8, %s6994_s29  ;;  %p7001_p3 = scmp.lt.u32.totalorder %s6994_s29, %s9151_s8 }
  0x78   : > { %p6997_p10 = pnand %p6995_p5, %p7271_p0 }
  0x7a   : > { %p6998_p2 = pneg %p6997_p10 }
  0x7c   : > { %p7003_p4 = pnand %p7001_p3, %p6998_p2 }
  0x7e   : > { %7006 = shalt.err (!%p7003_p4)
}
  0x7f   : > { %s7007_s26 = scalar_lea.vmem %s451_s21, 16  ;;  %s7014_s19 = scalar_lea.vmem %s451_s21, 32 }
  0x80   : > { %p7008_p7 = scmp.ne.s32.totalorder %s451_s21, %s7007_s26  ;;  %p7015_p13 = scmp.lt.s32.totalorder %s451_s21, %s451_s21 }
  0x81   : > { %p7016_p1 = scmp.lt.s32.totalorder %s7014_s19, %s7007_s26 }
  0x82   : > { %p7010_p8 = pnand %p7008_p7, %p7271_p0 }
  0x83   : > { %p7017_p6 = por %p7016_p1, %p7015_p13 }
  0x84   : > { %p7011_p11 = pneg %p7010_p8 }
  0x86   : > { %p7018_p9 = pnand %p7017_p6, %p7011_p11 }
  0x88   : > { %7021 = shalt.err (!%p7018_p9)
}
  0x89   : > { %6476 = dma.hbm_to_vmem [thread:$0]  (!%p7255_p12), %s9151_s8, 16, %s451_s21, [#allocation10]  }
  0x8a   : > { %p9189_p5 = scmp.ne.s32.totalorder %s9186_s30, 0 }
  0x8b   : > { %p9190_p10 = scmp.eq.s32.totalorder (!%p9189_p5), %s7217_s22, 0 }
  0x8c   : > { %489 = sbr.rel (%p9189_p5) target bundleno = 3889 (0xf31), region = 80 }
  0x93   : > { %7067 = dma.done.wait (%p9190_p10), [#allocation4], 16   ;;  %p9191_p0 = pmov %p9190_p10 }
  0x95   : > { %7069 = vsyncadd (%p9191_p0), [#allocation4], 4294967280  ;;  %p9192_p2 = pmov %p9191_p0 }
  0x96   : > { %p9193_p3 = pmov %p9191_p0 }
  0x97   : > { %7071 = dma.done.wait (%p9192_p2), [#allocation7], 1040  }
  0x98   : > { %7073 = vsyncadd (%p9193_p3), [#allocation7], 4294966256  ;;  %p9194_p4 = pmov %p9191_p0 }
  0x99   : > { %p9195_p12 = pmov %p9191_p0 }
  0x9a   : > { %7075 = dma.done.wait (%p9194_p4), [#allocation10], 32  }
  0x9b   : > { %7077 = vsyncadd (%p9195_p12), [#allocation10], 4294967264  ;;  %p553_p7 = scmp.lt.s32.totalorder %s7217_s22, 1  ;;  %vm566_vm0 = vcmask 523264   ;;  %v702_v56 = vld [vmem:[%s9146_s3] sm:$0xff]  ;;  %v703_v57 = vld [vmem:[%s9146_s3 + $0x8] sm:$0xff] }
  0x9c   : > { %v6159_v58 = vpack.c.bf16 %v703_v57, %v702_v56  ;;  %v704_v59 = vld [vmem:[%s9146_s3 + $0x10] sm:$0xff]  ;;  %v705_v60 = vld [vmem:[%s9146_s3 + $0x18] sm:$0xff]  ;;  %v706_v62 = vld [vmem:[%s9146_s3 + $0x20] sm:$0xff]  ;;  %vm952_vm1 = vcmask 130048   ;;  %s7105_s24 = smov 64   ;;  %s7106_s29 = smov 112  }
  0x9d   : > { %s554_s15 = scalar_select %p553_p7, %s7217_s22, 1  ;;  %v6163_v61 = vpack.c.bf16 %v705_v60, %v704_v59  ;;  %v707_v63 = vld [vmem:[%s9146_s3 + $0x28] sm:$0xff]  ;;  %v843_v57 = vld [vmem:[%s9147_s4 + $0x20] sm:$0xff]  ;;  %vm7543_vm2 = vmpackc.low %vm952_vm1, %vm952_vm1  ;;  %vm3761_vm3 = vcmask 1046528   ;;  %vm3951_vm4 = vcmask 1045504  }
  0x9e   : > { %6160 = vmatprep.subr.bf16.mxu0 %v6159_v58  ;;  %s7107_s16 = smov 96   ;;  %s7108_s25 = smov 48  }
  0x9f   : > { %s5557_s30 = sshll.u32 %s554_s15, 6  ;;  %6162 = vmatpush3.bf16.msra.mxu0 %v6159_v58  ;;  %v844_v58 = vld [vmem:[%s9147_s4 + $0x28] sm:$0xff]  ;;  %s7109_s27 = smov 80  }
  0xa0   : > { %s7390_s14 = scalar_lea.vmem %s9143_s0, %s5557_s30  ;;  %6164 = vmatprep.subr.bf16.mxu0 %v6163_v61  ;;  %s7110_s18 = smov 32  }
  0xa1   : > { %v558_v0 = vld [vmem:[%s7390_s14] sm:$0xff]  ;;  %v560_v1 = vld [vmem:[%s7390_s14 + $0x10] sm:$0xff]  ;;  %v559_v2 = vld [vmem:[%s7390_s14 + $0x8] sm:$0xff]  ;;  %s7111_s26 = smov 16   ;;  %s9200_s15 = sld [smem:[#allocation26_spill]] }
  0xa2   : > { %v567_v3 = vsel %vm566_vm0, %v558_v0, 0.0  ;;  %v573_v4 = vsel %vm566_vm0, %v560_v1, 0.0  ;;  %v561_v5 = vld [vmem:[%s7390_s14 + $0x18] sm:$0xff]  ;;  %v570_v6 = vsel %vm566_vm0, %v559_v2, 0.0  ;;  %v562_v8 = vld [vmem:[%s7390_s14 + $0x20] sm:$0xff]  ;;  %v563_v9 = vld [vmem:[%s7390_s14 + $0x28] sm:$0xff] }
  0xa3   : > { %568 = vadd.xlane.f32.xlu0 %v567_v3  ;;  %574 = vadd.xlane.f32.xlu1 %v573_v4  ;;  %v576_v7 = vsel %vm566_vm0, %v561_v5, 0.0  ;;  %v579_v10 = vsel %vm566_vm0, %v562_v8, 0.0  ;;  %v582_v11 = vsel %vm566_vm0, %v563_v9, 0.0  ;;  %v564_v12 = vld [vmem:[%s7390_s14 + $0x30] sm:$0xff]  ;;  %v565_v13 = vld [vmem:[%s7390_s14 + $0x38] sm:$0xff]  ;;  %v839_v4 = vld [vmem:[%s9147_s4] sm:$0xff] }
  0xa4   : > { %v585_v14 = vsel %vm566_vm0, %v564_v12, 0.0  ;;  %v588_v15 = vsel %vm566_vm0, %v565_v13, 0.0  ;;  %6166 = vmatpush3.bf16.msra.mxu0 %v6163_v61  ;;  %s9201_s21 = sld [smem:[#allocation23_spill]]  ;;  %s5558_s12 = sshll.u32 %s7217_s22, 10 }
  0xa7   : > { %571 = vadd.xlane.f32.xlu0 %v570_v6  ;;  %577 = vadd.xlane.f32.xlu1 %v576_v7 }
  0xaa   : > { %p9203_p11 = scmp.ne.s32.totalorder %s9201_s21, 0 }
  0xab   : > { %580 = vadd.xlane.f32.xlu0 %v579_v10  ;;  %583 = vadd.xlane.f32.xlu1 %v582_v11 }
  0xaf   : > { %586 = vadd.xlane.f32.xlu0 %v585_v14  ;;  %589 = vadd.xlane.f32.xlu1 %v588_v15 }
 0x130   : > { %v569_v16 = vpop.xlane.xlu0 %568  ;;  %v575_v17 = vpop.xlane.xlu1 %574 }
 0x131   : > { %v592_v18 = vmul.f32 0.015625, %v569_v16  ;;  %v594_v19 = vmul.f32 0.015625, %v575_v17 }
 0x133   : > { %v7408_v20 = vsub.f32 %v558_v0, %v592_v18  ;;  %v7410_v21 = vsub.f32 %v560_v1, %v594_v19  ;;  %v6167_v0 = vpack.c.bf16 %v707_v63, %v706_v62  ;;  %v708_v1 = vld [vmem:[%s9146_s3 + $0x30] sm:$0xff] }
 0x134   : > { %v572_v22 = vpop.xlane.xlu0 %571  ;;  %v578_v23 = vpop.xlane.xlu1 %577 }
 0x135   : > { %v593_v24 = vmul.f32 0.015625, %v572_v22  ;;  %v595_v25 = vmul.f32 0.015625, %v578_v23  ;;  %v608_v26 = vmul.f32 %v7408_v20, %v7408_v20  ;;  %v610_v27 = vmul.f32 %v7410_v21, %v7410_v21  ;;  %6168 = vmatprep.subr.bf16.mxu0 %v6167_v0 }
 0x136   : > { %6170 = vmatpush3.bf16.msra.mxu0 %v6167_v0 }
 0x137   : > { %v7416_v28 = vsub.f32 %v559_v2, %v593_v24  ;;  %v7418_v29 = vsub.f32 %v561_v5, %v595_v25  ;;  %v616_v30 = vsel %vm566_vm0, %v608_v26, 0.0  ;;  %v622_v33 = vsel %vm566_vm0, %v610_v27, 0.0  ;;  %v709_v2 = vld [vmem:[%s9146_s3 + $0x38] sm:$0xff]  ;;  %v840_v5 = vld [vmem:[%s9147_s4 + $0x8] sm:$0xff] }
 0x138   : > { %617 = vadd.xlane.f32.xlu0 %v616_v30  ;;  %v581_v31 = vpop.xlane.xlu0 %580  ;;  %v584_v32 = vpop.xlane.xlu1 %583  ;;  %v6171_v3 = vpack.c.bf16 %v709_v2, %v708_v1  ;;  %v6175_v6 = vpack.c.bf16 %v840_v5, %v839_v4  ;;  %v845_v2 = vld [vmem:[%s9147_s4 + $0x30] sm:$0xff] }
 0x139   : > { %v596_v34 = vmul.f32 0.015625, %v581_v31  ;;  %v597_v35 = vmul.f32 0.015625, %v584_v32  ;;  %v609_v36 = vmul.f32 %v7416_v28, %v7416_v28  ;;  %v611_v37 = vmul.f32 %v7418_v29, %v7418_v29 }
 0x13a   : > { %6172 = vmatprep.subr.bf16.mxu0 %v6171_v3 }
 0x13b   : > { %v7426_v38 = vsub.f32 %v562_v8, %v596_v34  ;;  %v7428_v39 = vsub.f32 %v563_v9, %v597_v35  ;;  %v619_v40 = vsel %vm566_vm0, %v609_v36, 0.0  ;;  %v625_v43 = vsel %vm566_vm0, %v611_v37, 0.0  ;;  %6174 = vmatpush3.bf16.msra.mxu0 %v6171_v3  ;;  %v5387_v37 = vld [vmem:[%s9145_s2] ss:$0 sm:$0xff]  ;;  %v846_v3 = vld [vmem:[%s9147_s4 + $0x38] sm:$0xff] }
 0x13c   : > { %623 = vadd.xlane.f32.xlu0 %v622_v33  ;;  %620 = vadd.xlane.f32.xlu1 %v619_v40  ;;  %v587_v41 = vpop.xlane.xlu0 %586  ;;  %v590_v42 = vpop.xlane.xlu1 %589  ;;  %v5386_v33 = vld [vmem:[#allocation3] ss:$0 sm:$0xff] }
 0x13d   : > { %v598_v44 = vmul.f32 0.015625, %v587_v41  ;;  %v599_v45 = vmul.f32 0.015625, %v590_v42  ;;  %v612_v46 = vmul.f32 %v7426_v38, %v7426_v38  ;;  %v613_v47 = vmul.f32 %v7428_v39, %v7428_v39  ;;  %6176 = vmatprep.subr.bf16.mxu0 %v6175_v6 }
 0x13f   : > { %v7436_v48 = vsub.f32 %v564_v12, %v598_v44  ;;  %v7438_v49 = vsub.f32 %v565_v13, %v599_v45  ;;  %v628_v50 = vsel %vm566_vm0, %v612_v46, 0.0  ;;  %v631_v51 = vsel %vm566_vm0, %v613_v47, 0.0  ;;  %v842_v47 = vld [vmem:[%s9147_s4 + $0x18] sm:$0xff] }
 0x140   : > { %626 = vadd.xlane.f32.xlu1 %v625_v43  ;;  %629 = vadd.xlane.f32.xlu0 %v628_v50 }
 0x141   : > { %v614_v52 = vmul.f32 %v7436_v48, %v7436_v48  ;;  %v615_v53 = vmul.f32 %v7438_v49, %v7438_v49 }
 0x143   : > { %v634_v54 = vsel %vm566_vm0, %v614_v52, 0.0  ;;  %v637_v55 = vsel %vm566_vm0, %v615_v53, 0.0 }
 0x144   : > { %632 = vadd.xlane.f32.xlu1 %v631_v51  ;;  %635 = vadd.xlane.f32.xlu0 %v634_v54 }
 0x148   : > { %638 = vadd.xlane.f32.xlu1 %v637_v55 }
 0x1c5   : > { %v618_v7 = vpop.xlane.xlu0 %617 }
 0x1c6   : > { %v640_v8 = vmul.f32 0.015625, %v618_v7  ;;  %v6187_v7 = vpack.c.bf16 %v846_v3, %v845_v2 }
 0x1c8   : > { %v648_v9 = vadd.f32 1e-05, %v640_v8 }
 0x1c9   : > { %v621_v10 = vpop.xlane.xlu1 %620  ;;  %v624_v11 = vpop.xlane.xlu0 %623 }
 0x1ca   : > { %6681 = vrsqrt.f32 %v648_v9  ;;  %v641_v12 = vmul.f32 0.015625, %v621_v10  ;;  %v642_v13 = vmul.f32 0.015625, %v624_v11 }
 0x1cc   : > { %v649_v14 = vadd.f32 1e-05, %v641_v12  ;;  %v650_v15 = vadd.f32 1e-05, %v642_v13 }
 0x1cd   : > { %v627_v16 = vpop.xlane.xlu1 %626  ;;  %v630_v17 = vpop.xlane.xlu0 %629 }
 0x1ce   : > { %6683 = vrsqrt.f32 %v649_v14  ;;  %v643_v18 = vmul.f32 0.015625, %v627_v16  ;;  %v644_v19 = vmul.f32 0.015625, %v630_v17 }
 0x1cf   : > { %6685 = vrsqrt.f32 %v650_v15 }
 0x1d0   : > { %v651_v22 = vadd.f32 1e-05, %v643_v18  ;;  %v652_v23 = vadd.f32 1e-05, %v644_v19 }
 0x1d1   : > { %v633_v24 = vpop.xlane.xlu1 %632  ;;  %v636_v25 = vpop.xlane.xlu0 %635 }
 0x1d2   : > { %6687 = vrsqrt.f32 %v651_v22  ;;  %v645_v26 = vmul.f32 0.015625, %v633_v24  ;;  %v646_v27 = vmul.f32 0.015625, %v636_v25 }
 0x1d3   : > { %6689 = vrsqrt.f32 %v652_v23 }
 0x1d4   : > { %v6682_v30 = vpop.eup %6681  ;;  %v653_v31 = vadd.f32 1e-05, %v645_v26  ;;  %v654_v32 = vadd.f32 1e-05, %v646_v27 }
 0x1d5   : > { %v639_v34 = vpop.xlane.xlu1 %638  ;;  %v664_v35 = vmul.f32 %v6682_v30, %v7408_v20  ;;  %v841_v20 = vld [vmem:[%s9147_s4 + $0x10] sm:$0xff] }
 0x1d6   : > { %6691 = vrsqrt.f32 %v653_v31  ;;  %v647_v36 = vmul.f32 0.015625, %v639_v34  ;;  %v6179_v55 = vpack.c.bf16 %v842_v47, %v841_v20 }
 0x1d7   : > { %6693 = vrsqrt.f32 %v654_v32  ;;  %v679_v40 = vmul.f32 %v5386_v33, %v664_v35 }
 0x1d8   : > { %v6684_v41 = vpop.eup %6683  ;;  %v655_v42 = vadd.f32 1e-05, %v647_v36 }
 0x1d9   : > { %v6686_v43 = vpop.eup %6685  ;;  %v694_v44 = vadd.f32 %v5387_v37, %v679_v40  ;;  %v665_v45 = vmul.f32 %v6684_v41, %v7416_v28 }
 0x1da   : > { %6695 = vrsqrt.f32 %v655_v42  ;;  %v666_v46 = vmul.f32 %v6686_v43, %v7410_v21 }
 0x1db   : > { %5831 = vmatprep.mubr.msk.f32.mxu0 %vm566_vm0, %v694_v44  ;;  %v680_v50 = vmul.f32 %v5386_v33, %v665_v45 }
 0x1dc   : > { %v6688_v51 = vpop.eup %6687  ;;  %v681_v52 = vmul.f32 %v5386_v33, %v666_v46 }
 0x1dd   : > { %v6690_v53 = vpop.eup %6689  ;;  %v695_v54 = vadd.f32 %v5387_v37, %v680_v50  ;;  %v667_v28 = vmul.f32 %v6688_v51, %v7418_v29 }
 0x1de   : > { %v696_v56 = vadd.f32 %v5387_v37, %v681_v52  ;;  %v668_v21 = vmul.f32 %v6690_v53, %v7426_v38  ;;  %v6183_v38 = vpack.c.bf16 %v844_v58, %v843_v57 }
 0x1df   : > { %5832 = vmatmul.mubr.msk.f32.vlgmr.msra.gmra.mrb[0].mxu0 %vm566_vm0, %v695_v54  ;;  %v682_v59 = vmul.f32 %v5386_v33, %v667_v28 }
 0x1e0   : > { %v6692_v60 = vpop.eup %6691  ;;  %6178 = vmatpush3.bf16.msra.mxu0 %v6175_v6  ;;  %5834 = vmatprep.mubr.msk.f32.mxu0 %vm566_vm0, %v696_v56  ;;  %v683_v61 = vmul.f32 %v5386_v33, %v668_v21 }
 0x1e1   : > { %v6694_v29 = vpop.eup %6693  ;;  %6180 = vmatprep.subr.bf16.mxu0 %v6179_v55  ;;  %v697_v62 = vadd.f32 %v5387_v37, %v682_v59  ;;  %v669_v63 = vmul.f32 %v6692_v60, %v7428_v39 }
 0x1e2   : > { %v698_v0 = vadd.f32 %v5387_v37, %v683_v61  ;;  %v670_v1 = vmul.f32 %v6694_v29, %v7436_v48 }
 0x1e3   : > { %5835 = vmatmul.mubr.msk.f32.gmra.mrb[2].mxu0 %vm566_vm0, %v697_v62  ;;  %v684_v4 = vmul.f32 %v5386_v33, %v669_v63 }
 0x1e4   : > { %v6696_v5 = vpop.eup %6695  ;;  %6182 = vmatpush3.bf16.msra.mxu0 %v6179_v55  ;;  %5837 = vmatprep.mubr.msk.f32.mxu0 %vm566_vm0, %v698_v0  ;;  %v685_v6 = vmul.f32 %v5386_v33, %v670_v1 }
 0x1e5   : > { %6184 = vmatprep.subr.bf16.mxu0 %v6183_v38  ;;  %v699_v39 = vadd.f32 %v5387_v37, %v684_v4  ;;  %v671_v48 = vmul.f32 %v6696_v5, %v7438_v49 }
 0x1e6   : > { %v700_v8 = vadd.f32 %v5387_v37, %v685_v6 }
 0x1e7   : > { %5838 = vmatmul.mubr.msk.f32.gmra.mrb[4].mxu0 %vm566_vm0, %v699_v39  ;;  %v686_v9 = vmul.f32 %v5386_v33, %v671_v48 }
 0x1e8   : > { %6186 = vmatpush3.bf16.msra.mxu0 %v6183_v38  ;;  %5840 = vmatprep.mubr.msk.f32.mxu0 %vm566_vm0, %v700_v8 }
 0x1e9   : > { %6188 = vmatprep.subr.bf16.mxu0 %v6187_v7  ;;  %v701_v10 = vadd.f32 %v5387_v37, %v686_v9 }
 0x1eb   : > { %5841 = vmatmul.mubr.msk.f32.gmra.mrb[6].mxu0 %vm566_vm0, %v701_v10 }
 0x1ec   : > { %6190 = vmatpush3.bf16.msra.mxu0 %v6187_v7  ;;  %5859 = vmatprep.mubr.msk.f32.mxu0 %vm566_vm0, %v694_v44 }
 0x1ef   : > { %5860 = vmatmul.mubr.msk.f32.vlgmr.msra.gmra.mrb[8].mxu0 %vm566_vm0, %v695_v54 }
 0x1f0   : > { %5862 = vmatprep.mubr.msk.f32.mxu0 %vm566_vm0, %v696_v56 }
 0x1f3   : > { %5863 = vmatmul.mubr.msk.f32.gmra.mrb[10].mxu0 %vm566_vm0, %v697_v62 }
 0x1f4   : > { %5865 = vmatprep.mubr.msk.f32.mxu0 %vm566_vm0, %v698_v0 }
 0x1f7   : > { %5866 = vmatmul.mubr.msk.f32.gmra.mrb[12].mxu0 %vm566_vm0, %v699_v39 }
 0x1f8   : > { %5868 = vmatprep.mubr.msk.f32.mxu0 %vm566_vm0, %v700_v8 }
 0x1fb   : > { %5869 = vmatmul.mubr.msk.f32.gmra.mrb[14].mxu0 %vm566_vm0, %v701_v10 }
 0x2b2   : > { %v7523_v49 = vpop.f32.mrb[0].mxu0 }
 0x2b3   : > { %v7525_v11 = vpop.f32.mrb[1].mxu0 }
 0x2b4   : > { %5887 = vmatprep.mubr.msk.f32.mxu0 %vm952_vm1, %v7525_v11 }
 0x2b6   : > { %v7529_v12 = vpop.f32.mrb[2].mxu0 }
 0x2b7   : > { %v7531_v13 = vpop.f32.mrb[3].mxu0 }
 0x2ba   : > { %v7533_v14 = vpop.f32.mrb[4].mxu0 }
 0x2bb   : > { %v7535_v15 = vpop.f32.mrb[5].mxu0 }
 0x2be   : > { %v7537_v16 = vpop.f32.mrb[6].mxu0 }
 0x2bf   : > { %v7539_v17 = vpop.f32.mrb[7].mxu0 }
 0x2c2   : > { %v5861_v18 = vpop.f32.mrb[8].mxu0 }
 0x2c3   : > { %v913_v19 = vpop.f32.mrb[9].mxu0 }
 0x2c4   : > { %v6191_v23 = vpack.c.bf16 %v5861_v18, %v913_v19  ;;  %v7547_v24 = vpack.i.bf16 %v5861_v18, %v913_v19 }
 0x2c6   : > { %v5864_v25 = vpop.f32.mrb[10].mxu0  ;;  %6193 = vmatprep.subr.msk.bf16.mxu0 %vm7543_vm2, %v6191_v23 }
 0x2c7   : > { %v923_v26 = vpop.f32.mrb[11].mxu0  ;;  %6196 = vmatpush3.bf16.xpose.msk.msra.mxu0 %vm7543_vm2, %v6191_v23 }
 0x2c8   : > { %v6197_v27 = vpack.c.bf16 %v5864_v25, %v923_v26  ;;  %v7553_v30 = vpack.i.bf16 %v5864_v25, %v923_v26 }
 0x2ca   : > { %v5867_v31 = vpop.f32.mrb[12].mxu0  ;;  %6199 = vmatprep.subr.msk.bf16.mxu0 %vm7543_vm2, %v6197_v27 }
 0x2cb   : > { %v933_v32 = vpop.f32.mrb[13].mxu0 }
 0x2cc   : > { %v6203_v33 = vpack.c.bf16 %v5867_v31, %v933_v32  ;;  %v7557_v34 = vpack.i.bf16 %v5867_v31, %v933_v32 }
 0x2ce   : > { %v5870_v35 = vpop.f32.mrb[14].mxu0 }
 0x2cf   : > { %v943_v36 = vpop.f32.mrb[15].mxu0  ;;  %6202 = vmatpush3.bf16.xpose.msk.msra.mxu0 %vm7543_vm2, %v6197_v27 }
 0x2d0   : > { %6205 = vmatprep.subr.msk.bf16.mxu0 %vm7543_vm2, %v6203_v33  ;;  %v6209_v37 = vpack.c.bf16 %v5870_v35, %v943_v36  ;;  %v7563_v40 = vpack.i.bf16 %v5870_v35, %v943_v36 }
 0x2d7   : > { %6208 = vmatpush3.bf16.xpose.msk.msra.mxu0 %vm7543_vm2, %v6203_v33 }
 0x2d8   : > { %6211 = vmatprep.subr.msk.bf16.mxu0 %vm7543_vm2, %v6209_v37 }
 0x2df   : > { %6214 = vmatpush3.bf16.xpose.msk.msra.mxu0 %vm7543_vm2, %v6209_v37 }
 0x2e6   : > { %5888 = vmatmul.mubr.msk.f32.vlgmr.msra.gmra.mrb[16].mxu0 %vm952_vm1, %v7523_v49 }
 0x2e7   : > { %5890 = vmatprep.mubr.msk.f32.mxu0 %vm952_vm1, %v7531_v13 }
 0x2ea   : > { %5891 = vmatmul.mubr.msk.f32.gmra.mrb[18].mxu0 %vm952_vm1, %v7529_v12 }
 0x2eb   : > { %5893 = vmatprep.mubr.msk.f32.mxu0 %vm952_vm1, %v7535_v15 }
 0x2ee   : > { %5894 = vmatmul.mubr.msk.f32.gmra.mrb[20].mxu0 %vm952_vm1, %v7533_v14 }
 0x2ef   : > { %5896 = vmatprep.mubr.msk.f32.mxu0 %vm952_vm1, %v7539_v17 }
 0x2f2   : > { %5897 = vmatmul.mubr.msk.f32.gmra.mrb[22].mxu0 %vm952_vm1, %v7537_v16 }
 0x3b9   : > { %v5889_v41 = vpop.f32.mrb[16].mxu0 }
 0x3ba   : > { %v1107_v42 = vmul.f32 0.25, %v5889_v41  ;;  %v1067_v43 = vpop.f32.mrb[17].mxu0 }
 0x3bb   : > { %v1106_v44 = vmul.f32 0.25, %v1067_v43 }
 0x3bc   : > { %v1117_v45 = vsel %vm566_vm0, %v1107_v42, -inf }
 0x3bd   : > { %1118 = vmax.xlane.f32.xlu1 %v1117_v45  ;;  %v5892_v46 = vpop.f32.mrb[18].mxu0  ;;  %v1114_v20 = vsel %vm566_vm0, %v1106_v44, -inf }
 0x3be   : > { %v1109_v47 = vmul.f32 0.25, %v5892_v46  ;;  %1115 = vmax.xlane.f32.xlu0 %v1114_v20  ;;  %v1077_v50 = vpop.f32.mrb[19].mxu0 }
 0x3bf   : > { %v1108_v51 = vmul.f32 0.25, %v1077_v50 }
 0x3c0   : > { %v1123_v52 = vsel %vm566_vm0, %v1109_v47, -inf }
 0x3c1   : > { %1124 = vmax.xlane.f32.xlu1 %v1123_v52  ;;  %v5895_v53 = vpop.f32.mrb[20].mxu0  ;;  %v1120_v54 = vsel %vm566_vm0, %v1108_v51, -inf }
 0x3c2   : > { %v1111_v55 = vmul.f32 0.25, %v5895_v53  ;;  %1121 = vmax.xlane.f32.xlu0 %v1120_v54  ;;  %v1087_v28 = vpop.f32.mrb[21].mxu0 }
 0x3c3   : > { %v1110_v56 = vmul.f32 0.25, %v1087_v28 }
 0x3c4   : > { %v1129_v21 = vsel %vm566_vm0, %v1111_v55, -inf }
 0x3c5   : > { %1130 = vmax.xlane.f32.xlu1 %v1129_v21  ;;  %v5898_v57 = vpop.f32.mrb[22].mxu0  ;;  %v1126_v58 = vsel %vm566_vm0, %v1110_v56, -inf }
 0x3c6   : > { %v7591_v59 = vmul.f32 0.25, %v5898_v57  ;;  %1127 = vmax.xlane.f32.xlu0 %v1126_v58  ;;  %v1097_v60 = vpop.f32.mrb[23].mxu0 }
 0x3c7   : > { %v7593_v61 = vmul.f32 0.25, %v1097_v60 }
 0x3c8   : > { %v1135_v29 = vsel %vm566_vm0, %v7591_v59, -inf }
 0x3c9   : > { %1136 = vmax.xlane.f32.xlu1 %v1135_v29  ;;  %v1132_v62 = vsel %vm566_vm0, %v7593_v61, -inf }
 0x3ca   : > { %1133 = vmax.xlane.f32.xlu0 %v1132_v62 }
 0x3da   : > { %6547 = vrot.lane.b32.xlu1 %v7553_v30, %s7105_s24 }
 0x3de   : > { %6552 = vrot.lane.b32.xlu1 %v7557_v34, %s7105_s24 }
 0x3e0   : > { %6542 = vrot.lane.b32.xlu0 %v7547_v24, %s7105_s24 }
 0x3e2   : > { %6557 = vrot.lane.b32.xlu1 %v7563_v40, %s7105_s24 }
 0x3e4   : > { %6562 = vrot.lane.b32.xlu0 %v7547_v24, %s7106_s29 }
 0x3e6   : > { %6567 = vrot.lane.b32.xlu1 %v7553_v30, %s7106_s29 }
 0x44a   : > { %v1119_v38 = vpop.xlane.xlu1 %1118 }
 0x44b   : > { %v1139_v63 = vsub.f32 %v1107_v42, %v1119_v38  ;;  %v1116_v0 = vpop.xlane.xlu0 %1115 }
 0x44c   : > { %v1138_v1 = vsub.f32 %v1106_v44, %v1116_v0 }
 0x44d   : > { %v1148_v2 = vmul.f32 1.442695, %v1139_v63 }
 0x44e   : > { %v1146_v3 = vmul.f32 1.442695, %v1138_v1  ;;  %v1125_v4 = vpop.xlane.xlu1 %1124 }
 0x44f   : > { %6697 = vpow2.f32 %v1148_v2  ;;  %v1141_v5 = vsub.f32 %v1109_v47, %v1125_v4  ;;  %v1122_v6 = vpop.xlane.xlu0 %1121 }
 0x450   : > { %6699 = vpow2.f32 %v1146_v3  ;;  %v1140_v39 = vsub.f32 %v1108_v51, %v1122_v6 }
 0x451   : > { %v1152_v7 = vmul.f32 1.442695, %v1141_v5 }
 0x452   : > { %v1150_v48 = vmul.f32 1.442695, %v1140_v39  ;;  %v1131_v8 = vpop.xlane.xlu1 %1130 }
 0x453   : > { %6701 = vpow2.f32 %v1152_v7  ;;  %v1143_v9 = vsub.f32 %v1111_v55, %v1131_v8  ;;  %v1128_v10 = vpop.xlane.xlu0 %1127 }
 0x454   : > { %6703 = vpow2.f32 %v1150_v48  ;;  %v1142_v18 = vsub.f32 %v1110_v56, %v1128_v10 }
 0x455   : > { %v1156_v19 = vmul.f32 1.442695, %v1143_v9 }
 0x456   : > { %v1154_v23 = vmul.f32 1.442695, %v1142_v18  ;;  %v1137_v25 = vpop.xlane.xlu1 %1136 }
 0x457   : > { %6705 = vpow2.f32 %v1156_v19  ;;  %v1134_v26 = vpop.xlane.xlu0 %1133  ;;  %v1145_v1 = vsub.f32 %v7591_v59, %v1137_v25 }
 0x458   : > { %6707 = vpow2.f32 %v1154_v23  ;;  %v1144_v3 = vsub.f32 %v7593_v61, %v1134_v26 }
 0x459   : > { %v7607_v27 = vpop.eup %6697  ;;  %v1160_v2 = vmul.f32 1.442695, %v1145_v1 }
 0x45a   : > { %v7609_v31 = vpop.eup %6699  ;;  %v6548_v32 = vpop.permute.xlu1 %6547  ;;  %v1165_v33 = vsel %vm566_vm0, %v7607_v27, 0.0  ;;  %v1158_v4 = vmul.f32 1.442695, %v1144_v3 }
 0x45b   : > { %1166 = vadd.xlane.f32.xlu1 %v1165_v33  ;;  %v6543_v35 = vpop.permute.xlu0 %6542  ;;  %v1162_v36 = vsel %vm566_vm0, %v7609_v31, 0.0  ;;  %v6550_v37 = vunpack.i.h.bf16 %v6548_v32  ;;  %v6549_v41 = vunpack.i.l.bf16 %v6548_v32  ;;  %6709 = vpow2.f32 %v1160_v2 }
 0x45c   : > { %1163 = vadd.xlane.f32.xlu0 %v1162_v36  ;;  %v6545_v42 = vunpack.i.h.bf16 %v6543_v35  ;;  %v6544_v43 = vunpack.i.l.bf16 %v6543_v35  ;;  %6711 = vpow2.f32 %v1158_v4 }
 0x45d   : > { %v7615_v44 = vpop.eup %6701  ;;  %v6219_v53 = vpack.c.bf16 %v6550_v37, %v6549_v41 }
 0x45e   : > { %v7617_v45 = vpop.eup %6703  ;;  %v6553_v46 = vpop.permute.xlu1 %6552  ;;  %v1171_v20 = vsel %vm566_vm0, %v7615_v44, 0.0  ;;  %v6215_v47 = vpack.c.bf16 %v6545_v42, %v6544_v43 }
 0x45f   : > { %1172 = vadd.xlane.f32.xlu1 %v1171_v20  ;;  %v1168_v50 = vsel %vm566_vm0, %v7617_v45, 0.0  ;;  %v6555_v51 = vunpack.i.h.bf16 %v6553_v46  ;;  %v6554_v52 = vunpack.i.l.bf16 %v6553_v46  ;;  %v6563_v60 = vpop.permute.xlu0 %6562 }
 0x460   : > { %1169 = vadd.xlane.f32.xlu0 %v1168_v50  ;;  %6216 = vmatprep.subr.bf16.mxu1 %v6215_v47  ;;  %v6565_v62 = vunpack.i.h.bf16 %v6563_v60  ;;  %v6564_v38 = vunpack.i.l.bf16 %v6563_v60 }
 0x461   : > { %v7623_v54 = vpop.eup %6705  ;;  %6218 = vmatpush3.bf16.msra.mxu1 %v6215_v47  ;;  %v6223_v58 = vpack.c.bf16 %v6555_v51, %v6554_v52 }
 0x462   : > { %v6558_v55 = vpop.permute.xlu1 %6557  ;;  %6220 = vmatprep.subr.bf16.mxu1 %v6219_v53  ;;  %v1177_v28 = vsel %vm566_vm0, %v7623_v54, 0.0  ;;  %v7627_v56 = vpop.eup %6707  ;;  %v6231_v0 = vpack.c.bf16 %v6565_v62, %v6564_v38 }
 0x463   : > { %v6560_v21 = vunpack.i.h.bf16 %v6558_v55  ;;  %v6559_v57 = vunpack.i.l.bf16 %v6558_v55  ;;  %v1174_v29 = vsel %vm566_vm0, %v7627_v56, 0.0 }
 0x464   : > { %1178 = vadd.xlane.f32.xlu0 %v1177_v28 }
 0x465   : > { %6222 = vmatpush3.bf16.msra.mxu1 %v6219_v53  ;;  %v6227_v63 = vpack.c.bf16 %v6560_v21, %v6559_v57  ;;  %v7650_v59 = vpop.eup %6709 }
 0x466   : > { %6224 = vmatprep.subr.bf16.mxu1 %v6223_v58  ;;  %v1183_v61 = vsel %vm566_vm0, %v7650_v59, 0.0  ;;  %v7655_v5 = vpop.eup %6711  ;;  %v6568_v39 = vpop.permute.xlu1 %6567 }
 0x467   : > { %v1180_v6 = vsel %vm566_vm0, %v7655_v5, 0.0  ;;  %v6570_v23 = vunpack.i.h.bf16 %v6568_v39  ;;  %v6569_v25 = vunpack.i.l.bf16 %v6568_v39 }
 0x468   : > { %1175 = vadd.xlane.f32.xlu0 %v1174_v29 }
 0x469   : > { %6226 = vmatpush3.bf16.msra.mxu1 %v6223_v58  ;;  %v6237_v37 = vpack.c.bf16 %v6570_v23, %v6569_v25 }
 0x46a   : > { %6228 = vmatprep.subr.bf16.mxu1 %v6227_v63 }
 0x46d   : > { %6230 = vmatpush3.bf16.msra.mxu1 %v6227_v63 }
 0x46e   : > { %6233 = vmatprep.subr.msk.bf16.mxu1 %vm7543_vm2, %v6231_v0 }
 0x470   : > { %6577 = vrot.lane.b32.xlu1 %v7563_v40, %s7106_s29 }
 0x474   : > { %1359 = vrot.lane.b32.xlu1 %v7523_v49, %s7106_s29 }
 0x47e   : > { %6572 = vrot.lane.b32.xlu0 %v7557_v34, %s7106_s29 }
 0x482   : > { %1357 = vrot.lane.b32.xlu0 %v7525_v11, %s7106_s29 }
 0x486   : > { %1361 = vrot.lane.b32.xlu0 %v7531_v13, %s7106_s29 }
 0x48a   : > { %1365 = vrot.lane.b32.xlu0 %v7535_v15, %s7106_s29 }
 0x48e   : > { %1369 = vrot.lane.b32.xlu0 %v7539_v17, %s7106_s29 }
 0x492   : > { %6582 = vrot.lane.b32.xlu0 %v7547_v24, %s7107_s16 }
 0x496   : > { %6592 = vrot.lane.b32.xlu0 %v7557_v34, %s7107_s16 }
 0x498   : > { %1184 = vadd.xlane.f32.xlu1 %v1183_v61 }
 0x49a   : > { %2035 = vrot.lane.b32.xlu0 %v7525_v11, %s7107_s16 }
 0x49c   : > { %1181 = vadd.xlane.f32.xlu1 %v1180_v6 }
 0x49e   : > { %2039 = vrot.lane.b32.xlu0 %v7531_v13, %s7107_s16 }
 0x4a2   : > { %2043 = vrot.lane.b32.xlu0 %v7535_v15, %s7107_s16 }
 0x4a6   : > { %2047 = vrot.lane.b32.xlu0 %v7539_v17, %s7107_s16 }
 0x4ad   : > { %1363 = vrot.lane.b32.xlu1 %v7529_v12, %s7106_s29 }
 0x4b1   : > { %1367 = vrot.lane.b32.xlu1 %v7533_v14, %s7106_s29 }
 0x4b5   : > { %1371 = vrot.lane.b32.xlu1 %v7537_v16, %s7106_s29 }
 0x4b9   : > { %6587 = vrot.lane.b32.xlu1 %v7553_v30, %s7107_s16 }
 0x4bd   : > { %6597 = vrot.lane.b32.xlu1 %v7563_v40, %s7107_s16 }
 0x4c1   : > { %2037 = vrot.lane.b32.xlu1 %v7523_v49, %s7107_s16 }
 0x4c5   : > { %2041 = vrot.lane.b32.xlu1 %v7529_v12, %s7107_s16 }
 0x4c9   : > { %2045 = vrot.lane.b32.xlu1 %v7533_v14, %s7107_s16 }
 0x4cd   : > { %2049 = vrot.lane.b32.xlu1 %v7537_v16, %s7107_s16  ;;  %s9202_s16 = sld [smem:[#allocation27_spill]] }
 0x4e8   : > { %v1167_v7 = vpop.xlane.xlu1 %1166 }
 0x4e9   : > { %6713 = vrcp.f32 %v1167_v7  ;;  %v1164_v48 = vpop.xlane.xlu0 %1163 }
 0x4ea   : > { %6715 = vrcp.f32 %v1164_v48 }
 0x4ec   : > { %v1173_v8 = vpop.xlane.xlu1 %1172 }
 0x4ed   : > { %6717 = vrcp.f32 %v1173_v8  ;;  %v1170_v9 = vpop.xlane.xlu0 %1169 }
 0x4ee   : > { %6719 = vrcp.f32 %v1170_v9 }
 0x4f0   : > { %v6578_v51 = vpop.permute.xlu1 %6577 }
 0x4f1   : > { %v1179_v10 = vpop.xlane.xlu0 %1178  ;;  %v6580_v53 = vunpack.i.h.bf16 %v6578_v51  ;;  %v6579_v55 = vunpack.i.l.bf16 %v6578_v51 }
 0x4f2   : > { %6721 = vrcp.f32 %v1179_v10 }
 0x4f3   : > { %v6714_v18 = vpop.eup %6713  ;;  %v6249_v21 = vpack.c.bf16 %v6580_v53, %v6579_v55 }
 0x4f4   : > { %v6716_v19 = vpop.eup %6715  ;;  %v1189_v33 = vmul.f32 %v6714_v18, %v7607_v27 }
 0x4f5   : > { %v1176_v26 = vpop.xlane.xlu0 %1175  ;;  %v1187_v32 = vmul.f32 %v6716_v19, %v7609_v31 }
 0x4f6   : > { %6723 = vrcp.f32 %v1176_v26 }
 0x4f7   : > { %v6718_v35 = vpop.eup %6717  ;;  %5915 = vmatprep.mubr.msk.f32.mxu1 %vm566_vm0, %v1187_v32 }
 0x4f8   : > { %v6720_v36 = vpop.eup %6719  ;;  %5916 = vmatmul.mubr.msk.f32.vlgmr.msra.gmra.mrb[0].mxu1 %vm566_vm0, %v1189_v33  ;;  %v1193_v31 = vmul.f32 %v6718_v35, %v7615_v44 }
 0x4f9   : > { %6236 = vmatpush3.bf16.xpose.msk.msra.mxu1 %vm7543_vm2, %v6231_v0  ;;  %v6573_v41 = vpop.permute.xlu0 %6572  ;;  %v1191_v42 = vmul.f32 %v6720_v36, %v7617_v45 }
 0x4fa   : > { %6239 = vmatprep.subr.msk.bf16.mxu1 %vm7543_vm2, %v6237_v37  ;;  %v6575_v27 = vunpack.i.h.bf16 %v6573_v41  ;;  %v6574_v43 = vunpack.i.l.bf16 %v6573_v41 }
 0x4fb   : > { %5918 = vmatprep.mubr.msk.f32.mxu1 %vm566_vm0, %v1191_v42 }
 0x4fc   : > { %5919 = vmatmul.mubr.msk.f32.gmra.mrb[2].mxu1 %vm566_vm0, %v1193_v31  ;;  %v6722_v20 = vpop.eup %6721  ;;  %v6243_v50 = vpack.c.bf16 %v6575_v27, %v6574_v43 }
 0x4fd   : > { %v1358_v46 = vpop.permute.xlu0 %1357  ;;  %v1197_v44 = vmul.f32 %v6722_v20, %v7623_v54  ;;  %v1360_v54 = vpop.permute.xlu1 %1359 }
 0x500   : > { %v6724_v47 = vpop.eup %6723 }
 0x501   : > { %6242 = vmatpush3.bf16.xpose.msk.msra.mxu1 %vm7543_vm2, %v6237_v37  ;;  %v1362_v45 = vpop.permute.xlu0 %1361  ;;  %v1195_v52 = vmul.f32 %v6724_v47, %v7627_v56 }
 0x502   : > { %6245 = vmatprep.subr.msk.bf16.mxu1 %vm7543_vm2, %v6243_v50 }
 0x503   : > { %5921 = vmatprep.mubr.msk.f32.mxu1 %vm566_vm0, %v1195_v52 }
 0x504   : > { %5922 = vmatmul.mubr.msk.f32.gmra.mrb[4].mxu1 %vm566_vm0, %v1197_v44 }
 0x505   : > { %v1366_v28 = vpop.permute.xlu0 %1365 }
 0x509   : > { %6248 = vmatpush3.bf16.xpose.msk.msra.mxu1 %vm7543_vm2, %v6243_v50  ;;  %v1370_v57 = vpop.permute.xlu0 %1369 }
 0x50a   : > { %6251 = vmatprep.subr.msk.bf16.mxu1 %vm7543_vm2, %v6249_v21 }
 0x50d   : > { %v6583_v56 = vpop.permute.xlu0 %6582 }
 0x50e   : > { %v6585_v58 = vunpack.i.h.bf16 %v6583_v56  ;;  %v6584_v60 = vunpack.i.l.bf16 %v6583_v56 }
 0x510   : > { %v6279_v29 = vpack.c.bf16 %v6585_v58, %v6584_v60 }
 0x511   : > { %6254 = vmatpush3.bf16.xpose.msk.msra.mxu1 %vm7543_vm2, %v6249_v21  ;;  %v6593_v8 = vpop.permute.xlu0 %6592 }
 0x512   : > { %6281 = vmatprep.subr.msk.bf16.mxu1 %vm7543_vm2, %v6279_v29 }
 0x515   : > { %v2036_v18 = vpop.permute.xlu0 %2035 }
 0x519   : > { %v2040_v32 = vpop.permute.xlu0 %2039 }
 0x51d   : > { %v2044_v35 = vpop.permute.xlu0 %2043 }
 0x521   : > { %v2048_v37 = vpop.permute.xlu0 %2047 }
 0x525   : > { %v1185_v62 = vpop.xlane.xlu1 %1184 }
 0x526   : > { %6725 = vrcp.f32 %v1185_v62 }
 0x529   : > { %v1182_v38 = vpop.xlane.xlu1 %1181 }
 0x52a   : > { %6727 = vrcp.f32 %v1182_v38 }
 0x52d   : > { %v1364_v63 = vpop.permute.xlu1 %1363 }
 0x530   : > { %v6726_v1 = vpop.eup %6725 }
 0x531   : > { %v1368_v0 = vpop.permute.xlu1 %1367  ;;  %v1201_v61 = vmul.f32 %v6726_v1, %v7650_v59  ;;  %v6595_v59 = vunpack.i.h.bf16 %v6593_v8 }
 0x534   : > { %v6728_v2 = vpop.eup %6727 }
 0x535   : > { %v1372_v3 = vpop.permute.xlu1 %1371  ;;  %v1199_v4 = vmul.f32 %v6728_v2, %v7655_v5  ;;  %v6594_v5 = vunpack.i.l.bf16 %v6593_v8 }
 0x537   : > { %5924 = vmatprep.mubr.msk.f32.mxu1 %vm566_vm0, %v1199_v4  ;;  %v6291_v9 = vpack.c.bf16 %v6595_v59, %v6594_v5 }
 0x538   : > { %5925 = vmatmul.mubr.msk.f32.gmra.mrb[6].mxu1 %vm566_vm0, %v1201_v61 }
 0x539   : > { %v6588_v6 = vpop.permute.xlu1 %6587  ;;  %5943 = vmatprep.mubr.msk.f32.mxu1 %vm952_vm1, %v1358_v46 }
 0x53a   : > { %v6590_v39 = vunpack.i.h.bf16 %v6588_v6  ;;  %v6589_v7 = vunpack.i.l.bf16 %v6588_v6 }
 0x53c   : > { %v6285_v48 = vpack.c.bf16 %v6590_v39, %v6589_v7  ;;  %5944 = vmatmul.mubr.msk.f32.vlgmr.msra.gmra.mrb[8].mxu1 %vm952_vm1, %v1360_v54 }
 0x53d   : > { %6284 = vmatpush3.bf16.xpose.msk.msra.mxu1 %vm7543_vm2, %v6279_v29  ;;  %5946 = vmatprep.mubr.msk.f32.mxu1 %vm952_vm1, %v1362_v45  ;;  %v6598_v10 = vpop.permute.xlu1 %6597 }
 0x53e   : > { %6287 = vmatprep.subr.msk.bf16.mxu1 %vm7543_vm2, %v6285_v48  ;;  %v6600_v19 = vunpack.i.h.bf16 %v6598_v10  ;;  %v6599_v23 = vunpack.i.l.bf16 %v6598_v10 }
 0x540   : > { %5947 = vmatmul.mubr.msk.f32.gmra.mrb[10].mxu1 %vm952_vm1, %v1364_v63  ;;  %v6297_v25 = vpack.c.bf16 %v6600_v19, %v6599_v23 }
 0x541   : > { %5949 = vmatprep.mubr.msk.f32.mxu1 %vm952_vm1, %v1366_v28  ;;  %v2038_v26 = vpop.permute.xlu1 %2037 }
 0x544   : > { %5950 = vmatmul.mubr.msk.f32.gmra.mrb[12].mxu1 %vm952_vm1, %v1368_v0 }
 0x545   : > { %6290 = vmatpush3.bf16.xpose.msk.msra.mxu1 %vm7543_vm2, %v6285_v48  ;;  %5952 = vmatprep.mubr.msk.f32.mxu1 %vm952_vm1, %v1370_v57  ;;  %v2042_v33 = vpop.permute.xlu1 %2041 }
 0x546   : > { %6293 = vmatprep.subr.msk.bf16.mxu1 %vm7543_vm2, %v6291_v9 }
 0x548   : > { %5953 = vmatmul.mubr.msk.f32.gmra.mrb[14].mxu1 %vm952_vm1, %v1372_v3 }
 0x549   : > { %6031 = vmatprep.mubr.msk.f32.mxu1 %vm952_vm1, %v2036_v18  ;;  %v2046_v36 = vpop.permute.xlu1 %2045 }
 0x54d   : > { %6296 = vmatpush3.bf16.xpose.msk.msra.mxu1 %vm7543_vm2, %v6291_v9  ;;  %v2050_v41 = vpop.permute.xlu1 %2049 }
 0x54e   : > { %6299 = vmatprep.subr.msk.bf16.mxu1 %vm7543_vm2, %v6297_v25 }
 0x555   : > { %6302 = vmatpush3.bf16.xpose.msk.msra.mxu1 %vm7543_vm2, %v6297_v25 }
 0x55c   : > { %6032 = vmatmul.mubr.msk.f32.vlgmr.msra.gmra.mrb[16].mxu1 %vm952_vm1, %v2038_v26 }
 0x55d   : > { %6034 = vmatprep.mubr.msk.f32.mxu1 %vm952_vm1, %v2040_v32 }
 0x560   : > { %6035 = vmatmul.mubr.msk.f32.gmra.mrb[18].mxu1 %vm952_vm1, %v2042_v33 }
 0x561   : > { %6037 = vmatprep.mubr.msk.f32.mxu1 %vm952_vm1, %v2044_v35 }
 0x564   : > { %6038 = vmatmul.mubr.msk.f32.gmra.mrb[20].mxu1 %vm952_vm1, %v2046_v36 }
 0x565   : > { %6040 = vmatprep.mubr.msk.f32.mxu1 %vm952_vm1, %v2048_v37 }
 0x568   : > { %6041 = vmatmul.mubr.msk.f32.gmra.mrb[22].mxu1 %vm952_vm1, %v2050_v41 }
 0x5cb   : > { %v7737_v42 = vpop.f32.mrb[0].mxu1 }
 0x5cc   : > { %v7739_v31 = vpop.f32.mrb[1].mxu1 }
 0x5cf   : > { %v7741_v27 = vpop.f32.mrb[2].mxu1 }
 0x5d0   : > { %v7743_v43 = vpop.f32.mrb[3].mxu1 }
 0x5d7   : > { %v7745_v46 = vpop.f32.mrb[4].mxu1 }
 0x5d8   : > { %v7747_v20 = vpop.f32.mrb[5].mxu1 }
 0x60b   : > { %v7749_v47 = vpop.f32.mrb[6].mxu1 }
 0x60c   : > { %v7751_v50 = vpop.f32.mrb[7].mxu1 }
 0x60f   : > { %v5945_v51 = vpop.f32.mrb[8].mxu1 }
 0x610   : > { %v1527_v45 = vmul.f32 0.25, %v5945_v51  ;;  %v1487_v52 = vpop.f32.mrb[9].mxu1 }
 0x611   : > { %v1526_v44 = vmul.f32 0.25, %v1487_v52 }
 0x612   : > { %v1537_v53 = vsel %vm566_vm0, %v1527_v45, -inf }
 0x613   : > { %1538 = vmax.xlane.f32.xlu1 %v1537_v53  ;;  %v5948_v55 = vpop.f32.mrb[10].mxu1  ;;  %v1534_v28 = vsel %vm566_vm0, %v1526_v44, -inf }
 0x614   : > { %v1529_v21 = vmul.f32 0.25, %v5948_v55  ;;  %1535 = vmax.xlane.f32.xlu0 %v1534_v28  ;;  %v1497_v57 = vpop.f32.mrb[11].mxu1 }
 0x615   : > { %v1528_v58 = vmul.f32 0.25, %v1497_v57 }
 0x616   : > { %v1543_v56 = vsel %vm566_vm0, %v1529_v21, -inf }
 0x617   : > { %v5951_v60 = vpop.f32.mrb[12].mxu1  ;;  %v1540_v0 = vsel %vm566_vm0, %v1528_v58, -inf }
 0x618   : > { %v1531_v29 = vmul.f32 0.25, %v5951_v60  ;;  %1544 = vmax.xlane.f32.xlu0 %v1543_v56  ;;  %v1507_v54 = vpop.f32.mrb[13].mxu1 }
 0x619   : > { %v1530_v38 = vmul.f32 0.25, %v1507_v54 }
 0x61a   : > { %v1549_v62 = vsel %vm566_vm0, %v1531_v29, -inf }
 0x61b   : > { %1550 = vmax.xlane.f32.xlu1 %v1549_v62  ;;  %v5954_v63 = vpop.f32.mrb[14].mxu1  ;;  %v1546_v61 = vsel %vm566_vm0, %v1530_v38, -inf }
 0x61c   : > { %v1533_v1 = vmul.f32 0.25, %v5954_v63  ;;  %1541 = vmax.xlane.f32.xlu0 %v1540_v0  ;;  %v1517_v2 = vpop.f32.mrb[15].mxu1 }
 0x61d   : > { %v1532_v4 = vmul.f32 0.25, %v1517_v2 }
 0x61e   : > { %v1555_v3 = vsel %vm566_vm0, %v1533_v1, -inf }
 0x61f   : > { %1556 = vmax.xlane.f32.xlu1 %v1555_v3  ;;  %v1552_v6 = vsel %vm566_vm0, %v1532_v4, -inf }
 0x620   : > { %1547 = vmax.xlane.f32.xlu0 %v1546_v61 }
 0x624   : > { %1553 = vmax.xlane.f32.xlu0 %v1552_v6 }
 0x62f   : > { %v7761_v39 = vpop.f32.mrb[16].mxu1 }
 0x630   : > { %v7763_v7 = vpop.f32.mrb[17].mxu1  ;;  %6607 = vrot.lane.b32.xlu1 %v7553_v30, %s7108_s25 }
 0x633   : > { %v7767_v48 = vpop.f32.mrb[18].mxu1 }
 0x634   : > { %v7769_v8 = vpop.f32.mrb[19].mxu1 }
 0x637   : > { %v7771_v59 = vpop.f32.mrb[20].mxu1 }
 0x638   : > { %v7773_v5 = vpop.f32.mrb[21].mxu1 }
 0x63a   : > { %6602 = vrot.lane.b32.xlu0 %v7547_v24, %s7108_s25 }
 0x63b   : > { %v7777_v9 = vpop.f32.mrb[22].mxu1 }
 0x63c   : > { %v7779_v10 = vpop.f32.mrb[23].mxu1 }
 0x6a0   : > { %v1539_v18 = vpop.xlane.xlu1 %1538 }
 0x6a1   : > { %v1559_v19 = vsub.f32 %v1527_v45, %v1539_v18  ;;  %v1536_v23 = vpop.xlane.xlu0 %1535 }
 0x6a2   : > { %v1558_v25 = vsub.f32 %v1526_v44, %v1536_v23 }
 0x6a3   : > { %v1568_v26 = vmul.f32 1.442695, %v1559_v19 }
 0x6a4   : > { %v1566_v32 = vmul.f32 1.442695, %v1558_v25 }
 0x6a5   : > { %6729 = vpow2.f32 %v1568_v26  ;;  %v1545_v33 = vpop.xlane.xlu0 %1544 }
 0x6a6   : > { %6731 = vpow2.f32 %v1566_v32  ;;  %v1561_v35 = vsub.f32 %v1529_v21, %v1545_v33 }
 0x6a8   : > { %v1572_v36 = vmul.f32 1.442695, %v1561_v35  ;;  %v1551_v37 = vpop.xlane.xlu1 %1550 }
 0x6a9   : > { %v1563_v41 = vsub.f32 %v1531_v29, %v1551_v37  ;;  %v1542_v51 = vpop.xlane.xlu0 %1541 }
 0x6aa   : > { %6733 = vpow2.f32 %v1572_v36  ;;  %v1560_v52 = vsub.f32 %v1528_v58, %v1542_v51 }
 0x6ab   : > { %v1576_v53 = vmul.f32 1.442695, %v1563_v41 }
 0x6ac   : > { %v1570_v55 = vmul.f32 1.442695, %v1560_v52  ;;  %v1557_v28 = vpop.xlane.xlu1 %1556 }
 0x6ad   : > { %6735 = vpow2.f32 %v1576_v53  ;;  %v1565_v57 = vsub.f32 %v1533_v1, %v1557_v28  ;;  %v1548_v45 = vpop.xlane.xlu0 %1547  ;;  %v7830_v53 = vmul.f32 0.25, %v7763_v7 }
 0x6ae   : > { %6737 = vpow2.f32 %v1570_v55  ;;  %v1562_v44 = vsub.f32 %v1530_v38, %v1548_v45  ;;  %v7833_v55 = vmul.f32 0.25, %v7761_v39 }
 0x6af   : > { %v7781_v56 = vpop.eup %6729  ;;  %v1580_v60 = vmul.f32 1.442695, %v1565_v57 }
 0x6b0   : > { %v7783_v54 = vpop.eup %6731  ;;  %v1574_v21 = vmul.f32 1.442695, %v1562_v44  ;;  %v1585_v29 = vsel %vm566_vm0, %v7781_v56, 0.0  ;;  %v6608_v38 = vpop.permute.xlu1 %6607 }
 0x6b1   : > { %6739 = vpow2.f32 %v1580_v60  ;;  %1586 = vadd.xlane.f32.xlu1 %v1585_v29  ;;  %v1554_v58 = vpop.xlane.xlu0 %1553  ;;  %v1582_v62 = vsel %vm566_vm0, %v7783_v54, 0.0  ;;  %v6610_v19 = vunpack.i.h.bf16 %v6608_v38  ;;  %v6609_v23 = vunpack.i.l.bf16 %v6608_v38 }
 0x6b2   : > { %6741 = vpow2.f32 %v1574_v21  ;;  %v1564_v63 = vsub.f32 %v1532_v4, %v1554_v58  ;;  %1583 = vadd.xlane.f32.xlu0 %v1582_v62 }
 0x6b3   : > { %v6259_v35 = vpack.c.bf16 %v6610_v19, %v6609_v23 }
 0x6b4   : > { %v7789_v0 = vpop.eup %6733  ;;  %v1578_v1 = vmul.f32 1.442695, %v1564_v63 }
 0x6b5   : > { %v6603_v2 = vpop.permute.xlu0 %6602  ;;  %v1591_v3 = vsel %vm566_vm0, %v7789_v0, 0.0 }
 0x6b6   : > { %6743 = vpow2.f32 %v1578_v1  ;;  %v6605_v61 = vunpack.i.h.bf16 %v6603_v2  ;;  %v6604_v6 = vunpack.i.l.bf16 %v6603_v2  ;;  %1592 = vadd.xlane.f32.xlu1 %v1591_v3 }
 0x6b7   : > { %v7793_v18 = vpop.eup %6735 }
 0x6b8   : > { %v7795_v25 = vpop.eup %6737  ;;  %v6255_v4 = vpack.c.bf16 %v6605_v61, %v6604_v6  ;;  %v1597_v26 = vsel %vm566_vm0, %v7793_v18, 0.0  ;;  %v1775_v61 = vld [vmem:[#allocation6 + $0x10] sm:$0xff]  ;;  %v1776_v6 = vld [vmem:[#allocation6 + $0x18] sm:$0xff] }
 0x6b9   : > { %v1588_v32 = vsel %vm566_vm0, %v7795_v25, 0.0 }
 0x6ba   : > { %1598 = vadd.xlane.f32.xlu1 %v1597_v26  ;;  %1589 = vadd.xlane.f32.xlu0 %v1588_v32 }
 0x6bb   : > { %v7801_v33 = vpop.eup %6739  ;;  %6256 = vmatprep.subr.bf16.mxu0 %v6255_v4 }
 0x6bc   : > { %v7803_v36 = vpop.eup %6741  ;;  %6258 = vmatpush3.bf16.msra.mxu0 %v6255_v4  ;;  %v1603_v37 = vsel %vm566_vm0, %v7801_v33, 0.0 }
 0x6bd   : > { %6260 = vmatprep.subr.bf16.mxu0 %v6259_v35  ;;  %v1594_v41 = vsel %vm566_vm0, %v7803_v36, 0.0 }
 0x6be   : > { %1604 = vadd.xlane.f32.xlu1 %v1603_v37  ;;  %1595 = vadd.xlane.f32.xlu0 %v1594_v41 }
 0x6c0   : > { %v7809_v51 = vpop.eup %6743  ;;  %6262 = vmatpush3.bf16.msra.mxu0 %v6259_v35  ;;  %v6271_v35 = vpack.c.bf16 %v1776_v6, %v1775_v61 }
 0x6c1   : > { %v1600_v52 = vsel %vm566_vm0, %v7809_v51, 0.0 }
 0x6c2   : > { %1601 = vadd.xlane.f32.xlu1 %v1600_v52 }
 0x6d3   : > { %6617 = vrot.lane.b32.xlu1 %v7563_v40, %s7108_s25 }
 0x6d4   : > { %6612 = vrot.lane.b32.xlu0 %v7557_v34, %s7108_s25  ;;  %s9093_s25 = scalar_lea.hbm %s9202_s16, %s5558_s12 }
 0x6d7   : > { %6627 = vrot.lane.b32.xlu1 %v7553_v30, %s7109_s27 }
 0x6d8   : > { %6622 = vrot.lane.b32.xlu0 %v7547_v24, %s7109_s27 }
 0x6db   : > { %6637 = vrot.lane.b32.xlu1 %v7563_v40, %s7109_s27 }
 0x6dc   : > { %6632 = vrot.lane.b32.xlu0 %v7557_v34, %s7109_s27 }
 0x6df   : > { %2594 = vrot.lane.b32.xlu1 %v7523_v49, %s7109_s27  ;;  %v7836_v49 = vmul.f32 0.25, %v7769_v8 }
 0x6e0   : > { %2592 = vrot.lane.b32.xlu0 %v7525_v11, %s7109_s27  ;;  %v2212_v11 = vsel %vm566_vm0, %v7830_v53, -inf }
 0x6e3   : > { %2598 = vrot.lane.b32.xlu1 %v7529_v12, %s7109_s27  ;;  %v7841_v12 = vmul.f32 0.25, %v7767_v48  ;;  %v7861_v48 = vmul.f32 0.25, %v7779_v10 }
 0x6e4   : > { %2596 = vrot.lane.b32.xlu0 %v7531_v13, %s7109_s27  ;;  %v7844_v13 = vmul.f32 0.25, %v7771_v59 }
 0x6e5   : > { %v2221_v39 = vsel %vm566_vm0, %v7841_v12, -inf }
 0x6e6   : > { %v2227_v7 = vsel %vm566_vm0, %v7844_v13, -inf }
 0x6e7   : > { %2602 = vrot.lane.b32.xlu1 %v7533_v14, %s7109_s27  ;;  %v2218_v14 = vsel %vm566_vm0, %v7836_v49, -inf }
 0x6e8   : > { %2600 = vrot.lane.b32.xlu0 %v7535_v15, %s7109_s27  ;;  %v2215_v15 = vsel %vm566_vm0, %v7833_v55, -inf }
 0x6eb   : > { %2606 = vrot.lane.b32.xlu1 %v7537_v16, %s7109_s27  ;;  %v7851_v16 = vmul.f32 0.25, %v7773_v5  ;;  %v2230_v5 = vsel %vm566_vm0, %v7861_v48, -inf }
 0x6ec   : > { %2604 = vrot.lane.b32.xlu0 %v7539_v17, %s7109_s27  ;;  %v7854_v17 = vmul.f32 0.25, %v7777_v9 }
 0x6ed   : > { %v2224_v8 = vsel %vm566_vm0, %v7851_v16, -inf }
 0x6ee   : > { %v2233_v59 = vsel %vm566_vm0, %v7854_v17, -inf }
 0x70b   : > { %2213 = vmax.xlane.f32.xlu0 %v2212_v11 }
 0x70f   : > { %2219 = vmax.xlane.f32.xlu0 %v2218_v14  ;;  %2216 = vmax.xlane.f32.xlu1 %v2215_v15 }
 0x713   : > { %2222 = vmax.xlane.f32.xlu0 %v2221_v39  ;;  %2228 = vmax.xlane.f32.xlu1 %v2227_v7 }
 0x717   : > { %2225 = vmax.xlane.f32.xlu0 %v2224_v8  ;;  %2234 = vmax.xlane.f32.xlu1 %v2233_v59 }
 0x71b   : > { %2231 = vmax.xlane.f32.xlu0 %v2230_v5 }
 0x728   : > { %6647 = vrot.lane.b32.xlu1 %v7553_v30, %s7110_s18 }
 0x731   : > { %6642 = vrot.lane.b32.xlu0 %v7547_v24, %s7110_s18 }
 0x73e   : > { %v1587_v9 = vpop.xlane.xlu1 %1586 }
 0x73f   : > { %v1584_v10 = vpop.xlane.xlu0 %1583 }
 0x740   : > { %6745 = vrcp.f32 %v1584_v10 }
 0x741   : > { %6747 = vrcp.f32 %v1587_v9 }
 0x743   : > { %v1593_v28 = vpop.xlane.xlu1 %1592 }
 0x747   : > { %v1599_v57 = vpop.xlane.xlu1 %1598  ;;  %v1590_v45 = vpop.xlane.xlu0 %1589 }
 0x748   : > { %6749 = vrcp.f32 %v1590_v45 }
 0x749   : > { %6751 = vrcp.f32 %v1593_v28 }
 0x74a   : > { %v6746_v44 = vpop.eup %6745 }
 0x74b   : > { %v1605_v60 = vpop.xlane.xlu1 %1604  ;;  %v1596_v21 = vpop.xlane.xlu0 %1595  ;;  %v1607_v29 = vmul.f32 %v6746_v44, %v7783_v54 }
 0x74c   : > { %6753 = vrcp.f32 %v1596_v21  ;;  %v6748_v37 = vpop.eup %6747 }
 0x74d   : > { %5971 = vmatprep.mubr.msk.f32.mxu0 %vm566_vm0, %v1607_v29  ;;  %6755 = vrcp.f32 %v1599_v57  ;;  %v1609_v39 = vmul.f32 %v6748_v37, %v7781_v56 }
 0x74f   : > { %v1602_v58 = vpop.xlane.xlu1 %1601  ;;  %v6613_v62 = vpop.permute.xlu0 %6612 }
 0x750   : > { %v6615_v63 = vunpack.i.h.bf16 %v6613_v62  ;;  %v6614_v38 = vunpack.i.l.bf16 %v6613_v62  ;;  %6757 = vrcp.f32 %v1602_v58 }
 0x751   : > { %6759 = vrcp.f32 %v1605_v60 }
 0x752   : > { %v6263_v1 = vpack.c.bf16 %v6615_v63, %v6614_v38  ;;  %v6750_v11 = vpop.eup %6749 }
 0x753   : > { %v6618_v2 = vpop.permute.xlu1 %6617  ;;  %v6623_v3 = vpop.permute.xlu0 %6622  ;;  %v1611_v5 = vmul.f32 %v6750_v11, %v7795_v25 }
 0x754   : > { %v6620_v19 = vunpack.i.h.bf16 %v6618_v2  ;;  %v6619_v23 = vunpack.i.l.bf16 %v6618_v2  ;;  %v6625_v4 = vunpack.i.h.bf16 %v6623_v3  ;;  %v6624_v26 = vunpack.i.l.bf16 %v6623_v3  ;;  %6264 = vmatprep.subr.bf16.mxu0 %v6263_v1  ;;  %v6752_v8 = vpop.eup %6751 }
 0x755   : > { %6266 = vmatpush3.bf16.msra.mxu0 %v6263_v1  ;;  %v1613_v56 = vmul.f32 %v6752_v8, %v7789_v0 }
 0x756   : > { %v6267_v54 = vpack.c.bf16 %v6620_v19, %v6619_v23  ;;  %v6323_v32 = vpack.c.bf16 %v6625_v4, %v6624_v26  ;;  %v6754_v9 = vpop.eup %6753 }
 0x757   : > { %v6628_v41 = vpop.permute.xlu1 %6627  ;;  %v6633_v52 = vpop.permute.xlu0 %6632  ;;  %v1615_v45 = vmul.f32 %v6754_v9, %v7803_v36 }
 0x758   : > { %v6630_v14 = vunpack.i.h.bf16 %v6628_v41  ;;  %v6629_v15 = vunpack.i.l.bf16 %v6628_v41  ;;  %6268 = vmatprep.subr.bf16.mxu0 %v6267_v54  ;;  %6325 = vmatprep.subr.msk.bf16.mxu1 %vm7543_vm2, %v6323_v32  ;;  %v6635_v10 = vunpack.i.h.bf16 %v6633_v52  ;;  %v6634_v28 = vunpack.i.l.bf16 %v6633_v52  ;;  %v6756_v57 = vpop.eup %6755 }
 0x759   : > { %6270 = vmatpush3.bf16.msra.mxu0 %v6267_v54  ;;  %6328 = vmatpush3.bf16.xpose.msk.msra.mxu1 %vm7543_vm2, %v6323_v32  ;;  %v1617_v21 = vmul.f32 %v6756_v57, %v7793_v18 }
 0x75a   : > { %v6329_v7 = vpack.c.bf16 %v6630_v14, %v6629_v15  ;;  %6272 = vmatprep.subr.bf16.mxu0 %v6271_v35  ;;  %v6758_v44 = vpop.eup %6757  ;;  %v6335_v25 = vpack.c.bf16 %v6635_v10, %v6634_v28 }
 0x75b   : > { %v2593_v59 = vpop.permute.xlu0 %2592  ;;  %v6638_v60 = vpop.permute.xlu1 %6637  ;;  %v1619_v29 = vmul.f32 %v6758_v44, %v7809_v51 }
 0x75c   : > { %5972 = vmatmul.mubr.msk.f32.vlgmr.msra.gmra.mrb[24].mxu0 %vm566_vm0, %v1609_v39  ;;  %6331 = vmatprep.subr.msk.bf16.mxu1 %vm7543_vm2, %v6329_v7  ;;  %v6760_v0 = vpop.eup %6759  ;;  %v6640_v58 = vunpack.i.h.bf16 %v6638_v60  ;;  %v6639_v36 = vunpack.i.l.bf16 %v6638_v60 }
 0x75d   : > { %6103 = vmatprep.mubr.msk.f32.mxu1 %vm952_vm1, %v2593_v59  ;;  %5974 = vmatprep.mubr.msk.f32.mxu0 %vm566_vm0, %v1611_v5  ;;  %v1621_v62 = vmul.f32 %v6760_v0, %v7801_v33 }
 0x75e   : > { %6274 = vmatpush3.bf16.msra.mxu0 %v6271_v35  ;;  %v6341_v63 = vpack.c.bf16 %v6640_v58, %v6639_v36 }
 0x75f   : > { %v2595_v18 = vpop.permute.xlu1 %2594  ;;  %v2597_v51 = vpop.permute.xlu0 %2596 }
 0x760   : > { %5975 = vmatmul.mubr.msk.f32.gmra.mrb[26].mxu0 %vm566_vm0, %v1613_v56  ;;  %v1356_v56 = vld [vmem:[#allocation6 + $0x8] sm:$0xff] }
 0x761   : > { %5977 = vmatprep.mubr.msk.f32.mxu0 %vm566_vm0, %v1615_v45  ;;  %6334 = vmatpush3.bf16.xpose.msk.msra.mxu1 %vm7543_vm2, %v6329_v7 }
 0x762   : > { %6337 = vmatprep.subr.msk.bf16.mxu1 %vm7543_vm2, %v6335_v25 }
 0x763   : > { %v2599_v38 = vpop.permute.xlu1 %2598  ;;  %v2601_v33 = vpop.permute.xlu0 %2600 }
 0x764   : > { %5978 = vmatmul.mubr.msk.f32.gmra.mrb[28].mxu0 %vm566_vm0, %v1617_v21 }
 0x765   : > { %5980 = vmatprep.mubr.msk.f32.mxu0 %vm566_vm0, %v1619_v29 }
 0x767   : > { %v2603_v1 = vpop.permute.xlu1 %2602  ;;  %v2605_v2 = vpop.permute.xlu0 %2604 }
 0x768   : > { %5981 = vmatmul.mubr.msk.f32.gmra.mrb[30].mxu0 %vm566_vm0, %v1621_v62 }
 0x769   : > { %6340 = vmatpush3.bf16.xpose.msk.msra.mxu1 %vm7543_vm2, %v6335_v25 }
 0x76a   : > { %6343 = vmatprep.subr.msk.bf16.mxu1 %vm7543_vm2, %v6341_v63 }
 0x76b   : > { %v2607_v3 = vpop.permute.xlu1 %2606 }
 0x771   : > { %6346 = vmatpush3.bf16.xpose.msk.msra.mxu1 %vm7543_vm2, %v6341_v63 }
 0x778   : > { %6104 = vmatmul.mubr.msk.f32.vlgmr.msra.gmra.mrb[24].mxu1 %vm952_vm1, %v2595_v18 }
 0x779   : > { %6106 = vmatprep.mubr.msk.f32.mxu1 %vm952_vm1, %v2597_v51 }
 0x77c   : > { %6107 = vmatmul.mubr.msk.f32.gmra.mrb[26].mxu1 %vm952_vm1, %v2599_v38 }
 0x77d   : > { %6109 = vmatprep.mubr.msk.f32.mxu1 %vm952_vm1, %v2601_v33 }
 0x780   : > { %6110 = vmatmul.mubr.msk.f32.gmra.mrb[28].mxu1 %vm952_vm1, %v2603_v1 }
 0x781   : > { %6112 = vmatprep.mubr.msk.f32.mxu1 %vm952_vm1, %v2605_v2 }
 0x784   : > { %6113 = vmatmul.mubr.msk.f32.gmra.mrb[30].mxu1 %vm952_vm1, %v2607_v3 }
 0x798   : > { %v2214_v22 = vpop.xlane.xlu0 %2213 }
 0x799   : > { %v2236_v61 = vsub.f32 %v7830_v53, %v2214_v22 }
 0x79b   : > { %v2244_v6 = vmul.f32 1.442695, %v2236_v61 }
 0x79c   : > { %v2217_v19 = vpop.xlane.xlu1 %2216  ;;  %v2220_v23 = vpop.xlane.xlu0 %2219 }
 0x79d   : > { %6761 = vpow2.f32 %v2244_v6  ;;  %v2237_v4 = vsub.f32 %v7833_v55, %v2217_v19  ;;  %v2238_v26 = vsub.f32 %v7836_v49, %v2220_v23 }
 0x79f   : > { %v2246_v54 = vmul.f32 1.442695, %v2237_v4  ;;  %v2248_v32 = vmul.f32 1.442695, %v2238_v26 }
 0x7a0   : > { %v2229_v35 = vpop.xlane.xlu1 %2228  ;;  %v2223_v37 = vpop.xlane.xlu0 %2222 }
 0x7a1   : > { %6763 = vpow2.f32 %v2246_v54  ;;  %v2241_v41 = vsub.f32 %v7844_v13, %v2229_v35  ;;  %v2239_v52 = vsub.f32 %v7841_v12, %v2223_v37 }
 0x7a2   : > { %6765 = vpow2.f32 %v2248_v32 }
 0x7a3   : > { %v2250_v11 = vmul.f32 1.442695, %v2239_v52  ;;  %v2254_v53 = vmul.f32 1.442695, %v2241_v41 }
 0x7a4   : > { %v2235_v14 = vpop.xlane.xlu1 %2234  ;;  %v2226_v15 = vpop.xlane.xlu0 %2225 }
 0x7a5   : > { %v2243_v39 = vsub.f32 %v7854_v17, %v2235_v14  ;;  %v2240_v55 = vsub.f32 %v7851_v16, %v2226_v15  ;;  %6767 = vpow2.f32 %v2250_v11 }
 0x7a6   : > { %6769 = vpow2.f32 %v2254_v53 }
 0x7a7   : > { %v7920_v49 = vpop.eup %6761  ;;  %v2252_v7 = vmul.f32 1.442695, %v2240_v55  ;;  %v2258_v8 = vmul.f32 1.442695, %v2243_v39 }
 0x7a8   : > { %v2232_v59 = vpop.xlane.xlu0 %2231  ;;  %v2260_v13 = vsel %vm566_vm0, %v7920_v49, 0.0  ;;  %v6648_v3 = vpop.permute.xlu1 %6647 }
 0x7a9   : > { %v2242_v12 = vsub.f32 %v7861_v48, %v2232_v59  ;;  %2261 = vadd.xlane.f32.xlu0 %v2260_v13  ;;  %6771 = vpow2.f32 %v2252_v7  ;;  %v1355_v48 = vld [vmem:[#allocation6] sm:$0xff]  ;;  %v6650_v26 = vunpack.i.h.bf16 %v6648_v3  ;;  %v6649_v54 = vunpack.i.l.bf16 %v6648_v3 }
 0x7aa   : > { %6773 = vpow2.f32 %v2258_v8  ;;  %v6275_v45 = vpack.c.bf16 %v1356_v56, %v1355_v48 }
 0x7ab   : > { %v7925_v5 = vpop.eup %6763  ;;  %v2256_v16 = vmul.f32 1.442695, %v2242_v12  ;;  %v6307_v37 = vpack.c.bf16 %v6650_v26, %v6649_v54  ;;  %v2454_v26 = vld [vmem:[#allocation6 + $0x28] sm:$0xff] }
 0x7ac   : > { %v7927_v9 = vpop.eup %6765  ;;  %v2263_v17 = vsel %vm566_vm0, %v7925_v5, 0.0  ;;  %6276 = vmatprep.subr.bf16.mxu0 %v6275_v45  ;;  %v6643_v62 = vpop.permute.xlu0 %6642 }
 0x7ad   : > { %2264 = vadd.xlane.f32.xlu1 %v2263_v17  ;;  %v2266_v10 = vsel %vm566_vm0, %v7927_v9, 0.0  ;;  %6775 = vpow2.f32 %v2256_v16  ;;  %v6645_v63 = vunpack.i.h.bf16 %v6643_v62  ;;  %v6644_v18 = vunpack.i.l.bf16 %v6643_v62 }
 0x7ae   : > { %2267 = vadd.xlane.f32.xlu0 %v2266_v10 }
 0x7af   : > { %v7933_v28 = vpop.eup %6767  ;;  %v6303_v33 = vpack.c.bf16 %v6645_v63, %v6644_v18 }
 0x7b0   : > { %v2269_v57 = vsel %vm566_vm0, %v7933_v28, 0.0  ;;  %v7937_v44 = vpop.eup %6769 }
 0x7b1   : > { %2270 = vadd.xlane.f32.xlu1 %v2269_v57  ;;  %v2275_v60 = vsel %vm566_vm0, %v7937_v44, 0.0 }
 0x7b3   : > { %v7939_v25 = vpop.eup %6771 }
 0x7b4   : > { %v2272_v21 = vsel %vm566_vm0, %v7939_v25, 0.0  ;;  %v7945_v0 = vpop.eup %6773 }
 0x7b5   : > { %2276 = vadd.xlane.f32.xlu1 %v2275_v60  ;;  %2273 = vadd.xlane.f32.xlu0 %v2272_v21  ;;  %v2281_v29 = vsel %vm566_vm0, %v7945_v0, 0.0 }
 0x7b7   : > { %v7949_v58 = vpop.eup %6775 }
 0x7b8   : > { %v2278_v36 = vsel %vm566_vm0, %v7949_v58, 0.0 }
 0x7b9   : > { %2282 = vadd.xlane.f32.xlu1 %v2281_v29 }
 0x7bd   : > { %2279 = vadd.xlane.f32.xlu1 %v2278_v36 }
 0x7cb   : > { %6652 = vrot.lane.b32.xlu0 %v7557_v34, %s7110_s18 }
 0x7ce   : > { %6657 = vrot.lane.b32.xlu1 %v7563_v40, %s7110_s18  ;;  %s7113_s18 = smov [#allocation12]  }
 0x82f   : > { %v5973_v51 = vpop.f32.mrb[24].mxu0 }
 0x830   : > { %v1736_v38 = vpop.f32.mrb[25].mxu0 }
 0x831   : > { %5987 = vmatprep.mubr.msk.f32.mxu0 %vm952_vm1, %v1736_v38 }
 0x832   : > { %5988 = vmatmul.mubr.msk.f32.vlgmr.msra.gmra.mrb[32].mxu0 %vm952_vm1, %v5973_v51 }
 0x833   : > { %6278 = vmatpush3.bf16.msra.mxu0 %v6275_v45  ;;  %v5976_v1 = vpop.f32.mrb[26].mxu0 }
 0x834   : > { %6304 = vmatprep.subr.bf16.mxu0 %v6303_v33  ;;  %v1746_v2 = vpop.f32.mrb[27].mxu0 }
 0x835   : > { %5990 = vmatprep.mubr.msk.f32.mxu0 %vm952_vm1, %v1746_v2 }
 0x836   : > { %5991 = vmatmul.mubr.msk.f32.gmra.mrb[34].mxu0 %vm952_vm1, %v5976_v1  ;;  %v2262_v6 = vpop.xlane.xlu0 %2261 }
 0x837   : > { %v5979_v22 = vpop.f32.mrb[28].mxu0  ;;  %6777 = vrcp.f32 %v2262_v6 }
 0x838   : > { %v1756_v61 = vpop.f32.mrb[29].mxu0 }
 0x839   : > { %5993 = vmatprep.mubr.msk.f32.mxu0 %vm952_vm1, %v1756_v61 }
 0x83a   : > { %v2265_v19 = vpop.xlane.xlu1 %2264  ;;  %5994 = vmatmul.mubr.msk.f32.gmra.mrb[36].mxu0 %vm952_vm1, %v5979_v22 }
 0x83b   : > { %v5982_v23 = vpop.f32.mrb[30].mxu0  ;;  %v2268_v32 = vpop.xlane.xlu0 %2267  ;;  %6779 = vrcp.f32 %v2265_v19 }
 0x83c   : > { %v1766_v4 = vpop.f32.mrb[31].mxu0  ;;  %6781 = vrcp.f32 %v2268_v32 }
 0x83d   : > { %5996 = vmatprep.mubr.msk.f32.mxu0 %vm952_vm1, %v1766_v4 }
 0x83e   : > { %5997 = vmatmul.mubr.msk.f32.gmra.mrb[38].mxu0 %vm952_vm1, %v5982_v23  ;;  %v2271_v35 = vpop.xlane.xlu1 %2270 }
 0x83f   : > { %6003 = vmatprep.mubr.msk.f32.mxu0 %vm952_vm1, %v7739_v31  ;;  %6783 = vrcp.f32 %v2271_v35 }
 0x842   : > { %6004 = vmatmul.mubr.msk.f32.vlgmr.msra.gmra.mrb[32].mxu0 %vm952_vm1, %v7737_v42  ;;  %v2277_v41 = vpop.xlane.xlu1 %2276  ;;  %v2274_v52 = vpop.xlane.xlu0 %2273 }
 0x843   : > { %6306 = vmatpush3.bf16.msra.mxu0 %v6303_v33  ;;  %6006 = vmatprep.mubr.msk.f32.mxu0 %vm952_vm1, %v7743_v43  ;;  %v6778_v42 = vpop.eup %6777  ;;  %6785 = vrcp.f32 %v2274_v52 }
 0x844   : > { %6308 = vmatprep.subr.bf16.mxu0 %v6307_v37  ;;  %v2285_v7 = vmul.f32 %v6778_v42, %v7920_v49  ;;  %6787 = vrcp.f32 %v2277_v41 }
 0x845   : > { %v6780_v17 = vpop.eup %6779 }
 0x846   : > { %6007 = vmatmul.mubr.msk.f32.gmra.mrb[34].mxu0 %vm952_vm1, %v7741_v27  ;;  %v2283_v11 = vpop.xlane.xlu1 %2282  ;;  %v6653_v53 = vpop.permute.xlu0 %6652  ;;  %v2287_v21 = vmul.f32 %v6780_v17, %v7925_v5 }
 0x847   : > { %6310 = vmatpush3.bf16.msra.mxu0 %v6307_v37  ;;  %6009 = vmatprep.mubr.msk.f32.mxu0 %vm952_vm1, %v7747_v20  ;;  %v6655_v31 = vunpack.i.h.bf16 %v6653_v53  ;;  %v6654_v14 = vunpack.i.l.bf16 %v6653_v53  ;;  %v6782_v57 = vpop.eup %6781 }
 0x848   : > { %v2289_v51 = vmul.f32 %v6782_v57, %v7927_v9 }
 0x849   : > { %v6311_v15 = vpack.c.bf16 %v6655_v31, %v6654_v14  ;;  %v6784_v36 = vpop.eup %6783 }
 0x84a   : > { %6010 = vmatmul.mubr.msk.f32.gmra.mrb[36].mxu0 %vm952_vm1, %v7745_v46  ;;  %v2280_v43 = vpop.xlane.xlu1 %2279  ;;  %v2291_v2 = vmul.f32 %v6784_v36, %v7933_v28 }
 0x84b   : > { %6012 = vmatprep.mubr.msk.f32.mxu0 %vm952_vm1, %v7751_v50  ;;  %v6105_v27 = vpop.f32.mrb[24].mxu1  ;;  %6312 = vmatprep.subr.bf16.mxu0 %v6311_v15  ;;  %6789 = vrcp.f32 %v2280_v43 }
 0x84c   : > { %v7979_v39 = vmul.f32 0.25, %v6105_v27  ;;  %v2722_v55 = vpop.f32.mrb[25].mxu1  ;;  %6314 = vmatpush3.bf16.msra.mxu0 %v6311_v15  ;;  %6791 = vrcp.f32 %v2283_v11 }
 0x84d   : > { %v7981_v20 = vmul.f32 0.25, %v2722_v55  ;;  %v6786_v38 = vpop.eup %6785 }
 0x84e   : > { %6013 = vmatmul.mubr.msk.f32.gmra.mrb[38].mxu0 %vm952_vm1, %v7749_v47  ;;  %v2772_v46 = vsel %vm566_vm0, %v7979_v39, -inf  ;;  %v6658_v8 = vpop.permute.xlu1 %6657  ;;  %v6788_v3 = vpop.eup %6787  ;;  %v2293_v61 = vmul.f32 %v6786_v38, %v7939_v25 }
 0x84f   : > { %2773 = vmax.xlane.f32.xlu1 %v2772_v46  ;;  %6059 = vmatprep.mubr.msk.f32.mxu0 %vm566_vm0, %v2285_v7  ;;  %v6108_v50 = vpop.f32.mrb[26].mxu1  ;;  %v2769_v59 = vsel %vm566_vm0, %v7981_v20, -inf  ;;  %v6660_v13 = vunpack.i.h.bf16 %v6658_v8  ;;  %v6659_v12 = vunpack.i.l.bf16 %v6658_v8  ;;  %v2295_v19 = vmul.f32 %v6788_v3, %v7937_v44  ;;  %v2453_v44 = vld [vmem:[#allocation6 + $0x20] sm:$0xff] }
 0x850   : > { %2770 = vmax.xlane.f32.xlu0 %v2769_v59  ;;  %v2732_v16 = vpop.f32.mrb[27].mxu1  ;;  %v7993_v10 = vmul.f32 0.25, %v6108_v50  ;;  %v6319_v54 = vpack.c.bf16 %v2454_v26, %v2453_v44 }
 0x851   : > { %v7991_v49 = vmul.f32 0.25, %v2732_v16  ;;  %v6315_v47 = vpack.c.bf16 %v6660_v13, %v6659_v12 }
 0x852   : > { %v2778_v18 = vsel %vm566_vm0, %v7993_v10, -inf }
 0x853   : > { %v6111_v48 = vpop.f32.mrb[28].mxu1  ;;  %v2775_v56 = vsel %vm566_vm0, %v7991_v49, -inf  ;;  %6316 = vmatprep.subr.bf16.mxu0 %v6315_v47 }
 0x854   : > { %v7997_v45 = vmul.f32 0.25, %v6111_v48  ;;  %2776 = vmax.xlane.f32.xlu0 %v2775_v56  ;;  %v2742_v60 = vpop.f32.mrb[29].mxu1  ;;  %6318 = vmatpush3.bf16.msra.mxu0 %v6315_v47 }
 0x855   : > { %v8002_v62 = vmul.f32 0.25, %v2742_v60  ;;  %v6790_v6 = vpop.eup %6789  ;;  %6320 = vmatprep.subr.bf16.mxu0 %v6319_v54 }
 0x856   : > { %v2784_v29 = vsel %vm566_vm0, %v7997_v45, -inf  ;;  %v6792_v23 = vpop.eup %6791  ;;  %v2297_v4 = vmul.f32 %v6790_v6, %v7949_v58 }
 0x857   : > { %2785 = vmax.xlane.f32.xlu1 %v2784_v29  ;;  %v6114_v63 = vpop.f32.mrb[30].mxu1  ;;  %6060 = vmatmul.mubr.msk.f32.vlgmr.msra.gmra.mrb[40].mxu0 %vm566_vm0, %v2287_v21  ;;  %v2781_v9 = vsel %vm566_vm0, %v8002_v62, -inf  ;;  %v2299_v25 = vmul.f32 %v6792_v23, %v7945_v0 }
 0x858   : > { %v8008_v33 = vmul.f32 0.25, %v6114_v63  ;;  %2779 = vmax.xlane.f32.xlu0 %v2778_v18  ;;  %v2752_v5 = vpop.f32.mrb[31].mxu1  ;;  %6062 = vmatprep.mubr.msk.f32.mxu0 %vm566_vm0, %v2289_v51 }
 0x859   : > { %v8014_v22 = vmul.f32 0.25, %v2752_v5  ;;  %6322 = vmatpush3.bf16.msra.mxu0 %v6319_v54 }
 0x85a   : > { %v2790_v1 = vsel %vm566_vm0, %v8008_v33, -inf }
 0x85b   : > { %2791 = vmax.xlane.f32.xlu1 %v2790_v1  ;;  %6063 = vmatmul.mubr.msk.f32.gmra.mrb[42].mxu0 %vm566_vm0, %v2291_v2  ;;  %v2787_v28 = vsel %vm566_vm0, %v8014_v22, -inf }
 0x85c   : > { %2782 = vmax.xlane.f32.xlu0 %v2781_v9  ;;  %6065 = vmatprep.mubr.msk.f32.mxu0 %vm566_vm0, %v2293_v61 }
 0x85f   : > { %6066 = vmatmul.mubr.msk.f32.gmra.mrb[44].mxu0 %vm566_vm0, %v2295_v19 }
 0x860   : > { %2788 = vmax.xlane.f32.xlu0 %v2787_v28  ;;  %6068 = vmatprep.mubr.msk.f32.mxu0 %vm566_vm0, %v2297_v4 }
 0x863   : > { %6069 = vmatmul.mubr.msk.f32.gmra.mrb[46].mxu0 %vm566_vm0, %v2299_v25 }
 0x86c   : > { %6667 = vrot.lane.b32.xlu1 %v7553_v30, %s7111_s26 }
 0x876   : > { %6662 = vrot.lane.b32.xlu0 %v7547_v24, %s7111_s26 }
 0x8dc   : > { %v2774_v58 = vpop.xlane.xlu1 %2773 }
 0x8dd   : > { %v2794_v32 = vsub.f32 %v7979_v39, %v2774_v58  ;;  %v2771_v35 = vpop.xlane.xlu0 %2770 }
 0x8de   : > { %v2793_v0 = vsub.f32 %v7981_v20, %v2771_v35 }
 0x8df   : > { %v2803_v37 = vmul.f32 1.442695, %v2794_v32 }
 0x8e0   : > { %v2801_v41 = vmul.f32 1.442695, %v2793_v0 }
 0x8e1   : > { %6793 = vpow2.f32 %v2803_v37  ;;  %v2777_v52 = vpop.xlane.xlu0 %2776 }
 0x8e2   : > { %6795 = vpow2.f32 %v2801_v41  ;;  %v2795_v30 = vsub.f32 %v7991_v49, %v2777_v52  ;;  %v3010_v41 = vld [vmem:[#allocation6 + $0x30] sm:$0xff]  ;;  %v3011_v52 = vld [vmem:[#allocation6 + $0x38] sm:$0xff] }
 0x8e4   : > { %v2805_v11 = vmul.f32 1.442695, %v2795_v30  ;;  %v2786_v53 = vpop.xlane.xlu1 %2785 }
 0x8e5   : > { %v2798_v31 = vsub.f32 %v7997_v45, %v2786_v53  ;;  %v2780_v24 = vpop.xlane.xlu0 %2779 }
 0x8e6   : > { %6797 = vpow2.f32 %v2805_v11  ;;  %v2796_v14 = vsub.f32 %v7993_v10, %v2780_v24 }
 0x8e7   : > { %v2811_v42 = vmul.f32 1.442695, %v2798_v31  ;;  %v6363_v31 = vpack.c.bf16 %v3011_v52, %v3010_v41  ;;  %v6880_v52 = vld [vmem:[%s7390_s14 + $0x30] sm:$0xff] }
 0x8e8   : > { %v2807_v15 = vmul.f32 1.442695, %v2796_v14  ;;  %v2792_v45 = vpop.xlane.xlu1 %2791 }
 0x8e9   : > { %6799 = vpow2.f32 %v2811_v42  ;;  %v2783_v43 = vpop.xlane.xlu0 %2782  ;;  %v2800_v60 = vsub.f32 %v8008_v33, %v2792_v45 }
 0x8ea   : > { %6801 = vpow2.f32 %v2807_v15  ;;  %v2797_v27 = vsub.f32 %v8002_v62, %v2783_v43 }
 0x8eb   : > { %v8039_v39 = vpop.eup %6793  ;;  %v2815_v21 = vmul.f32 1.442695, %v2800_v60  ;;  %v5532_v60 = vld [vmem:[#allocation8] ss:$0 sm:$0xff] }
 0x8ec   : > { %v8041_v55 = vpop.eup %6795  ;;  %v2809_v20 = vmul.f32 1.442695, %v2797_v27  ;;  %v2820_v7 = vsel %vm566_vm0, %v8039_v39, 0.0  ;;  %v6668_v63 = vpop.permute.xlu1 %6667 }
 0x8ed   : > { %2821 = vadd.xlane.f32.xlu1 %v2820_v7  ;;  %v2789_v46 = vpop.xlane.xlu0 %2788  ;;  %v2817_v8 = vsel %vm566_vm0, %v8041_v55, 0.0  ;;  %v6670_v18 = vunpack.i.h.bf16 %v6668_v63  ;;  %v6669_v51 = vunpack.i.l.bf16 %v6668_v63 }
 0x8ee   : > { %6803 = vpow2.f32 %v2809_v20  ;;  %2818 = vadd.xlane.f32.xlu0 %v2817_v8  ;;  %v2799_v29 = vsub.f32 %v8014_v22, %v2789_v46 }
 0x8ef   : > { %6805 = vpow2.f32 %v2815_v21  ;;  %v6351_v33 = vpack.c.bf16 %v6670_v18, %v6669_v51  ;;  %v6873_v21 = vld [vmem:[%s7390_s14 + $0x8] sm:$0xff] }
 0x8f0   : > { %v8047_v50 = vpop.eup %6797  ;;  %v2813_v36 = vmul.f32 1.442695, %v2799_v29 }
 0x8f1   : > { %v6663_v59 = vpop.permute.xlu0 %6662  ;;  %v2823_v13 = vsel %vm566_vm0, %v8047_v50, 0.0 }
 0x8f2   : > { %v6665_v12 = vunpack.i.h.bf16 %v6663_v59  ;;  %v6664_v16 = vunpack.i.l.bf16 %v6663_v59  ;;  %2824 = vadd.xlane.f32.xlu0 %v2823_v13  ;;  %6807 = vpow2.f32 %v2813_v36 }
 0x8f3   : > { %v8051_v49 = vpop.eup %6799 }
 0x8f4   : > { %v8053_v47 = vpop.eup %6801  ;;  %v6347_v17 = vpack.c.bf16 %v6665_v12, %v6664_v16  ;;  %v2832_v10 = vsel %vm566_vm0, %v8051_v49, 0.0 }
 0x8f5   : > { %v2826_v48 = vsel %vm566_vm0, %v8053_v47, 0.0 }
 0x8f6   : > { %2827 = vadd.xlane.f32.xlu1 %v2826_v48  ;;  %2833 = vadd.xlane.f32.xlu0 %v2832_v10 }
 0x8f7   : > { %6348 = vmatprep.subr.bf16.mxu0 %v6347_v17 }
 0x8f8   : > { %v8059_v56 = vpop.eup %6803 }
 0x8f9   : > { %v2829_v57 = vsel %vm566_vm0, %v8059_v56, 0.0  ;;  %v8069_v62 = vpop.eup %6805 }
 0x8fa   : > { %2830 = vadd.xlane.f32.xlu1 %v2829_v57 }
 0x8fc   : > { %v8073_v38 = vpop.eup %6807 }
 0x8fd   : > { %v2835_v1 = vsel %vm566_vm0, %v8073_v38, 0.0 }
 0x90b   : > { %6677 = vrot.lane.b32.xlu1 %v7563_v40, %s7111_s26  ;;  %v2838_v40 = vsel %vm566_vm0, %v8069_v62, 0.0 }
 0x90c   : > { %6672 = vrot.lane.b32.xlu0 %v7557_v34, %s7111_s26  ;;  %s9198_s26 = sld [smem:[#allocation25_spill]] }
 0x92a   : > { %v6061_v34 = vpop.f32.mrb[40].mxu0 }
 0x92b   : > { %2839 = vadd.xlane.f32.xlu0 %v2838_v40  ;;  %v2414_v5 = vpop.f32.mrb[41].mxu0 }
 0x92c   : > { %6075 = vmatprep.mubr.msk.f32.mxu0 %vm952_vm1, %v2414_v5 }
 0x92d   : > { %6076 = vmatmul.mubr.msk.f32.vlgmr.msra.gmra.mrb[32].mxu0 %vm952_vm1, %v6061_v34 }
 0x92e   : > { %6350 = vmatpush3.bf16.msra.mxu0 %v6347_v17  ;;  %v6064_v2 = vpop.f32.mrb[42].mxu0 }
 0x92f   : > { %2836 = vadd.xlane.f32.xlu1 %v2835_v1  ;;  %6352 = vmatprep.subr.bf16.mxu0 %v6351_v33  ;;  %v2424_v3 = vpop.f32.mrb[43].mxu0  ;;  %v6876_v1 = vld [vmem:[%s7390_s14 + $0x10] sm:$0xff] }
 0x930   : > { %6078 = vmatprep.mubr.msk.f32.mxu0 %vm952_vm1, %v2424_v3 }
 0x931   : > { %6079 = vmatmul.mubr.msk.f32.gmra.mrb[34].mxu0 %vm952_vm1, %v6064_v2 }
 0x932   : > { %6354 = vmatpush3.bf16.msra.mxu0 %v6351_v33  ;;  %v6067_v22 = vpop.f32.mrb[44].mxu0 }
 0x933   : > { %v2434_v9 = vpop.f32.mrb[45].mxu0 }
 0x934   : > { %6081 = vmatprep.mubr.msk.f32.mxu0 %vm952_vm1, %v2434_v9 }
 0x935   : > { %6082 = vmatmul.mubr.msk.f32.gmra.mrb[36].mxu0 %vm952_vm1, %v6067_v22 }
 0x936   : > { %v6070_v61 = vpop.f32.mrb[46].mxu0 }
 0x937   : > { %v2444_v6 = vpop.f32.mrb[47].mxu0 }
 0x938   : > { %6084 = vmatprep.mubr.msk.f32.mxu0 %vm952_vm1, %v2444_v6  ;;  %v6877_v6 = vld [vmem:[%s7390_s14 + $0x28] sm:$0xff] }
 0x939   : > { %6085 = vmatmul.mubr.msk.f32.gmra.mrb[38].mxu0 %vm952_vm1, %v6070_v61 }
 0x97a   : > { %v2822_v23 = vpop.xlane.xlu1 %2821 }
 0x97b   : > { %v2819_v19 = vpop.xlane.xlu0 %2818 }
 0x97c   : > { %6809 = vrcp.f32 %v2819_v19 }
 0x97d   : > { %6811 = vrcp.f32 %v2822_v23 }
 0x97f   : > { %v2825_v28 = vpop.xlane.xlu0 %2824 }
 0x980   : > { %6813 = vrcp.f32 %v2825_v28 }
 0x983   : > { %v2828_v4 = vpop.xlane.xlu1 %2827  ;;  %v2834_v25 = vpop.xlane.xlu0 %2833 }
 0x984   : > { %6815 = vrcp.f32 %v2828_v4  ;;  %v6878_v4 = vld [vmem:[%s7390_s14 + $0x20] sm:$0xff] }
 0x986   : > { %v6810_v44 = vpop.eup %6809 }
 0x987   : > { %v2831_v26 = vpop.xlane.xlu1 %2830  ;;  %v6673_v54 = vpop.permute.xlu0 %6672  ;;  %v2842_v58 = vmul.f32 %v6810_v44, %v8041_v55 }
 0x988   : > { %v6675_v32 = vunpack.i.h.bf16 %v6673_v54  ;;  %v6674_v35 = vunpack.i.l.bf16 %v6673_v54  ;;  %6817 = vrcp.f32 %v2831_v26  ;;  %v6812_v24 = vpop.eup %6811 }
 0x989   : > { %6131 = vmatprep.mubr.msk.f32.mxu0 %vm566_vm0, %v2842_v58  ;;  %6819 = vrcp.f32 %v2834_v25  ;;  %v2844_v42 = vmul.f32 %v6812_v24, %v8039_v39 }
 0x98a   : > { %v6355_v0 = vpack.c.bf16 %v6675_v32, %v6674_v35  ;;  %v6814_v14 = vpop.eup %6813 }
 0x98b   : > { %v6678_v37 = vpop.permute.xlu1 %6677  ;;  %v2846_v43 = vmul.f32 %v6814_v14, %v8047_v50 }
 0x98c   : > { %v6680_v30 = vunpack.i.h.bf16 %v6678_v37  ;;  %v6679_v11 = vunpack.i.l.bf16 %v6678_v37  ;;  %6356 = vmatprep.subr.bf16.mxu0 %v6355_v0 }
 0x98d   : > { %6358 = vmatpush3.bf16.msra.mxu0 %v6355_v0  ;;  %v6879_v0 = vld [vmem:[%s7390_s14 + $0x38] sm:$0xff] }
 0x98e   : > { %v6359_v53 = vpack.c.bf16 %v6680_v30, %v6679_v11  ;;  %v6816_v15 = vpop.eup %6815 }
 0x98f   : > { %v2848_v55 = vmul.f32 %v6816_v15, %v8053_v47 }
 0x990   : > { %6360 = vmatprep.subr.bf16.mxu0 %v6359_v53 }
 0x991   : > { %6362 = vmatpush3.bf16.msra.mxu0 %v6359_v53 }
 0x992   : > { %6364 = vmatprep.subr.bf16.mxu0 %v6363_v31  ;;  %v6818_v27 = vpop.eup %6817 }
 0x993   : > { %v6820_v20 = vpop.eup %6819  ;;  %v2850_v7 = vmul.f32 %v6818_v27, %v8059_v56 }
 0x994   : > { %6132 = vmatmul.mubr.msk.f32.vlgmr.msra.gmra.mrb[48].mxu0 %vm566_vm0, %v2844_v42  ;;  %v2852_v39 = vmul.f32 %v6820_v20, %v8051_v49 }
 0x995   : > { %6134 = vmatprep.mubr.msk.f32.mxu0 %vm566_vm0, %v2846_v43  ;;  %6366 = vmatpush3.bf16.msra.mxu0 %v6363_v31 }
 0x998   : > { %6135 = vmatmul.mubr.msk.f32.gmra.mrb[50].mxu0 %vm566_vm0, %v2848_v55 }
 0x999   : > { %6137 = vmatprep.mubr.msk.f32.mxu0 %vm566_vm0, %v2850_v7 }
 0x99c   : > { %6138 = vmatmul.mubr.msk.f32.gmra.mrb[52].mxu0 %vm566_vm0, %v2852_v39 }
 0x9b8   : > { %v2840_v46 = vpop.xlane.xlu0 %2839 }
 0x9b9   : > { %6821 = vrcp.f32 %v2840_v46 }
 0x9bc   : > { %v2837_v8 = vpop.xlane.xlu1 %2836 }
 0x9bd   : > { %6823 = vrcp.f32 %v2837_v8 }
 0x9c3   : > { %v6822_v50 = vpop.eup %6821 }
 0x9c4   : > { %v2856_v12 = vmul.f32 %v6822_v50, %v8069_v62  ;;  %v6874_v62 = vld [vmem:[%s7390_s14] sm:$0xff] }
 0x9c7   : > { %v6824_v59 = vpop.eup %6823 }
 0x9c8   : > { %v2854_v13 = vmul.f32 %v6824_v59, %v8073_v38  ;;  %v6875_v38 = vld [vmem:[%s7390_s14 + $0x18] sm:$0xff]  ;;  %s9199_s14 = sld [smem:[#allocation18_spill]] }
 0x9ca   : > { %6140 = vmatprep.mubr.msk.f32.mxu0 %vm566_vm0, %v2854_v13 }
 0x9cb   : > { %6141 = vmatmul.mubr.msk.f32.gmra.mrb[54].mxu0 %vm566_vm0, %v2856_v12 }
 0x9ce   : > { %s550_s19 = sand.u32 1, %s9199_s14  }
 0x9cf   : > { %s5383_s30 = sshll.u32 %s550_s19, 6  ;;  %s9102_s27 = scalar_lea.sflag [#allocation5], %s550_s19 }
 0x9d0   : > { %s9066_s23 = scalar_lea.vmem [#allocation12], %s5383_s30 }
 0x9d1   : > { %s5257_s28 = sshll.u32 %s9066_s23, 4  ;;  %s9095_s28 = int_to_ptr.vmem [resolvable:$true] %s5257_s28 }
 0x9d2   : > { %s7022_s22 = scalar_lea.vmem %s9095_s28, 1024 }
 0x9d3   : > { %p7023_p8 = scmp.ne.s32.totalorder %s9095_s28, %s7022_s22 }
 0x9d5   : > { %p7024_p13 = pnand %p7023_p8, %p9203_p11 }
 0x9d7   : > { %p7025_p1 = pneg %p7024_p13 }
 0xa67   : > { %v6133_v16 = vpop.f32.mrb[48].mxu0 }
 0xa68   : > { %v2971_v47 = vpop.f32.mrb[49].mxu0 }
 0xa69   : > { %6147 = vmatprep.mubr.msk.f32.mxu0 %vm952_vm1, %v2971_v47 }
 0xa6a   : > { %6148 = vmatmul.mubr.msk.f32.vlgmr.msra.gmra.mrb[32].mxu0 %vm952_vm1, %v6133_v16 }
 0xa6b   : > { %v6136_v49 = vpop.f32.mrb[50].mxu0 }
 0xa6c   : > { %v2981_v17 = vpop.f32.mrb[51].mxu0 }
 0xa6d   : > { %6150 = vmatprep.mubr.msk.f32.mxu0 %vm952_vm1, %v2981_v17 }
 0xa6e   : > { %6151 = vmatmul.mubr.msk.f32.gmra.mrb[34].mxu0 %vm952_vm1, %v6136_v49 }
 0xa6f   : > { %v6139_v10 = vpop.f32.mrb[52].mxu0 }
 0xa70   : > { %v2991_v48 = vpop.f32.mrb[53].mxu0 }
 0xa71   : > { %6153 = vmatprep.mubr.msk.f32.mxu0 %vm952_vm1, %v2991_v48 }
 0xa72   : > { %6154 = vmatmul.mubr.msk.f32.gmra.mrb[36].mxu0 %vm952_vm1, %v6139_v10 }
 0xa9e   : > { %v6142_v56 = vpop.f32.mrb[54].mxu0 }
 0xa9f   : > { %v3001_v57 = vpop.f32.mrb[55].mxu0 }
 0xaa0   : > { %6156 = vmatprep.mubr.msk.f32.mxu0 %vm952_vm1, %v3001_v57 }
 0xaa1   : > { %6157 = vmatmul.mubr.msk.f32.gmra.mrb[38].mxu0 %vm952_vm1, %v6142_v56 }
 0xb3d   : > { %v6149_v45 = vpop.f32.mrb[32].mxu0 }
 0xb3e   : > { %v3150_v29 = vadd.f32 %v6873_v21, %v6149_v45  ;;  %v3102_v36 = vpop.f32.mrb[33].mxu0 }
 0xb3f   : > { %v3149_v63 = vadd.f32 %v6874_v62, %v3102_v36 }
 0xb40   : > { %v8111_v18 = vadd.f32 %v5532_v60, %v3150_v29 }
 0xb41   : > { %v8113_v51 = vadd.f32 %v5532_v60, %v3149_v63  ;;  %v6152_v40 = vpop.f32.mrb[34].mxu0 }
 0xb42   : > { %v3152_v34 = vadd.f32 %v6875_v38, %v6152_v40  ;;  %v3112_v5 = vpop.f32.mrb[35].mxu0  ;;  %v3175_v33 = vsel %vm566_vm0, %v8111_v18, 0.0  ;;  %v3307_v40 = vld [vmem:[%s9152_s9 + $0x8] sm:$0xff]  ;;  %v3309_v38 = vld [vmem:[%s9152_s9 + $0x18] sm:$0xff] }
 0xb43   : > { %v3151_v2 = vadd.f32 %v6876_v1, %v3112_v5  ;;  %3176 = vadd.xlane.f32.xlu1 %v3175_v33  ;;  %v3172_v3 = vsel %vm566_vm0, %v8113_v51, 0.0  ;;  %v3306_v5 = vld [vmem:[%s9152_s9] sm:$0xff]  ;;  %v3308_v33 = vld [vmem:[%s9152_s9 + $0x10] sm:$0xff] }
 0xb44   : > { %v8121_v22 = vadd.f32 %v5532_v60, %v3152_v34  ;;  %3173 = vadd.xlane.f32.xlu0 %v3172_v3  ;;  %v6367_v34 = vpack.c.bf16 %v3309_v38, %v3307_v40  ;;  %v6369_v1 = vpack.c.bf16 %v3308_v33, %v3306_v5  ;;  %v3313_v3 = vld [vmem:[%s9152_s9 + $0x38] sm:$0xff]  ;;  %v5533_v33 = vld [vmem:[#allocation9] ss:$0 sm:$0xff] }
 0xb45   : > { %v8123_v9 = vadd.f32 %v5532_v60, %v3151_v2  ;;  %v6155_v61 = vpop.f32.mrb[36].mxu0  ;;  %v3311_v2 = vld [vmem:[%s9152_s9 + $0x28] sm:$0xff] }
 0xb46   : > { %v3154_v19 = vadd.f32 %v6877_v6, %v6155_v61  ;;  %v3122_v23 = vpop.f32.mrb[37].mxu0  ;;  %v3181_v28 = vsel %vm566_vm0, %v8121_v22, 0.0  ;;  %6368 = vmatprep.subr.bf16.mxu1 %v6367_v34  ;;  %v6371_v61 = vpack.c.bf16 %v3313_v3, %v3311_v2  ;;  %v3310_v6 = vld [vmem:[%s9152_s9 + $0x20] sm:$0xff] }
 0xb47   : > { %v3153_v25 = vadd.f32 %v6878_v4, %v3122_v23  ;;  %3182 = vadd.xlane.f32.xlu1 %v3181_v28  ;;  %v3178_v44 = vsel %vm566_vm0, %v8123_v9, 0.0  ;;  %6370 = vmatpush1.bf16.msra.mxu1 %v6369_v1  ;;  %v3315_v28 = vld [vmem:[%s9152_s9 + $0x48] sm:$0xff]  ;;  %v3317_v4 = vld [vmem:[%s9152_s9 + $0x58] sm:$0xff] }
 0xb48   : > { %v8131_v26 = vadd.f32 %v5532_v60, %v3154_v19  ;;  %3179 = vadd.xlane.f32.xlu0 %v3178_v44  ;;  %v3312_v19 = vld [vmem:[%s9152_s9 + $0x30] sm:$0xff]  ;;  %6372 = vmatprep.subr.bf16.mxu1 %v6371_v61  ;;  %v3314_v44 = vld [vmem:[%s9152_s9 + $0x40] sm:$0xff] }
 0xb49   : > { %v8133_v54 = vadd.f32 %v5532_v60, %v3153_v25  ;;  %v6373_v23 = vpack.c.bf16 %v3312_v19, %v3310_v6  ;;  %v6375_v25 = vpack.c.bf16 %v3317_v4, %v3315_v28  ;;  %v5534_v61 = vld [vmem:[#allocation11] ss:$0 sm:$0xff] }
 0xb4a   : > { %v3187_v58 = vsel %vm566_vm0, %v8131_v26, 0.0 }
 0xb4b   : > { %3188 = vadd.xlane.f32.xlu1 %v3187_v58  ;;  %v3184_v32 = vsel %vm566_vm0, %v8133_v54, 0.0  ;;  %6374 = vmatpush1.bf16.msra.mxu1 %v6373_v23  ;;  %v3316_v58 = vld [vmem:[%s9152_s9 + $0x50] sm:$0xff] }
 0xb4c   : > { %3185 = vadd.xlane.f32.xlu0 %v3184_v32  ;;  %v6377_v32 = vpack.c.bf16 %v3316_v58, %v3314_v44  ;;  %6376 = vmatprep.subr.bf16.mxu1 %v6375_v25 }
 0xb4f   : > { %6378 = vmatpush1.bf16.msra.mxu1 %v6377_v32 }
 0xb74   : > { %v6158_v35 = vpop.f32.mrb[38].mxu0 }
 0xb75   : > { %v3156_v37 = vadd.f32 %v6879_v0, %v6158_v35  ;;  %v3132_v41 = vpop.f32.mrb[39].mxu0  ;;  %v3319_v35 = vld [vmem:[%s9152_s9 + $0x68] sm:$0xff]  ;;  %v3321_v0 = vld [vmem:[%s9152_s9 + $0x78] sm:$0xff] }
 0xb76   : > { %v3155_v30 = vadd.f32 %v6880_v52, %v3132_v41  ;;  %v3318_v41 = vld [vmem:[%s9152_s9 + $0x60] sm:$0xff]  ;;  %v3320_v52 = vld [vmem:[%s9152_s9 + $0x70] sm:$0xff] }
 0xb77   : > { %v8141_v11 = vadd.f32 %v5532_v60, %v3156_v37  ;;  %v6379_v37 = vpack.c.bf16 %v3321_v0, %v3319_v35 }
 0xb78   : > { %v8143_v53 = vadd.f32 %v5532_v60, %v3155_v30  ;;  %v6381_v30 = vpack.c.bf16 %v3320_v52, %v3318_v41 }
 0xb79   : > { %v3193_v31 = vsel %vm566_vm0, %v8141_v11, 0.0  ;;  %6380 = vmatprep.subr.bf16.mxu1 %v6379_v37 }
 0xb7a   : > { %3194 = vadd.xlane.f32.xlu1 %v3193_v31  ;;  %v3190_v24 = vsel %vm566_vm0, %v8143_v53, 0.0  ;;  %6382 = vmatpush1.bf16.msra.mxu1 %v6381_v30  ;;  %v7112_v31 = vmov 0.0  }
 0xb7b   : > { %3191 = vadd.xlane.f32.xlu0 %v3190_v24  ;;  %3422 = vmatprep.mubr.f32.mxu1 %v7112_v31  ;;  %3471 = vst [vmem:[#allocation2] sm:$0xff] %v7112_v31  ;;  %3472 = vst [vmem:[#allocation2 + $0x8] sm:$0xff] %v7112_v31 }
 0xb7c   : > { %3473 = vst [vmem:[#allocation2 + $0x10] sm:$0x3] %v7112_v31  ;;  %3474 = vst [vmem:[#allocation2 + $0x18] sm:$0x3] %v7112_v31 }
 0xb7d   : > { %3475 = vst [vmem:[#allocation2 + $0x20] sm:$0xff] %v7112_v31  ;;  %3476 = vst [vmem:[#allocation2 + $0x28] sm:$0xff] %v7112_v31 }
 0xb7e   : > { %3477 = vst [vmem:[#allocation2 + $0x30] sm:$0x3] %v7112_v31  ;;  %3478 = vst [vmem:[#allocation2 + $0x38] sm:$0x3] %v7112_v31 }
 0xb7f   : > { %3479 = vst [vmem:[#allocation2 + $0x40] sm:$0xff] %v7112_v31  ;;  %3480 = vst [vmem:[#allocation2 + $0x48] sm:$0xff] %v7112_v31 }
 0xb80   : > { %3481 = vst [vmem:[#allocation2 + $0x50] sm:$0x3] %v7112_v31  ;;  %3482 = vst [vmem:[#allocation2 + $0x58] sm:$0x3] %v7112_v31 }
 0xb81   : > { %3483 = vst [vmem:[#allocation2 + $0x60] sm:$0xff] %v7112_v31  ;;  %3484 = vst [vmem:[#allocation2 + $0x68] sm:$0xff] %v7112_v31 }
 0xb82   : > { %3485 = vst [vmem:[#allocation2 + $0x70] sm:$0x3] %v7112_v31  ;;  %3486 = vst [vmem:[#allocation2 + $0x78] sm:$0x3] %v7112_v31 }
 0xb83   : > { %3487 = vst [vmem:[#allocation2 + $0x80] sm:$0xff] %v7112_v31  ;;  %3488 = vst [vmem:[#allocation2 + $0x88] sm:$0xff] %v7112_v31 }
 0xb84   : > { %3489 = vst [vmem:[#allocation2 + $0x90] sm:$0x3] %v7112_v31  ;;  %3490 = vst [vmem:[#allocation2 + $0x98] sm:$0x3] %v7112_v31 }
 0xb85   : > { %3491 = vst [vmem:[#allocation2 + $0xa0] sm:$0xff] %v7112_v31  ;;  %3492 = vst [vmem:[#allocation2 + $0xa8] sm:$0xff] %v7112_v31 }
 0xb86   : > { %3493 = vst [vmem:[#allocation2 + $0xb0] sm:$0x3] %v7112_v31  ;;  %3494 = vst [vmem:[#allocation2 + $0xb8] sm:$0x3] %v7112_v31 }
 0xb87   : > { %3495 = vst [vmem:[#allocation2 + $0xc0] sm:$0xff] %v7112_v31  ;;  %3496 = vst [vmem:[#allocation2 + $0xc8] sm:$0xff] %v7112_v31 }
 0xb88   : > { %3497 = vst [vmem:[#allocation2 + $0xd0] sm:$0x3] %v7112_v31  ;;  %3498 = vst [vmem:[#allocation2 + $0xd8] sm:$0x3] %v7112_v31 }
 0xb89   : > { %3499 = vst [vmem:[#allocation2 + $0xe0] sm:$0xff] %v7112_v31  ;;  %3500 = vst [vmem:[#allocation2 + $0xe8] sm:$0xff] %v7112_v31 }
 0xb8a   : > { %3501 = vst [vmem:[#allocation2 + $0xf0] sm:$0x3] %v7112_v31  ;;  %3502 = vst [vmem:[#allocation2 + $0xf8] sm:$0x3] %v7112_v31 }
 0xb8b   : > { %3503 = vst [vmem:[#allocation2 + $0x100] sm:$0xff] %v7112_v31  ;;  %3504 = vst [vmem:[#allocation2 + $0x108] sm:$0xff] %v7112_v31 }
 0xb8c   : > { %3505 = vst [vmem:[#allocation2 + $0x110] sm:$0x3] %v7112_v31  ;;  %3506 = vst [vmem:[#allocation2 + $0x118] sm:$0x3] %v7112_v31 }
 0xb8d   : > { %3507 = vst [vmem:[#allocation2 + $0x120] sm:$0xff] %v7112_v31  ;;  %3508 = vst [vmem:[#allocation2 + $0x128] sm:$0xff] %v7112_v31 }
 0xb8e   : > { %3509 = vst [vmem:[#allocation2 + $0x130] sm:$0x3] %v7112_v31  ;;  %3510 = vst [vmem:[#allocation2 + $0x138] sm:$0x3] %v7112_v31 }
 0xbd0   : > { %v3177_v14 = vpop.xlane.xlu1 %3176 }
 0xbd1   : > { %v3197_v42 = vmul.f32 0.015625, %v3177_v14  ;;  %v3174_v15 = vpop.xlane.xlu0 %3173 }
 0xbd2   : > { %v3196_v43 = vmul.f32 0.015625, %v3174_v15 }
 0xbd3   : > { %v8150_v27 = vsub.f32 %v8111_v18, %v3197_v42 }
 0xbd4   : > { %v8153_v55 = vsub.f32 %v8113_v51, %v3196_v43  ;;  %v3183_v20 = vpop.xlane.xlu1 %3182 }
 0xbd5   : > { %v3199_v7 = vmul.f32 0.015625, %v3183_v20  ;;  %v3180_v39 = vpop.xlane.xlu0 %3179  ;;  %v3213_v46 = vmul.f32 %v8150_v27, %v8150_v27 }
 0xbd6   : > { %v3198_v8 = vmul.f32 0.015625, %v3180_v39  ;;  %v3212_v50 = vmul.f32 %v8153_v55, %v8153_v55 }
 0xbd7   : > { %v8160_v59 = vsub.f32 %v8121_v22, %v3199_v7  ;;  %v3223_v13 = vsel %vm566_vm0, %v3213_v46, 0.0 }
 0xbd8   : > { %v8164_v12 = vsub.f32 %v8123_v9, %v3198_v8  ;;  %v3189_v16 = vpop.xlane.xlu1 %3188  ;;  %3224 = vadd.xlane.f32.xlu1 %v3223_v13  ;;  %v3220_v47 = vsel %vm566_vm0, %v3212_v50, 0.0 }
 0xbd9   : > { %v3201_v49 = vmul.f32 0.015625, %v3189_v16  ;;  %v3186_v17 = vpop.xlane.xlu0 %3185  ;;  %3221 = vadd.xlane.f32.xlu0 %v3220_v47  ;;  %v3215_v10 = vmul.f32 %v8160_v59, %v8160_v59 }
 0xbda   : > { %v3200_v48 = vmul.f32 0.015625, %v3186_v17  ;;  %v3214_v56 = vmul.f32 %v8164_v12, %v8164_v12 }
 0xbdb   : > { %v8172_v57 = vsub.f32 %v8131_v26, %v3201_v49  ;;  %v3229_v45 = vsel %vm566_vm0, %v3215_v10, 0.0 }
 0xbdc   : > { %v8176_v60 = vsub.f32 %v8133_v54, %v3200_v48  ;;  %3230 = vadd.xlane.f32.xlu1 %v3229_v45  ;;  %v3226_v21 = vsel %vm566_vm0, %v3214_v56, 0.0 }
 0xbdd   : > { %3227 = vadd.xlane.f32.xlu0 %v3226_v21  ;;  %v3217_v29 = vmul.f32 %v8172_v57, %v8172_v57 }
 0xbde   : > { %v3216_v36 = vmul.f32 %v8176_v60, %v8176_v60 }
 0xbdf   : > { %v3235_v62 = vsel %vm566_vm0, %v3217_v29, 0.0 }
 0xbe0   : > { %3236 = vadd.xlane.f32.xlu1 %v3235_v62  ;;  %v3232_v63 = vsel %vm566_vm0, %v3216_v36, 0.0 }
 0xbe1   : > { %3233 = vadd.xlane.f32.xlu0 %v3232_v63 }
 0xc07   : > { %v3195_v24 = vpop.xlane.xlu1 %3194 }
 0xc08   : > { %v3203_v14 = vmul.f32 0.015625, %v3195_v24  ;;  %v3192_v42 = vpop.xlane.xlu0 %3191 }
 0xc09   : > { %v3202_v15 = vmul.f32 0.015625, %v3192_v42 }
 0xc0a   : > { %v8275_v43 = vsub.f32 %v8141_v11, %v3203_v14 }
 0xc0b   : > { %v8278_v20 = vsub.f32 %v8143_v53, %v3202_v15 }
 0xc0c   : > { %v3219_v7 = vmul.f32 %v8275_v43, %v8275_v43 }
 0xc0d   : > { %v3218_v39 = vmul.f32 %v8278_v20, %v8278_v20 }
 0xc0e   : > { %v3241_v46 = vsel %vm566_vm0, %v3219_v7, 0.0 }
 0xc0f   : > { %3242 = vadd.xlane.f32.xlu1 %v3241_v46  ;;  %v3238_v8 = vsel %vm566_vm0, %v3218_v39, 0.0 }
 0xc10   : > { %3239 = vadd.xlane.f32.xlu0 %v3238_v8 }
 0xc65   : > { %v3225_v50 = vpop.xlane.xlu1 %3224 }
 0xc66   : > { %v3245_v13 = vmul.f32 0.015625, %v3225_v50  ;;  %v3222_v16 = vpop.xlane.xlu0 %3221 }
 0xc67   : > { %v3244_v47 = vmul.f32 0.015625, %v3222_v16 }
 0xc68   : > { %v3253_v49 = vadd.f32 1e-05, %v3245_v13 }
 0xc69   : > { %v3252_v17 = vadd.f32 1e-05, %v3244_v47  ;;  %v3231_v10 = vpop.xlane.xlu1 %3230 }
 0xc6a   : > { %6825 = vrsqrt.f32 %v3253_v49  ;;  %v3247_v48 = vmul.f32 0.015625, %v3231_v10  ;;  %v3228_v56 = vpop.xlane.xlu0 %3227 }
 0xc6b   : > { %6827 = vrsqrt.f32 %v3252_v17  ;;  %v3246_v45 = vmul.f32 0.015625, %v3228_v56  ;;  %v5099_v17 = vld [vmem:[%s9156_s13 + $0x80] sm:$0xff]  ;;  %v5102_v56 = vld [vmem:[%s9156_s13 + $0x98] sm:$0xff] }
 0xc6c   : > { %v3255_v21 = vadd.f32 1e-05, %v3247_v48  ;;  %v5101_v48 = vld [vmem:[%s9156_s13 + $0x90] sm:$0xff] }
 0xc6d   : > { %v3254_v29 = vadd.f32 1e-05, %v3246_v45  ;;  %v3237_v36 = vpop.xlane.xlu1 %3236 }
 0xc6e   : > { %v3234_v62 = vpop.xlane.xlu0 %3233  ;;  %v3249_v40 = vmul.f32 0.015625, %v3237_v36  ;;  %v5086_v36 = vld [vmem:[%s9156_s13 + $0x18] sm:$0xff] }
 0xc6f   : > { %6829 = vrsqrt.f32 %v3254_v29  ;;  %v3248_v63 = vmul.f32 0.015625, %v3234_v62  ;;  %v5085_v29 = vld [vmem:[%s9156_s13 + $0x10] sm:$0xff]  ;;  %v5103_v62 = vld [vmem:[%s9156_s13 + $0xa0] sm:$0xff] }
 0xc70   : > { %6831 = vrsqrt.f32 %v3255_v21  ;;  %v3257_v1 = vadd.f32 1e-05, %v3249_v40  ;;  %v6387_v21 = vpack.c.bf16 %v5102_v56, %v5101_v48  ;;  %v6389_v40 = vpack.c.bf16 %v5086_v36, %v5085_v29  ;;  %v3592_v56 = vld [vmem:[%s9154_s11] ss:$8 sm:$0x3] }
 0xc71   : > { %v3256_v38 = vadd.f32 1e-05, %v3248_v63  ;;  %v5104_v63 = vld [vmem:[%s9156_s13 + $0xa8] sm:$0xff]  ;;  %v3847_v36 = vld [vmem:[#allocation2 + $0x18] sm:$0x3] }
 0xc72   : > { %v3845_v29 = vld [vmem:[#allocation2 + $0x8] sm:$0xfc] }
 0xc73   : > { %6833 = vrsqrt.f32 %v3256_v38  ;;  %v6391_v38 = vpack.c.bf16 %v5104_v63, %v5103_v62 }
 0xc74   : > { %v6826_v34 = vpop.eup %6825  ;;  %6835 = vrsqrt.f32 %v3257_v1  ;;  %v5106_v1 = vld [vmem:[%s9156_s13 + $0xb8] sm:$0xff] }
 0xc75   : > { %v6828_v5 = vpop.eup %6827  ;;  %v3269_v3 = vmul.f32 %v6826_v34, %v8150_v27  ;;  %v5087_v34 = vld [vmem:[%s9156_s13 + $0x20] sm:$0xff] }
 0xc76   : > { %v3268_v2 = vmul.f32 %v6828_v5, %v8153_v55  ;;  %v5088_v5 = vld [vmem:[%s9156_s13 + $0x28] sm:$0xff] }
 0xc77   : > { %v3284_v28 = vmul.f32 %v5533_v33, %v3269_v3 }
 0xc78   : > { %v3283_v6 = vmul.f32 %v5533_v33, %v3268_v2  ;;  %v6393_v2 = vpack.c.bf16 %v5088_v5, %v5087_v34 }
 0xc79   : > { %v6830_v19 = vpop.eup %6829  ;;  %v3299_v44 = vadd.f32 %v5534_v61, %v3284_v28 }
 0xc7a   : > { %v3298_v23 = vadd.f32 %v5534_v61, %v3283_v6  ;;  %v3270_v4 = vmul.f32 %v6830_v19, %v8164_v12  ;;  %v6832_v25 = vpop.eup %6831  ;;  %v5090_v6 = vld [vmem:[%s9156_s13 + $0x38] sm:$0xff]  ;;  %v5107_v19 = vld [vmem:[%s9156_s13 + $0xc0] sm:$0xff] }
 0xc7b   : > { %v3271_v32 = vmul.f32 %v6832_v25, %v8160_v59  ;;  %v5091_v25 = vld [vmem:[%s9156_s13 + $0x40] sm:$0xff] }
 0xc7c   : > { %5535 = vmatmul.mubr.msk.f32.vlgmr.msra.gmra.mrb[32].mxu1 %vm566_vm0, %v3298_v23  ;;  %v3285_v58 = vmul.f32 %v5533_v33, %v3270_v4  ;;  %v5108_v23 = vld [vmem:[%s9156_s13 + $0xc8] sm:$0xff] }
 0xc7d   : > { %3428 = vmatprep.mubr.f32.mxu1 %v7112_v31  ;;  %v6834_v55 = vpop.eup %6833  ;;  %v3286_v35 = vmul.f32 %v5533_v33, %v3271_v32  ;;  %v6399_v4 = vpack.c.bf16 %v5108_v23, %v5107_v19  ;;  %v5110_v32 = vld [vmem:[%s9156_s13 + $0xd8] sm:$0xff] }
 0xc7e   : > { %v3300_v27 = vadd.f32 %v5534_v61, %v3285_v58  ;;  %v3272_v0 = vmul.f32 %v6834_v55, %v8176_v60  ;;  %v6836_v37 = vpop.eup %6835  ;;  %v5109_v58 = vld [vmem:[%s9156_s13 + $0xd0] sm:$0xff] }
 0xc7f   : > { %v3301_v12 = vadd.f32 %v5534_v61, %v3286_v35  ;;  %v3273_v52 = vmul.f32 %v6836_v37, %v8172_v57  ;;  %v5093_v35 = vld [vmem:[%s9156_s13 + $0x50] sm:$0xff]  ;;  %v5111_v37 = vld [vmem:[%s9156_s13 + $0xe0] sm:$0xff] }
 0xc80   : > { %5536 = vmatmul.mubr.msk.f32.gmra.mrb[34].mxu1 %vm566_vm0, %v3299_v44  ;;  %v3287_v41 = vmul.f32 %v5533_v33, %v3272_v0  ;;  %v5092_v44 = vld [vmem:[%s9156_s13 + $0x48] sm:$0xff]  ;;  %v5094_v0 = vld [vmem:[%s9156_s13 + $0x58] sm:$0xff] }
 0xc81   : > { %3434 = vmatprep.mubr.f32.mxu1 %v7112_v31  ;;  %v3288_v30 = vmul.f32 %v5533_v33, %v3273_v52  ;;  %v6401_v55 = vpack.c.bf16 %v5092_v44, %v5091_v25 }
 0xc82   : > { %v3302_v59 = vadd.f32 %v5534_v61, %v3287_v41  ;;  %v6405_v41 = vpack.c.bf16 %v5094_v0, %v5093_v35 }
 0xc83   : > { %v3303_v60 = vadd.f32 %v5534_v61, %v3288_v30  ;;  %v5096_v30 = vld [vmem:[%s9156_s13 + $0x68] sm:$0xff] }
 0xc84   : > { %5537 = vmatmul.mubr.msk.f32.gmra.mrb[36].mxu1 %vm566_vm0, %v3300_v27  ;;  %v6403_v27 = vpack.c.bf16 %v5110_v32, %v5109_v58 }
 0xc85   : > { %3440 = vmatprep.mubr.f32.mxu1 %v7112_v31 }
 0xc88   : > { %5538 = vmatmul.mubr.msk.f32.gmra.mrb[38].mxu1 %vm566_vm0, %v3301_v12  ;;  %v5112_v12 = vld [vmem:[%s9156_s13 + $0xe8] sm:$0xff] }
 0xc89   : > { %3446 = vmatprep.mubr.f32.mxu1 %v7112_v31  ;;  %v6407_v52 = vpack.c.bf16 %v5112_v12, %v5111_v37 }
 0xc8c   : > { %5539 = vmatmul.mubr.msk.f32.gmra.mrb[40].mxu1 %vm566_vm0, %v3302_v59  ;;  %v5095_v59 = vld [vmem:[%s9156_s13 + $0x60] sm:$0xff] }
 0xc8d   : > { %3452 = vmatprep.mubr.f32.mxu1 %v7112_v31 }
 0xc90   : > { %5540 = vmatmul.mubr.msk.f32.gmra.mrb[42].mxu1 %vm566_vm0, %v3303_v60  ;;  %v6409_v60 = vpack.c.bf16 %v5096_v30, %v5095_v59 }
 0xc91   : > { %3458 = vmatprep.mubr.f32.mxu1 %v7112_v31 }
 0xc9c   : > { %v3243_v24 = vpop.xlane.xlu1 %3242 }
 0xc9d   : > { %v3251_v14 = vmul.f32 0.015625, %v3243_v24  ;;  %v3240_v42 = vpop.xlane.xlu0 %3239  ;;  %v5113_v24 = vld [vmem:[%s9156_s13 + $0xf0] sm:$0xff] }
 0xc9e   : > { %v3250_v15 = vmul.f32 0.015625, %v3240_v42 }
 0xc9f   : > { %v3259_v57 = vadd.f32 1e-05, %v3251_v14  ;;  %v5114_v14 = vld [vmem:[%s9156_s13 + $0xf8] sm:$0xff] }
 0xca0   : > { %v3258_v7 = vadd.f32 1e-05, %v3250_v15  ;;  %v6411_v42 = vpack.c.bf16 %v5114_v14, %v5113_v24  ;;  %v5097_v15 = vld [vmem:[%s9156_s13 + $0x70] sm:$0xff] }
 0xca1   : > { %6837 = vrsqrt.f32 %v3259_v57  ;;  %v5098_v57 = vld [vmem:[%s9156_s13 + $0x78] sm:$0xff] }
 0xca2   : > { %6839 = vrsqrt.f32 %v3258_v7  ;;  %v6413_v7 = vpack.c.bf16 %v5098_v57, %v5097_v15 }
 0xcab   : > { %v6838_v39 = vpop.eup %6837 }
 0xcac   : > { %v6840_v46 = vpop.eup %6839  ;;  %v3275_v50 = vmul.f32 %v6838_v39, %v8275_v43  ;;  %v5083_v43 = vld [vmem:[%s9156_s13] sm:$0xff]  ;;  %v3324_v39 = vlaneseq }
 0xcad   : > { %v3274_v8 = vmul.f32 %v6840_v46, %v8278_v20  ;;  %v5100_v20 = vld [vmem:[%s9156_s13 + $0x88] sm:$0xff] }
 0xcae   : > { %v3290_v47 = vmul.f32 %v5533_v33, %v3275_v50  ;;  %v6383_v10 = vpack.c.bf16 %v5100_v20, %v5099_v17  ;;  %v3325_v46 = vshrl.u32 %v3324_v39, 7  ;;  %v3657_v17 = vld [vmem:[#allocation2 + $0x18] sm:$0x1] }
 0xcaf   : > { %v3289_v13 = vmul.f32 %v5533_v33, %v3274_v8  ;;  %v5105_v33 = vld [vmem:[%s9156_s13 + $0xb0] sm:$0xff]  ;;  %v5543_v8 = vld [vmem:[%s9154_s11 + $0x1] ss:$8 sm:$0x3] }
 0xcb0   : > { %v3305_v49 = vadd.f32 %v5534_v61, %v3290_v47  ;;  %6384 = vmatprep.subr.bf16.mxu1 %v6383_v10  ;;  %v6395_v3 = vpack.c.bf16 %v5106_v1, %v5105_v33  ;;  %v8408_v50 = vsub.s32 1, %v3325_v46  ;;  %v3656_v10 = vld [vmem:[#allocation2 + $0x10] sm:$0x1]  ;;  %v3844_v33 = vld [vmem:[#allocation2] sm:$0xfc] }
 0xcb1   : > { %v3304_v16 = vadd.f32 %v5534_v61, %v3289_v13  ;;  %v5089_v61 = vld [vmem:[%s9156_s13 + $0x30] sm:$0xff]  ;;  %v8410_v13 = vsub.s32 0, %v3325_v46 }
 0xcb2   : > { %v6397_v28 = vpack.c.bf16 %v5090_v6, %v5089_v61  ;;  %v8416_v47 = vrot.slane %v5543_v8, %v8408_v50  ;;  %v8444_v5 = vrot.slane %v3592_v56, %v8408_v50  ;;  %v3846_v1 = vld [vmem:[#allocation2 + $0x10] sm:$0x3] }
 0xcb3   : > { %5541 = vmatmul.mubr.msk.f32.gmra.mrb[44].mxu1 %vm566_vm0, %v3304_v16  ;;  %v5544_v16 = vld [vmem:[%s9154_s11 + $0x2] ss:$8 sm:$0x3]  ;;  %v8419_v20 = vrot.slane %v5543_v8, %v8410_v13  ;;  %v8449_v19 = vrot.slane %v3592_v56, %v8410_v13  ;;  %v5545_v8 = vld [vmem:[%s9154_s11 + $0x3] ss:$8 sm:$0x3] }
 0xcb4   : > { %3464 = vmatprep.mubr.f32.mxu1 %v7112_v31  ;;  %v5084_v31 = vld [vmem:[%s9156_s13 + $0x8] sm:$0xff]  ;;  %v8425_v48 = vrot.slane %v5544_v16, %v8408_v50  ;;  %v8433_v62 = vrot.slane %v5544_v16, %v8410_v13 }
 0xcb5   : > { %v6385_v45 = vpack.c.bf16 %v5084_v31, %v5083_v43  ;;  %v3654_v43 = vld [vmem:[#allocation2] sm:$0xfe]  ;;  %v3620_v59 = vmul.f32 0.0, %v8449_v19 }
 0xcb6   : > { %v3322_v31 = vld [vmem:[%s9153_s10] sm:$0x3]  ;;  %v3697_v63 = vmul.f32 %v8419_v20, %v3654_v43  ;;  %v3888_v61 = vmul.f32 %v8425_v48, %v3845_v29  ;;  %v3890_v6 = vmul.f32 %v8425_v48, %v3847_v36  ;;  %v3887_v25 = vmul.f32 %v8433_v62, %v3844_v33  ;;  %v5548_v16 = vld [vmem:[%s9154_s11 + $0x6] ss:$8 sm:$0x3] }
 0xcb7   : > { %5542 = vmatmul.mubr.msk.f32.gmra.mrb[46].mxu1 %vm566_vm0, %v3305_v49  ;;  %v3655_v49 = vld [vmem:[#allocation2 + $0x8] sm:$0xfe]  ;;  %v8441_v34 = vrot.slane %v3322_v31, %v8408_v50  ;;  %v3889_v44 = vmul.f32 %v8433_v62, %v3846_v1  ;;  %v5550_v36 = vld [vmem:[%s9154_s11 + $0x10] ss:$8 sm:$0x3] }
 0xcb8   : > { %6386 = vmatpush3.bf16.msra.mxu1 %v6385_v45  ;;  %v3698_v45 = vmul.f32 %v8416_v47, %v3655_v49  ;;  %v3955_v37 = vrot.slane %v3888_v61, 2  ;;  %v3956_v12 = vrot.slane %v3890_v6, 2  ;;  %v3952_v14 = vrot.slane %v3887_v25, 2  ;;  %v4911_v61 = vld [vmem:[%s9198_s26] sm:$0x3]  ;;  %s7026_s26 = sshll.u32 %s7113_s18, 4  ;;  %s7027_s26 = int_to_ptr.vmem [resolvable:$false] %s7026_s26 }
 0xcb9   : > { %6388 = vmatprep.subr.bf16.mxu1 %v6387_v21  ;;  %v3700_v21 = vmul.f32 %v8416_v47, %v3657_v17  ;;  %s7028_s20 = scalar_lea.vmem %s7027_s26, 2048  ;;  %p7029_p6 = scmp.lt.s32.totalorder %s9095_s28, %s7027_s26 }
 0xcba   : > { %v3957_v46 = vsel %vm3951_vm4, %v3955_v37, %v3956_v12  ;;  %v8526_v37 = vrot.slane %v4911_v61, %v8408_v50  ;;  %p7030_p9 = scmp.lt.s32.totalorder %s7028_s20, %s7022_s22 }
 0xcbc   : > { %6390 = vmatpush3.bf16.msra.mxu1 %v6389_v40  ;;  %v3699_v40 = vmul.f32 %v8419_v20, %v3656_v10  ;;  %v5549_v10 = vld [vmem:[%s9154_s11 + $0x7] ss:$8 sm:$0x3]  ;;  %p7031_p5 = por %p7030_p9, %p7029_p6 }
 0xcbd   : > { %6392 = vmatprep.subr.bf16.mxu1 %v6391_v38  ;;  %v8438_v38 = vrot.slane %v3322_v31, %v8410_v13 }
 0xcbe   : > { %p7032_p10 = pnand %p7031_p5, %p7025_p1 }
 0xcc0   : > { %6394 = vmatpush3.bf16.msra.mxu1 %v6393_v2  ;;  %v3765_v2 = vrot.slane %v3698_v45, 1 }
 0xcc1   : > { %6396 = vmatprep.subr.bf16.mxu1 %v6395_v3  ;;  %v3766_v3 = vrot.slane %v3700_v21, 1 }
 0xcc3   : > { %v3767_v0 = vsel %vm3761_vm3, %v3765_v2, %v3766_v3  ;;  %v8495_v2 = vrot.slane %v5545_v8, %v8410_v13  ;;  %v8498_v3 = vrot.slane %v5545_v8, %v8408_v50 }
 0xcc4   : > { %6398 = vmatpush3.bf16.msra.mxu1 %v6397_v28  ;;  %v3762_v28 = vrot.slane %v3697_v63, 1 }
 0xcc5   : > { %6400 = vmatprep.subr.bf16.mxu1 %v6399_v4  ;;  %v3763_v4 = vrot.slane %v3699_v40, 1 }
 0xcc7   : > { %v3764_v24 = vsel %vm3761_vm3, %v3762_v28, %v3763_v4  ;;  %v8508_v28 = vrot.slane %v5548_v16, %v8408_v50  ;;  %v8511_v4 = vrot.slane %v5549_v10, %v8410_v13 }
 0xcc8   : > { %6402 = vmatpush3.bf16.msra.mxu1 %v6401_v55  ;;  %v3621_v55 = vmul.f32 0.0, %v8444_v5  ;;  %v3826_v31 = vadd.f32 %v3764_v24, %v3620_v59 }
 0xcc9   : > { %6404 = vmatprep.subr.bf16.mxu1 %v6403_v27  ;;  %v5546_v27 = vld [vmem:[%s9154_s11 + $0x4] ss:$8 sm:$0x3] }
 0xcca   : > { %v8475_v49 = vrot.slane %v5546_v27, %v8410_v13  ;;  %v8484_v56 = vrot.slane %v5546_v27, %v8408_v50 }
 0xccc   : > { %6406 = vmatpush3.bf16.msra.mxu1 %v6405_v41 }
 0xccd   : > { %6408 = vmatprep.subr.bf16.mxu1 %v6407_v52  ;;  %v5547_v52 = vld [vmem:[%s9154_s11 + $0x5] ss:$8 sm:$0x3] }
 0xcce   : > { %v8478_v17 = vrot.slane %v5547_v52, %v8410_v13  ;;  %v8487_v45 = vrot.slane %v5547_v52, %v8408_v50 }
 0xcd0   : > { %6410 = vmatpush3.bf16.msra.mxu1 %v6409_v60 }
 0xcd1   : > { %6412 = vmatprep.subr.bf16.mxu1 %v6411_v42  ;;  %v3953_v42 = vrot.slane %v3889_v44, 2  ;;  %v8514_v44 = vrot.slane %v5549_v10, %v8408_v50 }
 0xcd3   : > { %v3954_v63 = vsel %vm3951_vm4, %v3952_v14, %v3953_v42 }
 0xcd4   : > { %6414 = vmatpush3.bf16.msra.mxu1 %v6413_v7  ;;  %v3827_v7 = vadd.f32 %v3767_v0, %v3621_v55  ;;  %v8523_v0 = vrot.slane %v4911_v61, %v8410_v13 }
 0xcd6   : > { %v4017_v1 = vadd.f32 %v3957_v46, %v3827_v7 }
 0xd4f   : > { %v3424_v23 = vpop.f32.mrb[32].mxu1 }
 0xd50   : > { %v3425_v58 = vadd.f32 %v3424_v23, %v8438_v38  ;;  %v3426_v32 = vpop.f32.mrb[33].mxu1  ;;  %v8505_v23 = vrot.slane %v5548_v16, %v8410_v13 }
 0xd51   : > { %v3427_v35 = vadd.f32 %v3426_v32, %v8441_v34  ;;  %v4016_v32 = vadd.f32 %v3954_v63, %v3826_v31 }
 0xd52   : > { %v3527_v41 = vrot.slane %v3425_v58, 7  ;;  %v8517_v58 = vrot.slane %v5550_v36, %v8410_v13 }
 0xd53   : > { %v3528_v30 = vrot.slane %v3427_v35, 7  ;;  %v3430_v60 = vpop.f32.mrb[34].mxu1  ;;  %v8520_v35 = vrot.slane %v5550_v36, %v8408_v50 }
 0xd54   : > { %3560 = vst [vmem:[#allocation2 + $0x20] sm:$0xfe] %v3527_v41  ;;  %3562 = vst [vmem:[#allocation2 + $0x30] sm:$0x1] %v3527_v41  ;;  %v3431_v15 = vadd.f32 %v3430_v60, %v8438_v38  ;;  %v3432_v57 = vpop.f32.mrb[35].mxu1 }
 0xd55   : > { %3561 = vst [vmem:[#allocation2 + $0x28] sm:$0xfe] %v3528_v30  ;;  %3563 = vst [vmem:[#allocation2 + $0x38] sm:$0x1] %v3528_v30  ;;  %v3433_v39 = vadd.f32 %v3432_v57, %v8441_v34 }
 0xd56   : > { %v3529_v43 = vrot.slane %v3431_v15, 7 }
 0xd57   : > { %v3530_v21 = vrot.slane %v3433_v39, 7  ;;  %v3436_v29 = vpop.f32.mrb[36].mxu1 }
 0xd58   : > { %3564 = vst [vmem:[#allocation2 + $0x40] sm:$0xfe] %v3529_v43  ;;  %3566 = vst [vmem:[#allocation2 + $0x50] sm:$0x1] %v3529_v43  ;;  %v3437_v40 = vadd.f32 %v3436_v29, %v8438_v38  ;;  %v3438_v33 = vpop.f32.mrb[37].mxu1 }
 0xd59   : > { %3565 = vst [vmem:[#allocation2 + $0x48] sm:$0xfe] %v3530_v21  ;;  %3567 = vst [vmem:[#allocation2 + $0x58] sm:$0x1] %v3530_v21  ;;  %v3439_v6 = vadd.f32 %v3438_v33, %v8441_v34 }
 0xd5a   : > { %v3531_v25 = vrot.slane %v3437_v40, 7 }
 0xd5b   : > { %v3532_v55 = vrot.slane %v3439_v6, 7  ;;  %v3442_v27 = vpop.f32.mrb[38].mxu1  ;;  %v4034_v12 = vld [vmem:[#allocation2 + $0x20] sm:$0xff]  ;;  %v4097_v8 = vld [vmem:[#allocation2 + $0x30] sm:$0x1] }
 0xd5c   : > { %v4095_v41 = vld [vmem:[#allocation2 + $0x20] sm:$0xfe]  ;;  %3568 = vst [vmem:[#allocation2 + $0x60] sm:$0xfe] %v3531_v25  ;;  %3570 = vst [vmem:[#allocation2 + $0x70] sm:$0x1] %v3531_v25  ;;  %v3443_v52 = vadd.f32 %v3442_v27, %v8438_v38  ;;  %v4061_v14 = vmul.f32 %v8495_v2, %v4034_v12  ;;  %v8536_v13 = vmul.f32 %v4034_v12, %v8449_v19 }
 0xd5d   : > { %v3444_v59 = vpop.f32.mrb[39].mxu1  ;;  %v8529_v30 = vld [vmem:[#allocation2 + $0x28] sm:$0xff]  ;;  %v4098_v24 = vld [vmem:[#allocation2 + $0x38] sm:$0x1]  ;;  %v8533_v42 = vmul.f32 %v8475_v49, %v4095_v41  ;;  %3569 = vst [vmem:[#allocation2 + $0x68] sm:$0xfe] %v3532_v55  ;;  %v4140_v12 = vmul.f32 %v8475_v49, %v4097_v8 }
 0xd5e   : > { %v4096_v60 = vld [vmem:[#allocation2 + $0x28] sm:$0xfe]  ;;  %3571 = vst [vmem:[#allocation2 + $0x78] sm:$0x1] %v3532_v55  ;;  %v3445_v50 = vadd.f32 %v3444_v59, %v8441_v34  ;;  %v4062_v15 = vmul.f32 %v8498_v3, %v8529_v30  ;;  %v4141_v7 = vmul.f32 %v8484_v56, %v4098_v24  ;;  %v4287_v46 = vld [vmem:[#allocation2 + $0x38] sm:$0x3]  ;;  %v8545_v31 = vadd.f32 %v4061_v14, %v4016_v32 }
 0xd5f   : > { %v4139_v57 = vmul.f32 %v8484_v56, %v4096_v60  ;;  %v4285_v39 = vld [vmem:[#allocation2 + $0x28] sm:$0xfc]  ;;  %v3533_v16 = vrot.slane %v3443_v52, 7  ;;  %v4330_v10 = vmul.f32 %v8487_v45, %v4287_v46  ;;  %v3448_v29 = vpop.f32.mrb[40].mxu1 }
 0xd60   : > { %v4328_v43 = vmul.f32 %v8487_v45, %v4285_v39  ;;  %v3534_v21 = vrot.slane %v3445_v50, 7  ;;  %v4078_v36 = vadd.f32 %v4062_v15, %v4017_v1  ;;  %v4206_v40 = vrot.slane %v4141_v7, 1  ;;  %v3450_v61 = vpop.f32.mrb[41].mxu1  ;;  %v8548_v55 = vld [vmem:[#allocation2 + $0x48] sm:$0xff]  ;;  %v4538_v52 = vld [vmem:[#allocation2 + $0x58] sm:$0x1] }
 0xd61   : > { %v4205_v63 = vrot.slane %v4139_v57, 1  ;;  %3572 = vst [vmem:[#allocation2 + $0x80] sm:$0xfe] %v3533_v16  ;;  %3574 = vst [vmem:[#allocation2 + $0x90] sm:$0x1] %v3533_v16  ;;  %v3449_v33 = vadd.f32 %v3448_v29, %v8438_v38  ;;  %v4395_v25 = vrot.slane %v4330_v10, 2  ;;  %v3451_v32 = vadd.f32 %v3450_v61, %v8441_v34 }
 0xd62   : > { %v4394_v6 = vrot.slane %v4328_v43, 2  ;;  %v4536_v27 = vld [vmem:[#allocation2 + $0x48] sm:$0xfe]  ;;  %3573 = vst [vmem:[#allocation2 + $0x88] sm:$0xfe] %v3534_v21  ;;  %v4502_v41 = vmul.f32 %v8508_v28, %v8548_v55  ;;  %v4581_v57 = vmul.f32 %v8514_v44, %v4538_v52 }
 0xd63   : > { %3575 = vst [vmem:[#allocation2 + $0x98] sm:$0x1] %v3534_v21  ;;  %v4207_v1 = vsel %vm3761_vm3, %v4205_v63, %v4206_v40  ;;  %v4579_v59 = vmul.f32 %v8514_v44, %v4536_v27  ;;  %v4725_v60 = vld [vmem:[#allocation2 + $0x48] sm:$0xfc]  ;;  %v4727_v24 = vld [vmem:[#allocation2 + $0x58] sm:$0x3] }
 0xd64   : > { %v3535_v14 = vrot.slane %v3449_v33, 7  ;;  %v4267_v50 = vadd.f32 %v4207_v1, %v4078_v36  ;;  %v4396_v15 = vsel %vm3951_vm4, %v4394_v6, %v4395_v25  ;;  %v3536_v7 = vrot.slane %v3451_v32, 7  ;;  %v3454_v39 = vpop.f32.mrb[42].mxu1  ;;  %v4284_v43 = vld [vmem:[#allocation2 + $0x20] sm:$0xfc] }
 0xd65   : > { %v4645_v46 = vrot.slane %v4579_v59, 1  ;;  %v4768_v8 = vmul.f32 %v8520_v35, %v4725_v60  ;;  %v4770_v16 = vmul.f32 %v8520_v35, %v4727_v24  ;;  %v3455_v10 = vadd.f32 %v3454_v39, %v8438_v38  ;;  %v3456_v21 = vpop.f32.mrb[43].mxu1  ;;  %v4286_v40 = vld [vmem:[#allocation2 + $0x30] sm:$0x3]  ;;  %v8563_v27 = vld [vmem:[#allocation2 + $0x40] sm:$0xff] }
 0xd66   : > { %3576 = vst [vmem:[#allocation2 + $0xa0] sm:$0xfe] %v3535_v14  ;;  %3578 = vst [vmem:[#allocation2 + $0xb0] sm:$0x1] %v3535_v14  ;;  %v4456_v29 = vadd.f32 %v4396_v15, %v4267_v50  ;;  %v4646_v63 = vrot.slane %v4581_v57, 1  ;;  %v4202_v36 = vrot.slane %v8533_v42, 1  ;;  %v3457_v33 = vadd.f32 %v3456_v21, %v8441_v34 }
 0xd67   : > { %3577 = vst [vmem:[#allocation2 + $0xa8] sm:$0xfe] %v3536_v7  ;;  %3579 = vst [vmem:[#allocation2 + $0xb8] sm:$0x1] %v3536_v7  ;;  %v4834_v61 = vrot.slane %v4768_v8, 2  ;;  %v4835_v6 = vrot.slane %v4770_v16, 2  ;;  %v4327_v60 = vmul.f32 %v8478_v17, %v4284_v43  ;;  %v4329_v57 = vmul.f32 %v8478_v17, %v4286_v40 }
 0xd68   : > { %v4203_v25 = vrot.slane %v4140_v12, 1  ;;  %v4535_v32 = vld [vmem:[#allocation2 + $0x40] sm:$0xfe]  ;;  %v3537_v1 = vrot.slane %v3455_v10, 7  ;;  %v4518_v52 = vadd.f32 %v4502_v41, %v4456_v29  ;;  %v4647_v59 = vsel %vm3761_vm3, %v4645_v46, %v4646_v63  ;;  %v4537_v24 = vld [vmem:[#allocation2 + $0x50] sm:$0x1] }
 0xd69   : > { %v4724_v14 = vld [vmem:[#allocation2 + $0x40] sm:$0xfc]  ;;  %v3538_v42 = vrot.slane %v3457_v33, 7  ;;  %v4836_v50 = vsel %vm3951_vm4, %v4834_v61, %v4835_v6  ;;  %v4726_v7 = vld [vmem:[#allocation2 + $0x50] sm:$0x3]  ;;  %v4391_v8 = vrot.slane %v4327_v60, 2  ;;  %v4501_v46 = vmul.f32 %v8505_v23, %v8563_v27 }
 0xd6a   : > { %v4204_v15 = vsel %vm3761_vm3, %v4202_v36, %v4203_v25  ;;  %v3659_v12 = vld [vmem:[#allocation2 + $0x28] sm:$0xfe]  ;;  %3580 = vst [vmem:[#allocation2 + $0xc0] sm:$0xfe] %v3537_v1  ;;  %3582 = vst [vmem:[#allocation2 + $0xd0] sm:$0x1] %v3537_v1  ;;  %v4707_v39 = vadd.f32 %v4647_v59, %v4518_v52  ;;  %v4578_v43 = vmul.f32 %v8511_v4, %v4535_v32 }
 0xd6b   : > { %v4266_v41 = vadd.f32 %v4204_v15, %v8545_v31  ;;  %3581 = vst [vmem:[#allocation2 + $0xc8] sm:$0xfe] %v3538_v42  ;;  %3583 = vst [vmem:[#allocation2 + $0xd8] sm:$0x1] %v3538_v42  ;;  %v4392_v16 = vrot.slane %v4329_v57, 2  ;;  %v4580_v10 = vmul.f32 %v8511_v4, %v4537_v24  ;;  %v4767_v21 = vmul.f32 %v8517_v58, %v4724_v14 }
 0xd6c   : > { %v3661_v29 = vld [vmem:[#allocation2 + $0x38] sm:$0x1]  ;;  %v4896_v63 = vadd.f32 %v4836_v50, %v4707_v39  ;;  %v4769_v36 = vmul.f32 %v8517_v58, %v4726_v7  ;;  %v3623_v31 = vmul.f32 %v8529_v30, %v8444_v5  ;;  %v3702_v40 = vmul.f32 %v8416_v47, %v3659_v12  ;;  %v3849_v33 = vld [vmem:[#allocation2 + $0x28] sm:$0xfc] }
 0xd6d   : > { %v3851_v61 = vld [vmem:[#allocation2 + $0x38] sm:$0x3]  ;;  %v4393_v6 = vsel %vm3951_vm4, %v4391_v8, %v4392_v16  ;;  %v4642_v25 = vrot.slane %v4578_v43, 1  ;;  %v4643_v1 = vrot.slane %v4580_v10, 1  ;;  %v4831_v32 = vrot.slane %v4767_v21, 2 }
 0xd6e   : > { %v8582_v52 = vadd.f32 %v8526_v37, %v4896_v63  ;;  %v4455_v59 = vadd.f32 %v4393_v6, %v4266_v41  ;;  %v4832_v60 = vrot.slane %v4769_v36, 2  ;;  %v3704_v24 = vmul.f32 %v8416_v47, %v3661_v29  ;;  %v4100_v14 = vld [vmem:[#allocation2 + $0x48] sm:$0xfe]  ;;  %v4102_v57 = vld [vmem:[#allocation2 + $0x58] sm:$0x1] }
 0xd6f   : > { %v4644_v42 = vsel %vm3761_vm3, %v4642_v25, %v4643_v1  ;;  %v3771_v30 = vrot.slane %v3702_v40, 1  ;;  %v3892_v50 = vmul.f32 %v8425_v48, %v3849_v33  ;;  %v3894_v15 = vmul.f32 %v8425_v48, %v3851_v61  ;;  %v4289_v41 = vld [vmem:[#allocation2 + $0x48] sm:$0xfc]  ;;  %v4291_v29 = vld [vmem:[#allocation2 + $0x58] sm:$0x3] }
 0xd70   : > { %v4940_v7 = vmul.f32 %v8582_v52, %v8582_v52  ;;  %v4517_v12 = vadd.f32 %v4501_v46, %v4455_v59  ;;  %v4833_v39 = vsel %vm3951_vm4, %v4831_v32, %v4832_v60  ;;  %v3772_v8 = vrot.slane %v3704_v24, 1  ;;  %v8597_v46 = vld [vmem:[#allocation2 + $0x68] sm:$0xff]  ;;  %v4542_v59 = vld [vmem:[#allocation2 + $0x78] sm:$0x1] }
 0xd71   : > { %v3961_v16 = vrot.slane %v3892_v50, 2  ;;  %v3962_v43 = vrot.slane %v3894_v15, 2  ;;  %v4064_v10 = vmul.f32 %v8548_v55, %v8498_v3  ;;  %v4143_v21 = vmul.f32 %v8484_v56, %v4100_v14  ;;  %v4540_v61 = vld [vmem:[#allocation2 + $0x68] sm:$0xfe] }
 0xd72   : > { %v4956_v63 = vmul.f32 %v4940_v7, %v8582_v52  ;;  %v4706_v36 = vadd.f32 %v4644_v42, %v4517_v12  ;;  %v3773_v40 = vsel %vm3761_vm3, %v3771_v30, %v3772_v8  ;;  %v4145_v33 = vmul.f32 %v8484_v56, %v4102_v57  ;;  %v4729_v42 = vld [vmem:[#allocation2 + $0x68] sm:$0xfc] }
 0xd73   : > { %v3829_v6 = vadd.f32 %v3773_v40, %v3623_v31  ;;  %v3963_v25 = vsel %vm3951_vm4, %v3961_v16, %v3962_v43  ;;  %v4211_v1 = vrot.slane %v4143_v21, 1  ;;  %v4332_v32 = vmul.f32 %v8487_v45, %v4289_v41  ;;  %v4731_v31 = vld [vmem:[#allocation2 + $0x78] sm:$0x3]  ;;  %v3658_v16 = vld [vmem:[#allocation2 + $0x20] sm:$0xfe] }
 0xd74   : > { %v4972_v60 = vmul.f32 0.044715, %v4956_v63  ;;  %v4895_v24 = vadd.f32 %v4833_v39, %v4706_v36  ;;  %v4212_v14 = vrot.slane %v4145_v33, 1  ;;  %v4334_v50 = vmul.f32 %v8487_v45, %v4291_v29  ;;  %v3660_v36 = vld [vmem:[#allocation2 + $0x30] sm:$0x1] }
 0xd75   : > { %v4019_v15 = vadd.f32 %v3963_v25, %v3829_v6  ;;  %v4400_v30 = vrot.slane %v4332_v32, 2  ;;  %v4504_v57 = vmul.f32 %v8508_v28, %v8597_v46  ;;  %v4583_v7 = vmul.f32 %v8514_v44, %v4540_v61  ;;  %v3848_v25 = vld [vmem:[#allocation2 + $0x20] sm:$0xfc] }
 0xd76   : > { %v4988_v12 = vadd.f32 %v4972_v60, %v8582_v52  ;;  %v8607_v8 = vadd.f32 %v8523_v0, %v4895_v24  ;;  %v4213_v41 = vsel %vm3761_vm3, %v4211_v1, %v4212_v14  ;;  %v4401_v39 = vrot.slane %v4334_v50, 2  ;;  %v3850_v24 = vld [vmem:[#allocation2 + $0x30] sm:$0x3] }
 0xd77   : > { %v4080_v43 = vadd.f32 %v4064_v10, %v4019_v15  ;;  %v4585_v21 = vmul.f32 %v8514_v44, %v4542_v59  ;;  %v4651_v29 = vrot.slane %v4583_v7, 1  ;;  %v4772_v63 = vmul.f32 %v8520_v35, %v4729_v42  ;;  %v4099_v42 = vld [vmem:[#allocation2 + $0x40] sm:$0xfe] }
 0xd78   : > { %v5004_v40 = vmul.f32 0.7978846, %v4988_v12  ;;  %v4939_v33 = vmul.f32 %v8607_v8, %v8607_v8  ;;  %v4402_v61 = vsel %vm3951_vm4, %v4400_v30, %v4401_v39  ;;  %v4774_v6 = vmul.f32 %v8520_v35, %v4731_v31  ;;  %v4101_v12 = vld [vmem:[#allocation2 + $0x50] sm:$0x1] }
 0xd79   : > { %v4269_v32 = vadd.f32 %v4213_v41, %v4080_v43  ;;  %v4652_v1 = vrot.slane %v4585_v21, 1  ;;  %v4840_v60 = vrot.slane %v4772_v63, 2  ;;  %v3701_v10 = vmul.f32 %v8419_v20, %v3658_v16  ;;  %v4288_v21 = vld [vmem:[#allocation2 + $0x40] sm:$0xfc] }
 0xd7a   : > { %6841 = vtanh.f32 %v5004_v40  ;;  %v4955_v59 = vmul.f32 %v4939_v33, %v8607_v8  ;;  %v4841_v14 = vrot.slane %v4774_v6, 2  ;;  %v3703_v50 = vmul.f32 %v8419_v20, %v3660_v36 }
 0xd7b   : > { %v4458_v15 = vadd.f32 %v4402_v61, %v4269_v32  ;;  %v4653_v7 = vsel %vm3761_vm3, %v4651_v29, %v4652_v1  ;;  %v3768_v30 = vrot.slane %v3701_v10, 1  ;;  %v3891_v31 = vmul.f32 %v8433_v62, %v3848_v25  ;;  %v4290_v61 = vld [vmem:[#allocation2 + $0x50] sm:$0x3]  ;;  %v8629_v1 = vld [vmem:[#allocation2 + $0x60] sm:$0xff] }
 0xd7c   : > { %v4971_v41 = vmul.f32 0.044715, %v4955_v59  ;;  %v4842_v39 = vsel %vm3951_vm4, %v4840_v60, %v4841_v14  ;;  %v3769_v43 = vrot.slane %v3703_v50, 1  ;;  %v3893_v16 = vmul.f32 %v8433_v62, %v3850_v24  ;;  %v4539_v59 = vld [vmem:[#allocation2 + $0x60] sm:$0xfe] }
 0xd7d   : > { %v4520_v63 = vadd.f32 %v4504_v57, %v4458_v15  ;;  %v3958_v40 = vrot.slane %v3891_v31, 2  ;;  %v4063_v36 = vmul.f32 %v8563_v27, %v8495_v2  ;;  %v4142_v33 = vmul.f32 %v8475_v49, %v4099_v42  ;;  %v4541_v14 = vld [vmem:[#allocation2 + $0x70] sm:$0x1] }
 0xd7e   : > { %v4987_v29 = vadd.f32 %v4971_v41, %v8607_v8  ;;  %v3770_v6 = vsel %vm3761_vm3, %v3768_v30, %v3769_v43  ;;  %v3959_v25 = vrot.slane %v3893_v16, 2  ;;  %v4144_v32 = vmul.f32 %v8475_v49, %v4101_v12  ;;  %v4728_v30 = vld [vmem:[#allocation2 + $0x60] sm:$0xfc]  ;;  %v4730_v16 = vld [vmem:[#allocation2 + $0x70] sm:$0x3] }
 0xd7f   : > { %v4709_v60 = vadd.f32 %v4653_v7, %v4520_v63  ;;  %v3828_v10 = vadd.f32 %v3770_v6, %v8536_v13  ;;  %v4208_v57 = vrot.slane %v4142_v33, 1  ;;  %v4331_v24 = vmul.f32 %v8478_v17, %v4288_v21  ;;  %v3665_v6 = vld [vmem:[#allocation2 + $0x58] sm:$0x1] }
 0xd80   : > { %v5003_v50 = vmul.f32 0.7978846, %v4987_v29  ;;  %v3960_v42 = vsel %vm3951_vm4, %v3958_v40, %v3959_v25  ;;  %v4209_v15 = vrot.slane %v4144_v32, 1  ;;  %v4333_v31 = vmul.f32 %v8478_v17, %v4290_v61  ;;  %v3663_v29 = vld [vmem:[#allocation2 + $0x48] sm:$0xfe] }
 0xd81   : > { %v4898_v41 = vadd.f32 %v4842_v39, %v4709_v60  ;;  %v4018_v43 = vadd.f32 %v3960_v42, %v3828_v10  ;;  %v4397_v12 = vrot.slane %v4331_v24, 2  ;;  %v4503_v7 = vmul.f32 %v8505_v23, %v8629_v1 }
 0xd82   : > { %6843 = vtanh.f32 %v5003_v50  ;;  %v4210_v13 = vsel %vm3761_vm3, %v4208_v57, %v4209_v15  ;;  %v4398_v21 = vrot.slane %v4333_v31, 2  ;;  %v4582_v63 = vmul.f32 %v8511_v4, %v4539_v59 }
 0xd83   : > { %v8640_v33 = vadd.f32 %v8526_v37, %v4898_v41  ;;  %v4079_v40 = vadd.f32 %v4063_v36, %v4018_v43  ;;  %v4584_v61 = vmul.f32 %v8511_v4, %v4541_v14  ;;  %v4771_v39 = vmul.f32 %v8517_v58, %v4728_v30  ;;  %v3853_v14 = vld [vmem:[#allocation2 + $0x48] sm:$0xfc] }
 0xd84   : > { %v6842_v25 = vpop.eup %6841  ;;  %v4399_v32 = vsel %vm3951_vm4, %v4397_v12, %v4398_v21  ;;  %v4648_v60 = vrot.slane %v4582_v63, 1  ;;  %v4773_v10 = vmul.f32 %v8517_v58, %v4730_v16  ;;  %v3625_v57 = vmul.f32 %v8548_v55, %v8444_v5  ;;  %v3855_v55 = vld [vmem:[#allocation2 + $0x58] sm:$0x3] }
 0xd85   : > { %v5036_v24 = vadd.f32 1.0, %v6842_v25  ;;  %v4942_v59 = vmul.f32 %v8640_v33, %v8640_v33  ;;  %v4268_v36 = vadd.f32 %v4210_v13, %v4079_v40  ;;  %v4649_v50 = vrot.slane %v4584_v61, 1 }
 0xd86   : > { %v4837_v42 = vrot.slane %v4771_v39, 2  ;;  %v4838_v15 = vrot.slane %v4773_v10, 2  ;;  %v3706_v31 = vmul.f32 %v8416_v47, %v3663_v29  ;;  %v3708_v30 = vmul.f32 %v8416_v47, %v3665_v6  ;;  %v3460_v21 = vpop.f32.mrb[44].mxu1 }
 0xd87   : > { %v5052_v41 = vmul.f32 0.5, %v5036_v24  ;;  %v4958_v43 = vmul.f32 %v4942_v59, %v8640_v33  ;;  %v4457_v12 = vadd.f32 %v4399_v32, %v4268_v36  ;;  %v4650_v16 = vsel %vm3761_vm3, %v4648_v60, %v4649_v50  ;;  %v3462_v39 = vpop.f32.mrb[45].mxu1  ;;  %v4104_v24 = vld [vmem:[#allocation2 + $0x68] sm:$0xfe] }
 0xd88   : > { %v4839_v63 = vsel %vm3951_vm4, %v4837_v42, %v4838_v15  ;;  %v3777_v25 = vrot.slane %v3706_v31, 1  ;;  %v3778_v13 = vrot.slane %v3708_v30, 1  ;;  %v3896_v40 = vmul.f32 %v8425_v48, %v3853_v14  ;;  %v4106_v31 = vld [vmem:[#allocation2 + $0x78] sm:$0x1] }
 0xd89   : > { %v3461_v61 = vadd.f32 %v3460_v21, %v8438_v38  ;;  %v5068_v29 = vmul.f32 %v5052_v41, %v8582_v52  ;;  %v4974_v6 = vmul.f32 0.044715, %v4958_v43  ;;  %v4519_v10 = vadd.f32 %v4503_v7, %v4457_v12 }
 0xd8a   : > { %v3463_v32 = vadd.f32 %v3462_v39, %v8441_v34  ;;  %v3779_v60 = vsel %vm3761_vm3, %v3777_v25, %v3778_v13  ;;  %v3898_v59 = vmul.f32 %v8425_v48, %v3855_v55  ;;  %v3967_v36 = vrot.slane %v3896_v40, 2  ;;  %v3466_v52 = vpop.f32.mrb[46].mxu1 }
 0xd8b   : > { %v3539_v50 = vrot.slane %v3461_v61, 7  ;;  %5186 = vmatprep.mubr.f32.mxu1 %v5068_v29  ;;  %v4990_v42 = vadd.f32 %v4974_v6, %v8640_v33  ;;  %v4708_v14 = vadd.f32 %v4650_v16, %v4519_v10  ;;  %v3831_v15 = vadd.f32 %v3779_v60, %v3625_v57  ;;  %v3468_v25 = vpop.f32.mrb[47].mxu1  ;;  %v4293_v16 = vld [vmem:[#allocation2 + $0x68] sm:$0xfc]  ;;  %v4295_v6 = vld [vmem:[#allocation2 + $0x78] sm:$0x3] }
 0xd8c   : > { %v6844_v30 = vpop.eup %6843  ;;  %v3540_v21 = vrot.slane %v3463_v32, 7  ;;  %v3968_v41 = vrot.slane %v3898_v59, 2  ;;  %v4066_v7 = vmul.f32 %v8597_v46, %v8498_v3  ;;  %v4147_v43 = vmul.f32 %v8484_v56, %v4104_v24  ;;  %v8669_v10 = vld [vmem:[#allocation2 + $0x88] sm:$0xff] }
 0xd8d   : > { %3584 = vst [vmem:[#allocation2 + $0xe0] sm:$0xfe] %v3539_v50  ;;  %3586 = vst [vmem:[#allocation2 + $0xf0] sm:$0x1] %v3539_v50  ;;  %v3467_v12 = vadd.f32 %v3466_v52, %v8438_v38  ;;  %v5035_v55 = vadd.f32 1.0, %v6844_v30  ;;  %v4897_v40 = vadd.f32 %v4839_v63, %v4708_v14  ;;  %v3469_v57 = vadd.f32 %v3468_v25, %v8441_v34 }
 0xd8e   : > { %v5006_v13 = vmul.f32 0.7978846, %v4990_v42  ;;  %3585 = vst [vmem:[#allocation2 + $0xe8] sm:$0xfe] %v3540_v21  ;;  %3587 = vst [vmem:[#allocation2 + $0xf8] sm:$0x1] %v3540_v21  ;;  %v3969_v61 = vsel %vm3951_vm4, %v3967_v36, %v3968_v41  ;;  %v4149_v39 = vmul.f32 %v8484_v56, %v4106_v31  ;;  %v4336_v34 = vmul.f32 %v8487_v45, %v4293_v16 }
 0xd8f   : > { %v4217_v29 = vrot.slane %v4147_v43, 1  ;;  %v3541_v24 = vrot.slane %v3467_v12, 7  ;;  %v5051_v32 = vmul.f32 0.5, %v5035_v55  ;;  %v8672_v38 = vadd.f32 %v8523_v0, %v4897_v40  ;;  %v4544_v63 = vld [vmem:[#allocation2 + $0x88] sm:$0xfe] }
 0xd90   : > { %6845 = vtanh.f32 %v5006_v13  ;;  %v3542_v60 = vrot.slane %v3469_v57, 7  ;;  %v4021_v59 = vadd.f32 %v3969_v61, %v3831_v15  ;;  %v4218_v50 = vrot.slane %v4149_v39, 1  ;;  %v4546_v42 = vld [vmem:[#allocation2 + $0x98] sm:$0x1]  ;;  %v4733_v36 = vld [vmem:[#allocation2 + $0x88] sm:$0xfc] }
 0xd91   : > { %3588 = vst [vmem:[#allocation2 + $0x100] sm:$0xfe] %v3541_v24  ;;  %3590 = vst [vmem:[#allocation2 + $0x110] sm:$0x1] %v3541_v24  ;;  %v5067_v14 = vmul.f32 %v5051_v32, %v8607_v8  ;;  %v4941_v31 = vmul.f32 %v8672_v38, %v8672_v38  ;;  %v4338_v30 = vmul.f32 %v8487_v45, %v4295_v6  ;;  %v4735_v52 = vld [vmem:[#allocation2 + $0x98] sm:$0x3] }
 0xd92   : > { %v4506_v21 = vmul.f32 %v8508_v28, %v8669_v10  ;;  %3589 = vst [vmem:[#allocation2 + $0x108] sm:$0xfe] %v3542_v60  ;;  %3591 = vst [vmem:[#allocation2 + $0x118] sm:$0x1] %v3542_v60  ;;  %v4082_v15 = vadd.f32 %v4066_v7, %v4021_v59  ;;  %v4219_v41 = vsel %vm3761_vm3, %v4217_v29, %v4218_v50  ;;  %v4406_v43 = vrot.slane %v4336_v34, 2 }
 0xd93   : > { %v4587_v12 = vmul.f32 %v8514_v44, %v4544_v63  ;;  %5187 = vmatmul.mubr.f32.vlgmr.msra.gmra.mrb[48].mxu1 %v5067_v14  ;;  %v4957_v8 = vmul.f32 %v4941_v31, %v8672_v38  ;;  %v4407_v55 = vrot.slane %v4338_v30, 2  ;;  %v4589_v25 = vmul.f32 %v8514_v44, %v4546_v42  ;;  %v3662_v40 = vld [vmem:[#allocation2 + $0x40] sm:$0xfe]  ;;  %v3664_v16 = vld [vmem:[#allocation2 + $0x50] sm:$0x1] }
 0xd94   : > { %v4776_v13 = vmul.f32 %v8520_v35, %v4733_v36  ;;  %v4271_v57 = vadd.f32 %v4219_v41, %v4082_v15  ;;  %v4778_v39 = vmul.f32 %v8520_v35, %v4735_v52  ;;  %v3624_v7 = vmul.f32 %v8563_v27, %v8449_v19  ;;  %v3852_v29 = vld [vmem:[#allocation2 + $0x40] sm:$0xfc]  ;;  %v3854_v6 = vld [vmem:[#allocation2 + $0x50] sm:$0x3] }
 0xd95   : > { %v4657_v61 = vrot.slane %v4587_v12, 1  ;;  %v4973_v24 = vmul.f32 0.044715, %v4957_v8  ;;  %v4408_v32 = vsel %vm3951_vm4, %v4406_v43, %v4407_v55  ;;  %v4658_v63 = vrot.slane %v4589_v25, 1  ;;  %v4103_v30 = vld [vmem:[#allocation2 + $0x60] sm:$0xfe] }
 0xd96   : > { %v4846_v60 = vrot.slane %v4776_v13, 2  ;;  %v4460_v59 = vadd.f32 %v4408_v32, %v4271_v57  ;;  %v4847_v50 = vrot.slane %v4778_v39, 2  ;;  %v3705_v34 = vmul.f32 %v8419_v20, %v3662_v40  ;;  %v4105_v12 = vld [vmem:[#allocation2 + $0x70] sm:$0x1] }
 0xd97   : > { %v3707_v42 = vmul.f32 %v8419_v20, %v3664_v16  ;;  %v4989_v36 = vadd.f32 %v4973_v24, %v8672_v38  ;;  %v4659_v14 = vsel %vm3761_vm3, %v4657_v61, %v4658_v63  ;;  %v3895_v31 = vmul.f32 %v8433_v62, %v3852_v29  ;;  %v4292_v16 = vld [vmem:[#allocation2 + $0x60] sm:$0xfc] }
 0xd98   : > { %v3897_v27 = vmul.f32 %v8433_v62, %v3854_v6  ;;  %v4522_v52 = vadd.f32 %v4506_v21, %v4460_v59  ;;  %v4848_v15 = vsel %vm3951_vm4, %v4846_v60, %v4847_v50  ;;  %v3774_v41 = vrot.slane %v3705_v34, 1  ;;  %v4294_v21 = vld [vmem:[#allocation2 + $0x70] sm:$0x3]  ;;  %v8701_v6 = vld [vmem:[#allocation2 + $0x80] sm:$0xff] }
 0xd99   : > { %v3775_v43 = vrot.slane %v3707_v42, 1  ;;  %v5005_v55 = vmul.f32 0.7978846, %v4989_v36  ;;  %v3964_v25 = vrot.slane %v3895_v31, 2  ;;  %v4065_v40 = vmul.f32 %v8629_v1, %v8495_v2  ;;  %v4543_v60 = vld [vmem:[#allocation2 + $0x80] sm:$0xfe] }
 0xd9a   : > { %v6846_v8 = vpop.eup %6845  ;;  %v3965_v13 = vrot.slane %v3897_v27, 2  ;;  %v4711_v61 = vadd.f32 %v4659_v14, %v4522_v52  ;;  %v4146_v29 = vmul.f32 %v8475_v49, %v4103_v30  ;;  %v4148_v63 = vmul.f32 %v8475_v49, %v4105_v12  ;;  %v4545_v36 = vld [vmem:[#allocation2 + $0x90] sm:$0x1]  ;;  %v4732_v52 = vld [vmem:[#allocation2 + $0x80] sm:$0xfc] }
 0xd9b   : > { %v5038_v57 = vadd.f32 1.0, %v6846_v8  ;;  %v3776_v39 = vsel %vm3761_vm3, %v3774_v41, %v3775_v43  ;;  %6847 = vtanh.f32 %v5005_v55  ;;  %v4335_v42 = vmul.f32 %v8478_v17, %v4292_v16  ;;  %v3667_v16 = vld [vmem:[#allocation2 + $0x68] sm:$0xfe] }
 0xd9c   : > { %v3830_v24 = vadd.f32 %v3776_v39, %v3624_v7  ;;  %v3966_v32 = vsel %vm3951_vm4, %v3964_v25, %v3965_v13  ;;  %v4900_v50 = vadd.f32 %v4848_v15, %v4711_v61  ;;  %v4214_v34 = vrot.slane %v4146_v29, 1  ;;  %v4734_v7 = vld [vmem:[#allocation2 + $0x90] sm:$0x3]  ;;  %v3669_v29 = vld [vmem:[#allocation2 + $0x78] sm:$0x1] }
 0xd9d   : > { %v5054_v59 = vmul.f32 0.5, %v5038_v57  ;;  %v4215_v31 = vrot.slane %v4148_v63, 1  ;;  %v4337_v27 = vmul.f32 %v8478_v17, %v4294_v21  ;;  %v4505_v30 = vmul.f32 %v8505_v23, %v8701_v6  ;;  %v3857_v21 = vld [vmem:[#allocation2 + $0x68] sm:$0xfc] }
 0xd9e   : > { %v4020_v14 = vadd.f32 %v3966_v32, %v3830_v24  ;;  %v8711_v43 = vadd.f32 %v8526_v37, %v4900_v50  ;;  %v4403_v12 = vrot.slane %v4335_v42, 2  ;;  %v4586_v15 = vmul.f32 %v8511_v4, %v4543_v60  ;;  %v3859_v60 = vld [vmem:[#allocation2 + $0x78] sm:$0x3] }
 0xd9f   : > { %v5070_v41 = vmul.f32 %v5054_v59, %v8640_v33  ;;  %v4216_v55 = vsel %vm3761_vm3, %v4214_v34, %v4215_v31  ;;  %v4404_v25 = vrot.slane %v4337_v27, 2  ;;  %v4588_v13 = vmul.f32 %v8511_v4, %v4545_v36 }
 0xda0   : > { %v4081_v8 = vadd.f32 %v4065_v40, %v4020_v14  ;;  %v4944_v57 = vmul.f32 %v8711_v43, %v8711_v43  ;;  %v4654_v61 = vrot.slane %v4586_v15, 1  ;;  %v4775_v33 = vmul.f32 %v8517_v58, %v4732_v52  ;;  %v4108_v52 = vld [vmem:[#allocation2 + $0x88] sm:$0xfe] }
 0xda1   : > { %5191 = vmatprep.mubr.f32.mxu1 %v5070_v41  ;;  %v4777_v39 = vmul.f32 %v8517_v58, %v4734_v7  ;;  %v4405_v40 = vsel %vm3951_vm4, %v4403_v12, %v4404_v25  ;;  %v4655_v32 = vrot.slane %v4588_v13, 1  ;;  %v3627_v63 = vmul.f32 %v8597_v46, %v8444_v5  ;;  %v4110_v7 = vld [vmem:[#allocation2 + $0x98] sm:$0x1] }
 0xda2   : > { %v4270_v24 = vadd.f32 %v4216_v55, %v4081_v8  ;;  %v4960_v59 = vmul.f32 %v4944_v57, %v8711_v43  ;;  %v4843_v50 = vrot.slane %v4775_v33, 2  ;;  %v3710_v42 = vmul.f32 %v8416_v47, %v3667_v16  ;;  %v4297_v8 = vld [vmem:[#allocation2 + $0x88] sm:$0xfc] }
 0xda3   : > { %v4844_v34 = vrot.slane %v4777_v39, 2  ;;  %v4656_v14 = vsel %vm3761_vm3, %v4654_v61, %v4655_v32  ;;  %v3712_v31 = vmul.f32 %v8416_v47, %v3669_v29  ;;  %v3900_v27 = vmul.f32 %v8425_v48, %v3857_v21  ;;  %v4299_v21 = vld [vmem:[#allocation2 + $0x98] sm:$0x3] }
 0xda4   : > { %v4459_v36 = vadd.f32 %v4405_v40, %v4270_v24  ;;  %v4976_v41 = vmul.f32 0.044715, %v4960_v59  ;;  %v3783_v46 = vrot.slane %v3710_v42, 1  ;;  %v3902_v15 = vmul.f32 %v8425_v48, %v3859_v60  ;;  %v8738_v42 = vld [vmem:[#allocation2 + $0xa8] sm:$0xff] }
 0xda5   : > { %v4845_v12 = vsel %vm3951_vm4, %v4843_v50, %v4844_v34  ;;  %v6848_v55 = vpop.eup %6847  ;;  %v3784_v13 = vrot.slane %v3712_v31, 1  ;;  %v3973_v16 = vrot.slane %v3900_v27, 2  ;;  %v4068_v57 = vmul.f32 %v8669_v10, %v8498_v3 }
 0xda6   : > { %v4521_v25 = vadd.f32 %v4505_v30, %v4459_v36  ;;  %v5037_v61 = vadd.f32 1.0, %v6848_v55  ;;  %v4992_v33 = vadd.f32 %v4976_v41, %v8711_v43  ;;  %v3974_v39 = vrot.slane %v3902_v15, 2  ;;  %v4548_v36 = vld [vmem:[#allocation2 + $0xa8] sm:$0xfe]  ;;  %v4739_v55 = vld [vmem:[#allocation2 + $0xb8] sm:$0x3] }
 0xda7   : > { %v4151_v29 = vmul.f32 %v8484_v56, %v4108_v52  ;;  %v3785_v40 = vsel %vm3761_vm3, %v3783_v46, %v3784_v13  ;;  %v4153_v32 = vmul.f32 %v8484_v56, %v4110_v7  ;;  %v4340_v60 = vmul.f32 %v8487_v45, %v4297_v8  ;;  %v4737_v15 = vld [vmem:[#allocation2 + $0xa8] sm:$0xfc] }
 0xda8   : > { %v4710_v24 = vadd.f32 %v4656_v14, %v4521_v25  ;;  %v5053_v30 = vmul.f32 0.5, %v5037_v61  ;;  %v5008_v59 = vmul.f32 0.7978846, %v4992_v33  ;;  %v3833_v50 = vadd.f32 %v3785_v40, %v3627_v63  ;;  %v4550_v14 = vld [vmem:[#allocation2 + $0xb8] sm:$0x1] }
 0xda9   : > { %v3975_v34 = vsel %vm3951_vm4, %v3973_v16, %v3974_v39  ;;  %v4223_v27 = vrot.slane %v4151_v29, 1  ;;  %v4224_v41 = vrot.slane %v4153_v32, 1  ;;  %v4342_v52 = vmul.f32 %v8487_v45, %v4299_v21  ;;  %v3666_v39 = vld [vmem:[#allocation2 + $0x60] sm:$0xfe]  ;;  %v3668_v29 = vld [vmem:[#allocation2 + $0x70] sm:$0x1] }
 0xdaa   : > { %v4899_v31 = vadd.f32 %v4845_v12, %v4710_v24  ;;  %v5069_v46 = vmul.f32 %v5053_v30, %v8672_v38  ;;  %6849 = vtanh.f32 %v5008_v59  ;;  %v4023_v7 = vadd.f32 %v3975_v34, %v3833_v50 }
 0xdab   : > { %v4412_v8 = vrot.slane %v4340_v60, 2  ;;  %v4225_v25 = vsel %vm3761_vm3, %v4223_v27, %v4224_v41  ;;  %v4413_v13 = vrot.slane %v4342_v52, 2  ;;  %v4508_v12 = vmul.f32 %v8508_v28, %v8738_v42  ;;  %v3856_v60 = vld [vmem:[#allocation2 + $0x60] sm:$0xfc] }
 0xdac   : > { %v8743_v63 = vadd.f32 %v8523_v0, %v4899_v31  ;;  %5192 = vmatmul.mubr.f32.gmra.mrb[50].mxu1 %v5069_v46  ;;  %v4084_v16 = vadd.f32 %v4068_v57, %v4023_v7  ;;  %v4591_v61 = vmul.f32 %v8514_v44, %v4548_v36  ;;  %v4593_v33 = vmul.f32 %v8514_v44, %v4550_v14  ;;  %v3858_v57 = vld [vmem:[#allocation2 + $0x70] sm:$0x3]  ;;  %v4107_v46 = vld [vmem:[#allocation2 + $0x80] sm:$0xfe] }
 0xdad   : > { %v4780_v38 = vmul.f32 %v8520_v35, %v4737_v15  ;;  %v4414_v24 = vsel %vm3951_vm4, %v4412_v8, %v4413_v13  ;;  %v4782_v40 = vmul.f32 %v8520_v35, %v4739_v55  ;;  %v3626_v32 = vmul.f32 %v8629_v1, %v8449_v19  ;;  %v4109_v7 = vld [vmem:[#allocation2 + $0x90] sm:$0x1] }
 0xdae   : > { %v4943_v21 = vmul.f32 %v8743_v63, %v8743_v63  ;;  %v4273_v30 = vadd.f32 %v4225_v25, %v4084_v16  ;;  %v4663_v59 = vrot.slane %v4591_v61, 1  ;;  %v4664_v50 = vrot.slane %v4593_v33, 1  ;;  %v4296_v16 = vld [vmem:[#allocation2 + $0x80] sm:$0xfc] }
 0xdaf   : > { %v4852_v34 = vrot.slane %v4780_v38, 2  ;;  %v4853_v31 = vrot.slane %v4782_v40, 2  ;;  %v3709_v27 = vmul.f32 %v8419_v20, %v3666_v39  ;;  %v3711_v41 = vmul.f32 %v8419_v20, %v3668_v29 }
 0xdb0   : > { %v4959_v36 = vmul.f32 %v4943_v21, %v8743_v63  ;;  %v4462_v52 = vadd.f32 %v4414_v24, %v4273_v30  ;;  %v4665_v14 = vsel %vm3761_vm3, %v4663_v59, %v4664_v50  ;;  %v3899_v15 = vmul.f32 %v8433_v62, %v3856_v60  ;;  %v4298_v60 = vld [vmem:[#allocation2 + $0x90] sm:$0x3] }
 0xdb1   : > { %v3901_v1 = vmul.f32 %v8433_v62, %v3858_v57  ;;  %v4854_v55 = vsel %vm3951_vm4, %v4852_v34, %v4853_v31  ;;  %v3780_v25 = vrot.slane %v3709_v27, 1  ;;  %v3781_v13 = vrot.slane %v3711_v41, 1  ;;  %v8772_v34 = vld [vmem:[#allocation2 + $0xa0] sm:$0xff]  ;;  %v4549_v31 = vld [vmem:[#allocation2 + $0xb0] sm:$0x1] }
 0xdb2   : > { %v4975_v8 = vmul.f32 0.044715, %v4959_v36  ;;  %v4524_v61 = vadd.f32 %v4508_v12, %v4462_v52  ;;  %v3970_v33 = vrot.slane %v3899_v15, 2  ;;  %v4067_v39 = vmul.f32 %v8701_v6, %v8495_v2  ;;  %v4547_v36 = vld [vmem:[#allocation2 + $0xa0] sm:$0xfe] }
 0xdb3   : > { %v3971_v38 = vrot.slane %v3901_v1, 2  ;;  %v3782_v21 = vsel %vm3761_vm3, %v3780_v25, %v3781_v13  ;;  %v4150_v24 = vmul.f32 %v8475_v49, %v4107_v46  ;;  %v4152_v40 = vmul.f32 %v8475_v49, %v4109_v7  ;;  %v4736_v25 = vld [vmem:[#allocation2 + $0xa0] sm:$0xfc] }
 0xdb4   : > { %v4991_v29 = vadd.f32 %v4975_v8, %v8743_v63  ;;  %v6850_v57 = vpop.eup %6849  ;;  %v4713_v30 = vadd.f32 %v4665_v14, %v4524_v61  ;;  %v3832_v59 = vadd.f32 %v3782_v21, %v3626_v32  ;;  %v4339_v12 = vmul.f32 %v8478_v17, %v4296_v16  ;;  %v4738_v14 = vld [vmem:[#allocation2 + $0xb0] sm:$0x3] }
 0xdb5   : > { %v3972_v50 = vsel %vm3951_vm4, %v3970_v33, %v3971_v38  ;;  %v5040_v27 = vadd.f32 1.0, %v6850_v57  ;;  %v4220_v52 = vrot.slane %v4150_v24, 1  ;;  %v4221_v15 = vrot.slane %v4152_v40, 1  ;;  %v3673_v57 = vld [vmem:[#allocation2 + $0x98] sm:$0x1] }
 0xdb6   : > { %v5007_v41 = vmul.f32 0.7978846, %v4991_v29  ;;  %v4902_v1 = vadd.f32 %v4854_v55, %v4713_v30  ;;  %v4022_v46 = vadd.f32 %v3972_v50, %v3832_v59  ;;  %v4341_v7 = vmul.f32 %v8478_v17, %v4298_v60  ;;  %v3671_v60 = vld [vmem:[#allocation2 + $0x88] sm:$0xfe] }
 0xdb7   : > { %v4409_v8 = vrot.slane %v4339_v12, 2  ;;  %v5056_v32 = vmul.f32 0.5, %v5040_v27  ;;  %v4222_v13 = vsel %vm3761_vm3, %v4220_v52, %v4221_v15  ;;  %v4507_v16 = vmul.f32 %v8505_v23, %v8772_v34  ;;  %v3861_v12 = vld [vmem:[#allocation2 + $0x88] sm:$0xfc]  ;;  %v3863_v27 = vld [vmem:[#allocation2 + $0x98] sm:$0x3] }
 0xdb8   : > { %6851 = vtanh.f32 %v5007_v41  ;;  %v8779_v61 = vadd.f32 %v8526_v37, %v4902_v1  ;;  %v4083_v33 = vadd.f32 %v4067_v39, %v4022_v46  ;;  %v4410_v38 = vrot.slane %v4341_v7, 2  ;;  %v4112_v7 = vld [vmem:[#allocation2 + $0xa8] sm:$0xfe] }
 0xdb9   : > { %v4590_v55 = vmul.f32 %v8511_v4, %v4547_v36  ;;  %v5072_v29 = vmul.f32 %v5056_v32, %v8711_v43  ;;  %v4592_v21 = vmul.f32 %v8511_v4, %v4549_v31  ;;  %v4779_v24 = vmul.f32 %v8517_v58, %v4736_v25 }
 0xdba   : > { %v4781_v40 = vmul.f32 %v8517_v58, %v4738_v14  ;;  %v4946_v30 = vmul.f32 %v8779_v61, %v8779_v61  ;;  %v4272_v59 = vadd.f32 %v4222_v13, %v4083_v33  ;;  %v4411_v50 = vsel %vm3951_vm4, %v4409_v8, %v4410_v38  ;;  %v4114_v13 = vld [vmem:[#allocation2 + $0xb8] sm:$0x1] }
 0xdbb   : > { %v4660_v39 = vrot.slane %v4590_v55, 1  ;;  %5196 = vmatprep.mubr.f32.mxu1 %v5072_v29  ;;  %v4661_v36 = vrot.slane %v4592_v21, 1  ;;  %v4849_v43 = vrot.slane %v4779_v24, 2  ;;  %v3629_v31 = vmul.f32 %v8669_v10, %v8444_v5  ;;  %v4301_v29 = vld [vmem:[#allocation2 + $0xa8] sm:$0xfc] }
 0xdbc   : > { %v4850_v41 = vrot.slane %v4781_v40, 2  ;;  %v4962_v52 = vmul.f32 %v4946_v30, %v8779_v61  ;;  %v4461_v15 = vadd.f32 %v4411_v50, %v4272_v59  ;;  %v3714_v1 = vmul.f32 %v8416_v47, %v3671_v60 }
 0xdbd   : > { %v3716_v46 = vmul.f32 %v8416_v47, %v3673_v57  ;;  %v4662_v8 = vsel %vm3761_vm3, %v4660_v39, %v4661_v36  ;;  %v3904_v14 = vmul.f32 %v8425_v48, %v3861_v12  ;;  %v3906_v32 = vmul.f32 %v8425_v48, %v3863_v27  ;;  %v4303_v39 = vld [vmem:[#allocation2 + $0xb8] sm:$0x3]  ;;  %v8804_v12 = vld [vmem:[#allocation2 + $0xc8] sm:$0xff] }
 0xdbe   : > { %v4851_v25 = vsel %vm3951_vm4, %v4849_v43, %v4850_v41  ;;  %v4978_v33 = vmul.f32 0.044715, %v4962_v52  ;;  %v4523_v38 = vadd.f32 %v4507_v16, %v4461_v15  ;;  %v3789_v10 = vrot.slane %v3714_v1, 1  ;;  %v4552_v52 = vld [vmem:[#allocation2 + $0xc8] sm:$0xfe] }
 0xdbf   : > { %v3790_v55 = vrot.slane %v3716_v46, 1  ;;  %v3979_v21 = vrot.slane %v3904_v14, 2  ;;  %v3980_v24 = vrot.slane %v3906_v32, 2  ;;  %v4070_v40 = vmul.f32 %v8738_v42, %v8498_v3 }
 0xdc0   : > { %v4155_v60 = vmul.f32 %v8484_v56, %v4112_v7  ;;  %v4994_v57 = vadd.f32 %v4978_v33, %v8779_v61  ;;  %v4712_v30 = vadd.f32 %v4662_v8, %v4523_v38  ;;  %v4157_v50 = vmul.f32 %v8484_v56, %v4114_v13  ;;  %v4554_v8 = vld [vmem:[#allocation2 + $0xd8] sm:$0x1]  ;;  %v4741_v38 = vld [vmem:[#allocation2 + $0xc8] sm:$0xfc] }
 0xdc1   : > { %v3791_v59 = vsel %vm3761_vm3, %v3789_v10, %v3790_v55  ;;  %v3981_v36 = vsel %vm3951_vm4, %v3979_v21, %v3980_v24  ;;  %v4344_v41 = vmul.f32 %v8487_v45, %v4301_v29  ;;  %v4346_v32 = vmul.f32 %v8487_v45, %v4303_v39  ;;  %v3670_v39 = vld [vmem:[#allocation2 + $0x80] sm:$0xfe] }
 0xdc2   : > { %v6852_v16 = vpop.eup %6851  ;;  %v3835_v27 = vadd.f32 %v3791_v59, %v3629_v31  ;;  %v4229_v43 = vrot.slane %v4155_v60, 1  ;;  %v5010_v1 = vmul.f32 0.7978846, %v4994_v57  ;;  %v4901_v46 = vadd.f32 %v4851_v25, %v4712_v30  ;;  %v4743_v31 = vld [vmem:[#allocation2 + $0xd8] sm:$0x3] }
 0xdc3   : > { %v5039_v15 = vadd.f32 1.0, %v6852_v16  ;;  %v4230_v7 = vrot.slane %v4157_v50, 1  ;;  %v4418_v13 = vrot.slane %v4344_v41, 2  ;;  %v4510_v33 = vmul.f32 %v8508_v28, %v8804_v12  ;;  %v3672_v16 = vld [vmem:[#allocation2 + $0x90] sm:$0x1] }
 0xdc4   : > { %v4025_v14 = vadd.f32 %v3981_v36, %v3835_v27  ;;  %6853 = vtanh.f32 %v5010_v1  ;;  %v8812_v55 = vadd.f32 %v8523_v0, %v4901_v46  ;;  %v4419_v25 = vrot.slane %v4346_v32, 2  ;;  %v3860_v41 = vld [vmem:[#allocation2 + $0x80] sm:$0xfc] }
 0xdc5   : > { %v5055_v10 = vmul.f32 0.5, %v5039_v15  ;;  %v4231_v29 = vsel %vm3761_vm3, %v4229_v43, %v4230_v7  ;;  %v4595_v24 = vmul.f32 %v8514_v44, %v4552_v52  ;;  %v4597_v60 = vmul.f32 %v8514_v44, %v4554_v8  ;;  %v3862_v52 = vld [vmem:[#allocation2 + $0x90] sm:$0x3] }
 0xdc6   : > { %v4086_v21 = vadd.f32 %v4070_v40, %v4025_v14  ;;  %v4945_v30 = vmul.f32 %v8812_v55, %v8812_v55  ;;  %v4784_v59 = vmul.f32 %v8520_v35, %v4741_v38  ;;  %v4786_v50 = vmul.f32 %v8520_v35, %v4743_v31 }
 0xdc7   : > { %v5071_v57 = vmul.f32 %v5055_v10, %v8743_v63  ;;  %v4420_v36 = vsel %vm3951_vm4, %v4418_v13, %v4419_v25  ;;  %v4669_v40 = vrot.slane %v4595_v24, 1  ;;  %v4670_v43 = vrot.slane %v4597_v60, 1  ;;  %v4111_v13 = vld [vmem:[#allocation2 + $0xa0] sm:$0xfe] }
 0xdc8   : > { %v4275_v27 = vadd.f32 %v4231_v29, %v4086_v21  ;;  %v4961_v15 = vmul.f32 %v4945_v30, %v8812_v55  ;;  %v4858_v63 = vrot.slane %v4784_v59, 2  ;;  %v4859_v1 = vrot.slane %v4786_v50, 2  ;;  %v4113_v21 = vld [vmem:[#allocation2 + $0xb0] sm:$0x1]  ;;  %v4300_v25 = vld [vmem:[#allocation2 + $0xa0] sm:$0xfc] }
 0xdc9   : > { %5197 = vmatmul.mubr.f32.gmra.mrb[52].mxu1 %v5071_v57  ;;  %v3628_v46 = vmul.f32 %v8701_v6, %v8449_v19  ;;  %v4671_v8 = vsel %vm3761_vm3, %v4669_v40, %v4670_v43  ;;  %v3713_v14 = vmul.f32 %v8419_v20, %v3670_v39  ;;  %v3715_v32 = vmul.f32 %v8419_v20, %v3672_v16  ;;  %v4302_v16 = vld [vmem:[#allocation2 + $0xb0] sm:$0x3] }
 0xdca   : > { %v4464_v7 = vadd.f32 %v4420_v36, %v4275_v27  ;;  %v4977_v38 = vmul.f32 0.044715, %v4961_v15  ;;  %v4860_v31 = vsel %vm3951_vm4, %v4858_v63, %v4859_v1  ;;  %v3903_v10 = vmul.f32 %v8433_v62, %v3860_v41 }
 0xdcb   : > { %v3905_v29 = vmul.f32 %v8433_v62, %v3862_v52  ;;  %v3786_v60 = vrot.slane %v3713_v14, 1  ;;  %v3787_v6 = vrot.slane %v3715_v32, 1  ;;  %v4069_v57 = vmul.f32 %v8772_v34, %v8495_v2 }
 0xdcc   : > { %v4526_v24 = vadd.f32 %v4510_v33, %v4464_v7  ;;  %v4993_v30 = vadd.f32 %v4977_v38, %v8812_v55  ;;  %v3976_v59 = vrot.slane %v3903_v10, 2  ;;  %v4154_v39 = vmul.f32 %v8475_v49, %v4111_v13  ;;  %v8839_v33 = vld [vmem:[#allocation2 + $0xc0] sm:$0xff]  ;;  %v4553_v38 = vld [vmem:[#allocation2 + $0xd0] sm:$0x1] }
 0xdcd   : > { %v3977_v50 = vrot.slane %v3905_v29, 2  ;;  %v3788_v36 = vsel %vm3761_vm3, %v3786_v60, %v3787_v6  ;;  %v4156_v40 = vmul.f32 %v8475_v49, %v4113_v21  ;;  %v4343_v43 = vmul.f32 %v8478_v17, %v4300_v25  ;;  %v4551_v7 = vld [vmem:[#allocation2 + $0xc0] sm:$0xfe] }
 0xdce   : > { %v4715_v27 = vadd.f32 %v4671_v8, %v4526_v24  ;;  %v6854_v41 = vpop.eup %6853  ;;  %v5009_v52 = vmul.f32 0.7978846, %v4993_v30  ;;  %v3834_v15 = vadd.f32 %v3788_v36, %v3628_v46  ;;  %v4226_v1 = vrot.slane %v4154_v39, 1  ;;  %v4740_v10 = vld [vmem:[#allocation2 + $0xc0] sm:$0xfc] }
 0xdcf   : > { %v3978_v63 = vsel %vm3951_vm4, %v3976_v59, %v3977_v50  ;;  %v5042_v14 = vadd.f32 1.0, %v6854_v41  ;;  %v4227_v13 = vrot.slane %v4156_v40, 1  ;;  %v4345_v8 = vmul.f32 %v8478_v17, %v4302_v16  ;;  %v4742_v24 = vld [vmem:[#allocation2 + $0xd0] sm:$0x3]  ;;  %v3675_v16 = vld [vmem:[#allocation2 + $0xa8] sm:$0xfe] }
 0xdd0   : > { %v4904_v32 = vadd.f32 %v4860_v31, %v4715_v27  ;;  %6855 = vtanh.f32 %v5009_v52  ;;  %v4024_v29 = vadd.f32 %v3978_v63, %v3834_v15  ;;  %v4415_v21 = vrot.slane %v4343_v43, 2  ;;  %v3677_v41 = vld [vmem:[#allocation2 + $0xb8] sm:$0x1]  ;;  %v3865_v52 = vld [vmem:[#allocation2 + $0xa8] sm:$0xfc] }
 0xdd1   : > { %v4509_v25 = vmul.f32 %v8505_v23, %v8839_v33  ;;  %v5058_v60 = vmul.f32 0.5, %v5042_v14  ;;  %v4228_v6 = vsel %vm3761_vm3, %v4226_v1, %v4227_v13  ;;  %v4416_v30 = vrot.slane %v4345_v8, 2 }
 0xdd2   : > { %v8846_v46 = vadd.f32 %v8526_v37, %v4904_v32  ;;  %v4085_v31 = vadd.f32 %v4069_v57, %v4024_v29  ;;  %v4594_v59 = vmul.f32 %v8511_v4, %v4551_v7  ;;  %v4596_v50 = vmul.f32 %v8511_v4, %v4553_v38  ;;  %v3867_v7 = vld [vmem:[#allocation2 + $0xb8] sm:$0x3] }
 0xdd3   : > { %v4783_v39 = vmul.f32 %v8517_v58, %v4740_v10  ;;  %v5074_v27 = vmul.f32 %v5058_v60, %v8779_v61  ;;  %v4417_v40 = vsel %vm3951_vm4, %v4415_v21, %v4416_v30  ;;  %v4785_v43 = vmul.f32 %v8517_v58, %v4742_v24  ;;  %v4116_v21 = vld [vmem:[#allocation2 + $0xc8] sm:$0xfe]  ;;  %v4118_v24 = vld [vmem:[#allocation2 + $0xd8] sm:$0x1] }
 0xdd4   : > { %v4948_v36 = vmul.f32 %v8846_v46, %v8846_v46  ;;  %v4274_v15 = vadd.f32 %v4228_v6, %v4085_v31  ;;  %v4666_v57 = vrot.slane %v4594_v59, 1  ;;  %v4667_v63 = vrot.slane %v4596_v50, 1  ;;  %v4305_v60 = vld [vmem:[#allocation2 + $0xc8] sm:$0xfc]  ;;  %v4307_v50 = vld [vmem:[#allocation2 + $0xd8] sm:$0x3] }
 0xdd5   : > { %v4855_v1 = vrot.slane %v4783_v39, 2  ;;  %5201 = vmatprep.mubr.f32.mxu1 %v5074_v27  ;;  %v4856_v32 = vrot.slane %v4785_v43, 2  ;;  %v3631_v61 = vmul.f32 %v8738_v42, %v8444_v5  ;;  %v3718_v13 = vmul.f32 %v8416_v47, %v3675_v16 }
 0xdd6   : > { %v4964_v14 = vmul.f32 %v4948_v36, %v8846_v46  ;;  %v4463_v8 = vadd.f32 %v4417_v40, %v4274_v15  ;;  %v4668_v38 = vsel %vm3761_vm3, %v4666_v57, %v4667_v63  ;;  %v3720_v10 = vmul.f32 %v8416_v47, %v3677_v41 }
 0xdd7   : > { %v3908_v29 = vmul.f32 %v8425_v48, %v3865_v52  ;;  %v4857_v30 = vsel %vm3951_vm4, %v4855_v1, %v4856_v32  ;;  %v3795_v31 = vrot.slane %v3718_v13, 1  ;;  %v3910_v59 = vmul.f32 %v8425_v48, %v3867_v7  ;;  %v8875_v13 = vld [vmem:[#allocation2 + $0xe8] sm:$0xff] }
 0xdd8   : > { %v4980_v6 = vmul.f32 0.044715, %v4964_v14  ;;  %v4525_v42 = vadd.f32 %v4509_v25, %v4463_v8  ;;  %v3796_v39 = vrot.slane %v3720_v10, 1  ;;  %v4072_v27 = vmul.f32 %v8804_v12, %v8498_v3  ;;  %v4556_v8 = vld [vmem:[#allocation2 + $0xe8] sm:$0xfe] }
 0xdd9   : > { %v3985_v16 = vrot.slane %v3908_v29, 2  ;;  %v3986_v40 = vrot.slane %v3910_v59, 2  ;;  %v4159_v43 = vmul.f32 %v8484_v56, %v4116_v21  ;;  %v4161_v41 = vmul.f32 %v8484_v56, %v4118_v24 }
 0xdda   : > { %v4996_v36 = vadd.f32 %v4980_v6, %v8846_v46  ;;  %v6856_v52 = vpop.eup %6855  ;;  %v4714_v15 = vadd.f32 %v4668_v38, %v4525_v42  ;;  %v3797_v57 = vsel %vm3761_vm3, %v3795_v31, %v3796_v39  ;;  %v4348_v63 = vmul.f32 %v8487_v45, %v4305_v60  ;;  %v4558_v6 = vld [vmem:[#allocation2 + $0xf8] sm:$0x1]  ;;  %v4745_v60 = vld [vmem:[#allocation2 + $0xe8] sm:$0xfc] }
 0xddb   : > { %v4350_v25 = vmul.f32 %v8487_v45, %v4307_v50  ;;  %v5041_v1 = vadd.f32 1.0, %v6856_v52  ;;  %v3837_v14 = vadd.f32 %v3797_v57, %v3631_v61  ;;  %v3987_v32 = vsel %vm3951_vm4, %v3985_v16, %v3986_v40  ;;  %v4747_v42 = vld [vmem:[#allocation2 + $0xf8] sm:$0x3]  ;;  %v3674_v16 = vld [vmem:[#allocation2 + $0xa0] sm:$0xfe] }
 0xddc   : > { %v5012_v7 = vmul.f32 0.7978846, %v4996_v36  ;;  %v4903_v10 = vadd.f32 %v4857_v30, %v4714_v15  ;;  %v4235_v29 = vrot.slane %v4159_v43, 1  ;;  %v4236_v21 = vrot.slane %v4161_v41, 1  ;;  %v3676_v52 = vld [vmem:[#allocation2 + $0xb0] sm:$0x1] }
 0xddd   : > { %v4424_v24 = vrot.slane %v4348_v63, 2  ;;  %v5057_v38 = vmul.f32 0.5, %v5041_v1  ;;  %v4027_v31 = vadd.f32 %v3987_v32, %v3837_v14  ;;  %v4425_v59 = vrot.slane %v4350_v25, 2  ;;  %v3864_v1 = vld [vmem:[#allocation2 + $0xa0] sm:$0xfc] }
 0xdde   : > { %6857 = vtanh.f32 %v5012_v7  ;;  %v8878_v50 = vadd.f32 %v8523_v0, %v4903_v10  ;;  %v4237_v61 = vsel %vm3761_vm3, %v4235_v29, %v4236_v21  ;;  %v4512_v39 = vmul.f32 %v8508_v28, %v8875_v13  ;;  %v3866_v32 = vld [vmem:[#allocation2 + $0xb0] sm:$0x3] }
 0xddf   : > { %v4599_v30 = vmul.f32 %v8514_v44, %v4556_v8  ;;  %v5073_v36 = vmul.f32 %v5057_v38, %v8812_v55  ;;  %v4088_v40 = vadd.f32 %v4072_v27, %v4027_v31  ;;  %v4426_v43 = vsel %vm3951_vm4, %v4424_v24, %v4425_v59  ;;  %v4115_v24 = vld [vmem:[#allocation2 + $0xc0] sm:$0xfe] }
 0xde0   : > { %v4601_v41 = vmul.f32 %v8514_v44, %v4558_v6  ;;  %v4947_v15 = vmul.f32 %v8878_v50, %v8878_v50  ;;  %v4788_v63 = vmul.f32 %v8520_v35, %v4745_v60  ;;  %v4790_v25 = vmul.f32 %v8520_v35, %v4747_v42  ;;  %v4117_v60 = vld [vmem:[#allocation2 + $0xd0] sm:$0x1] }
 0xde1   : > { %v4675_v57 = vrot.slane %v4599_v30, 1  ;;  %5202 = vmatmul.mubr.f32.gmra.mrb[54].mxu1 %v5073_v36  ;;  %v4277_v7 = vadd.f32 %v4237_v61, %v4088_v40  ;;  %v3630_v55 = vmul.f32 %v8772_v34, %v8449_v19  ;;  %v3717_v27 = vmul.f32 %v8419_v20, %v3674_v16  ;;  %v4304_v16 = vld [vmem:[#allocation2 + $0xc0] sm:$0xfc] }
 0xde2   : > { %v4676_v14 = vrot.slane %v4601_v41, 1  ;;  %v4963_v8 = vmul.f32 %v4947_v15, %v8878_v50  ;;  %v4864_v10 = vrot.slane %v4788_v63, 2  ;;  %v4865_v29 = vrot.slane %v4790_v25, 2  ;;  %v4306_v25 = vld [vmem:[#allocation2 + $0xd0] sm:$0x3] }
 0xde3   : > { %v3719_v21 = vmul.f32 %v8419_v20, %v3676_v52  ;;  %v4466_v6 = vadd.f32 %v4426_v43, %v4277_v7  ;;  %v3792_v31 = vrot.slane %v3717_v27, 1  ;;  %v3907_v59 = vmul.f32 %v8433_v62, %v3864_v1 }
 0xde4   : > { %v4677_v38 = vsel %vm3761_vm3, %v4675_v57, %v4676_v14  ;;  %v4979_v42 = vmul.f32 0.044715, %v4963_v8  ;;  %v4866_v34 = vsel %vm3951_vm4, %v4864_v10, %v4865_v29  ;;  %v3909_v30 = vmul.f32 %v8433_v62, %v3866_v32  ;;  %v8907_v32 = vld [vmem:[#allocation2 + $0xe0] sm:$0xff] }
 0xde5   : > { %v3793_v61 = vrot.slane %v3719_v21, 1  ;;  %v4528_v36 = vadd.f32 %v4512_v39, %v4466_v6  ;;  %v3982_v40 = vrot.slane %v3907_v59, 2  ;;  %v4071_v41 = vmul.f32 %v8839_v33, %v8495_v2  ;;  %v4555_v8 = vld [vmem:[#allocation2 + $0xe0] sm:$0xfe]  ;;  %v4557_v6 = vld [vmem:[#allocation2 + $0xf0] sm:$0x1] }
 0xde6   : > { %v4158_v43 = vmul.f32 %v8475_v49, %v4115_v24  ;;  %v4995_v52 = vadd.f32 %v4979_v42, %v8878_v50  ;;  %v3983_v57 = vrot.slane %v3909_v30, 2  ;;  %v4160_v63 = vmul.f32 %v8475_v49, %v4117_v60 }
 0xde7   : > { %v3794_v15 = vsel %vm3761_vm3, %v3792_v31, %v3793_v61  ;;  %v4717_v7 = vadd.f32 %v4677_v38, %v4528_v36  ;;  %v4347_v39 = vmul.f32 %v8478_v17, %v4304_v16  ;;  %v4349_v60 = vmul.f32 %v8478_v17, %v4306_v25  ;;  %v4744_v61 = vld [vmem:[#allocation2 + $0xe0] sm:$0xfc]  ;;  %v4746_v38 = vld [vmem:[#allocation2 + $0xf0] sm:$0x3]  ;;  %v3679_v25 = vld [vmem:[#allocation2 + $0xc8] sm:$0xfe] }
 0xde8   : > { %v6858_v1 = vpop.eup %6857  ;;  %v3836_v14 = vadd.f32 %v3794_v15, %v3630_v55  ;;  %v4232_v27 = vrot.slane %v4158_v43, 1  ;;  %v5011_v29 = vmul.f32 0.7978846, %v4995_v52  ;;  %v3984_v21 = vsel %vm3951_vm4, %v3982_v40, %v3983_v57 }
 0xde9   : > { %v5044_v10 = vadd.f32 1.0, %v6858_v1  ;;  %v4233_v24 = vrot.slane %v4160_v63, 1  ;;  %v4906_v31 = vadd.f32 %v4866_v34, %v4717_v7  ;;  %v4421_v42 = vrot.slane %v4347_v39, 2  ;;  %v3681_v1 = vld [vmem:[#allocation2 + $0xd8] sm:$0x1] }
 0xdea   : > { %v4026_v59 = vadd.f32 %v3984_v21, %v3836_v14  ;;  %6859 = vtanh.f32 %v5011_v29  ;;  %v4511_v16 = vmul.f32 %v8505_v23, %v8907_v32  ;;  %v4422_v43 = vrot.slane %v4349_v60, 2  ;;  %v3869_v39 = vld [vmem:[#allocation2 + $0xc8] sm:$0xfc] }
 0xdeb   : > { %v5060_v55 = vmul.f32 0.5, %v5044_v10  ;;  %v4234_v30 = vsel %vm3761_vm3, %v4232_v27, %v4233_v24  ;;  %v8915_v36 = vadd.f32 %v8526_v37, %v4906_v31  ;;  %v4598_v34 = vmul.f32 %v8511_v4, %v4555_v8  ;;  %v3871_v10 = vld [vmem:[#allocation2 + $0xd8] sm:$0x3]  ;;  %v4120_v60 = vld [vmem:[#allocation2 + $0xe8] sm:$0xfe] }
 0xdec   : > { %v4087_v40 = vadd.f32 %v4071_v41, %v4026_v59  ;;  %v4600_v15 = vmul.f32 %v8511_v4, %v4557_v6  ;;  %v4787_v57 = vmul.f32 %v8517_v58, %v4744_v61  ;;  %v4789_v63 = vmul.f32 %v8517_v58, %v4746_v38 }
 0xded   : > { %v5076_v52 = vmul.f32 %v5060_v55, %v8846_v46  ;;  %v4950_v7 = vmul.f32 %v8915_v36, %v8915_v36  ;;  %v4423_v27 = vsel %vm3951_vm4, %v4421_v42, %v4422_v43  ;;  %v4672_v41 = vrot.slane %v4598_v34, 1 }
 0xdee   : > { %v4276_v14 = vadd.f32 %v4234_v30, %v4087_v40  ;;  %v4673_v8 = vrot.slane %v4600_v15, 1  ;;  %v4861_v46 = vrot.slane %v4787_v57, 2  ;;  %v4862_v29 = vrot.slane %v4789_v63, 2  ;;  %v4122_v30 = vld [vmem:[#allocation2 + $0xf8] sm:$0x1] }
 0xdef   : > { %5206 = vmatprep.mubr.f32.mxu1 %v5076_v52  ;;  %v3633_v21 = vmul.f32 %v8804_v12, %v8444_v5  ;;  %v4966_v24 = vmul.f32 %v4950_v7, %v8915_v36  ;;  %v3722_v31 = vmul.f32 %v8416_v47, %v3679_v25  ;;  %v3724_v59 = vmul.f32 %v8416_v47, %v3681_v1  ;;  %v4309_v52 = vld [vmem:[#allocation2 + $0xe8] sm:$0xfc] }
 0xdf0   : > { %v4465_v6 = vadd.f32 %v4423_v27, %v4276_v14  ;;  %v4674_v42 = vsel %vm3761_vm3, %v4672_v41, %v4673_v8  ;;  %v4863_v61 = vsel %vm3951_vm4, %v4861_v46, %v4862_v29  ;;  %v3912_v38 = vmul.f32 %v8425_v48, %v3869_v39  ;;  %v4311_v41 = vld [vmem:[#allocation2 + $0xf8] sm:$0x3]  ;;  %v8940_v39 = vld [vmem:[#allocation2 + $0x108] sm:$0xff] }
 0xdf1   : > { %v3914_v55 = vmul.f32 %v8425_v48, %v3871_v10  ;;  %v4982_v40 = vmul.f32 0.044715, %v4966_v24  ;;  %v3801_v12 = vrot.slane %v3722_v31, 1  ;;  %v3802_v34 = vrot.slane %v3724_v59, 1  ;;  %v4560_v24 = vld [vmem:[#allocation2 + $0x108] sm:$0xfe] }
 0xdf2   : > { %v4527_v43 = vadd.f32 %v4511_v16, %v4465_v6  ;;  %v3991_v15 = vrot.slane %v3912_v38, 2  ;;  %v4074_v63 = vmul.f32 %v8875_v13, %v8498_v3  ;;  %v4163_v25 = vmul.f32 %v8484_v56, %v4120_v60 }
 0xdf3   : > { %v3992_v57 = vrot.slane %v3914_v55, 2  ;;  %v4998_v1 = vadd.f32 %v4982_v40, %v8915_v36  ;;  %v3803_v14 = vsel %vm3761_vm3, %v3801_v12, %v3802_v34  ;;  %v4165_v27 = vmul.f32 %v8484_v56, %v4122_v30 }
 0xdf4   : > { %v4716_v7 = vadd.f32 %v4674_v42, %v4527_v43  ;;  %v6860_v16 = vpop.eup %6859  ;;  %v3839_v10 = vadd.f32 %v3803_v14, %v3633_v21  ;;  %v4241_v46 = vrot.slane %v4163_v25, 1  ;;  %v4352_v29 = vmul.f32 %v8487_v45, %v4309_v52  ;;  %v4562_v42 = vld [vmem:[#allocation2 + $0x118] sm:$0x1]  ;;  %v4749_v43 = vld [vmem:[#allocation2 + $0x108] sm:$0xfc] }
 0xdf5   : > { %v3993_v8 = vsel %vm3951_vm4, %v3991_v15, %v3992_v57  ;;  %v5043_v6 = vadd.f32 1.0, %v6860_v16  ;;  %v5014_v31 = vmul.f32 0.7978846, %v4998_v1  ;;  %v4242_v60 = vrot.slane %v4165_v27, 1  ;;  %v4751_v21 = vld [vmem:[#allocation2 + $0x118] sm:$0x3] }
 0xdf6   : > { %v4905_v59 = vadd.f32 %v4863_v61, %v4716_v7  ;;  %v4029_v38 = vadd.f32 %v3993_v8, %v3839_v10  ;;  %v4354_v55 = vmul.f32 %v8487_v45, %v4311_v41  ;;  %v4430_v30 = vrot.slane %v4352_v29, 2  ;;  %v3678_v41 = vld [vmem:[#allocation2 + $0xc0] sm:$0xfe]  ;;  %v3680_v16 = vld [vmem:[#allocation2 + $0xd0] sm:$0x1] }
 0xdf7   : > { %v4514_v40 = vmul.f32 %v8508_v28, %v8940_v39  ;;  %v5059_v12 = vmul.f32 0.5, %v5043_v6  ;;  %6861 = vtanh.f32 %v5014_v31  ;;  %v4243_v52 = vsel %vm3761_vm3, %v4241_v46, %v4242_v60  ;;  %v3868_v29 = vld [vmem:[#allocation2 + $0xc0] sm:$0xfc] }
 0xdf8   : > { %v8948_v34 = vadd.f32 %v8523_v0, %v4905_v59  ;;  %v4090_v15 = vadd.f32 %v4074_v63, %v4029_v38  ;;  %v4431_v61 = vrot.slane %v4354_v55, 2  ;;  %v4603_v57 = vmul.f32 %v8514_v44, %v4560_v24  ;;  %v3870_v24 = vld [vmem:[#allocation2 + $0xd0] sm:$0x3] }
 0xdf9   : > { %v4605_v25 = vmul.f32 %v8514_v44, %v4562_v42  ;;  %v5075_v1 = vmul.f32 %v5059_v12, %v8878_v50  ;;  %v4792_v14 = vmul.f32 %v8520_v35, %v4749_v43  ;;  %v4794_v27 = vmul.f32 %v8520_v35, %v4751_v21 }
 0xdfa   : > { %v4949_v7 = vmul.f32 %v8948_v34, %v8948_v34  ;;  %v4279_v10 = vadd.f32 %v4243_v52, %v4090_v15  ;;  %v4432_v8 = vsel %vm3951_vm4, %v4430_v30, %v4431_v61  ;;  %v4681_v63 = vrot.slane %v4603_v57, 1  ;;  %v4119_v30 = vld [vmem:[#allocation2 + $0xe0] sm:$0xfe]  ;;  %v4121_v15 = vld [vmem:[#allocation2 + $0xf0] sm:$0x1] }
 0xdfb   : > { %v4682_v46 = vrot.slane %v4605_v25, 1  ;;  %5207 = vmatmul.mubr.f32.gmra.mrb[56].mxu1 %v5075_v1  ;;  %v4870_v50 = vrot.slane %v4792_v14, 2  ;;  %v4871_v31 = vrot.slane %v4794_v27, 2  ;;  %v3632_v59 = vmul.f32 %v8839_v33, %v8449_v19  ;;  %v4308_v61 = vld [vmem:[#allocation2 + $0xe0] sm:$0xfc] }
 0xdfc   : > { %v4965_v6 = vmul.f32 %v4949_v7, %v8948_v34  ;;  %v4468_v60 = vadd.f32 %v4432_v8, %v4279_v10  ;;  %v3721_v38 = vmul.f32 %v8419_v20, %v3678_v41  ;;  %v3723_v55 = vmul.f32 %v8419_v20, %v3680_v16  ;;  %v4310_v16 = vld [vmem:[#allocation2 + $0xf0] sm:$0x3] }
 0xdfd   : > { %v4683_v42 = vsel %vm3761_vm3, %v4681_v63, %v4682_v46  ;;  %v4872_v21 = vsel %vm3951_vm4, %v4870_v50, %v4871_v31  ;;  %v3911_v12 = vmul.f32 %v8433_v62, %v3868_v29  ;;  %v3913_v52 = vmul.f32 %v8433_v62, %v3870_v24 }
 0xdfe   : > { %v4981_v43 = vmul.f32 0.044715, %v4965_v6  ;;  %v4530_v57 = vadd.f32 %v4514_v40, %v4468_v60  ;;  %v3798_v25 = vrot.slane %v3721_v38, 1  ;;  %v3799_v33 = vrot.slane %v3723_v55, 1  ;;  %v8975_v40 = vld [vmem:[#allocation2 + $0x100] sm:$0xff] }
 0xdff   : > { %v4073_v1 = vmul.f32 %v8907_v32, %v8495_v2  ;;  %v3988_v14 = vrot.slane %v3911_v12, 2  ;;  %v3989_v27 = vrot.slane %v3913_v52, 2  ;;  %v4162_v41 = vmul.f32 %v8475_v49, %v4119_v30  ;;  %v4559_v60 = vld [vmem:[#allocation2 + $0x100] sm:$0xfe] }
 0xe00   : > { %v4997_v7 = vadd.f32 %v4981_v43, %v8948_v34  ;;  %v4719_v10 = vadd.f32 %v4683_v42, %v4530_v57  ;;  %v3800_v8 = vsel %vm3761_vm3, %v3798_v25, %v3799_v33  ;;  %v4164_v63 = vmul.f32 %v8475_v49, %v4121_v15  ;;  %v4561_v43 = vld [vmem:[#allocation2 + $0x110] sm:$0x1]  ;;  %v4748_v12 = vld [vmem:[#allocation2 + $0x100] sm:$0xfc] }
 0xe01   : > { %v4351_v46 = vmul.f32 %v8478_v17, %v4308_v61  ;;  %v6862_v29 = vpop.eup %6861  ;;  %v3838_v6 = vadd.f32 %v3800_v8, %v3632_v59  ;;  %v3990_v50 = vsel %vm3951_vm4, %v3988_v14, %v3989_v27  ;;  %v4238_v31 = vrot.slane %v4162_v41, 1  ;;  %v4750_v57 = vld [vmem:[#allocation2 + $0x110] sm:$0x3] }
 0xe02   : > { %v5013_v24 = vmul.f32 0.7978846, %v4997_v7  ;;  %v5046_v38 = vadd.f32 1.0, %v6862_v29  ;;  %v4908_v55 = vadd.f32 %v4872_v21, %v4719_v10  ;;  %v4239_v30 = vrot.slane %v4164_v63, 1  ;;  %v3685_v29 = vld [vmem:[#allocation2 + $0xf8] sm:$0x1] }
 0xe03   : > { %v4353_v42 = vmul.f32 %v8478_v17, %v4310_v16  ;;  %v4028_v52 = vadd.f32 %v3990_v50, %v3838_v6  ;;  %v4427_v15 = vrot.slane %v4351_v46, 2  ;;  %v4513_v61 = vmul.f32 %v8505_v23, %v8975_v40  ;;  %v3683_v16 = vld [vmem:[#allocation2 + $0xe8] sm:$0xfe] }
 0xe04   : > { %6863 = vtanh.f32 %v5013_v24  ;;  %v5062_v25 = vmul.f32 0.5, %v5046_v38  ;;  %v8982_v59 = vadd.f32 %v8526_v37, %v4908_v55  ;;  %v4240_v33 = vsel %vm3761_vm3, %v4238_v31, %v4239_v30  ;;  %v3873_v24 = vld [vmem:[#allocation2 + $0xe8] sm:$0xfc] }
 0xe05   : > { %v4428_v7 = vrot.slane %v4353_v42, 2  ;;  %v4089_v21 = vadd.f32 %v4073_v1, %v4028_v52  ;;  %v4602_v14 = vmul.f32 %v8511_v4, %v4559_v60  ;;  %v4604_v27 = vmul.f32 %v8511_v4, %v4561_v43  ;;  %v3875_v60 = vld [vmem:[#allocation2 + $0xf8] sm:$0x3] }
 0xe06   : > { %v4791_v41 = vmul.f32 %v8517_v58, %v4748_v12  ;;  %v5078_v10 = vmul.f32 %v5062_v25, %v8915_v36  ;;  %v4952_v8 = vmul.f32 %v8982_v59, %v8982_v59  ;;  %v4793_v46 = vmul.f32 %v8517_v58, %v4750_v57  ;;  %v4126_v57 = vld [vmem:[#allocation2 + $0x118] sm:$0x1]  ;;  %v4313_v25 = vld [vmem:[#allocation2 + $0x108] sm:$0xfc] }
 0xe07   : > { %v4429_v63 = vsel %vm3951_vm4, %v4427_v15, %v4428_v7  ;;  %v4278_v6 = vadd.f32 %v4240_v33, %v4089_v21  ;;  %v4678_v1 = vrot.slane %v4602_v14, 1  ;;  %v4679_v50 = vrot.slane %v4604_v27, 1  ;;  %v4124_v15 = vld [vmem:[#allocation2 + $0x108] sm:$0xfe]  ;;  %v4315_v27 = vld [vmem:[#allocation2 + $0x118] sm:$0x3] }
 0xe08   : > { %v4867_v31 = vrot.slane %v4791_v41, 2  ;;  %5211 = vmatprep.mubr.f32.mxu1 %v5078_v10  ;;  %v4968_v38 = vmul.f32 %v4952_v8, %v8982_v59  ;;  %v4868_v55 = vrot.slane %v4793_v46, 2  ;;  %v3635_v36 = vmul.f32 %v8875_v13, %v8444_v5 }
 0xe09   : > { %v3726_v30 = vmul.f32 %v8416_v47, %v3683_v16  ;;  %v4467_v42 = vadd.f32 %v4429_v63, %v4278_v6  ;;  %v4680_v43 = vsel %vm3761_vm3, %v4678_v1, %v4679_v50  ;;  %v3728_v12 = vmul.f32 %v8416_v47, %v3685_v29 }
 0xe0a   : > { %v3916_v52 = vmul.f32 %v8425_v48, %v3873_v24  ;;  %v4984_v33 = vmul.f32 0.044715, %v4968_v38  ;;  %v4869_v7 = vsel %vm3951_vm4, %v4867_v31, %v4868_v55  ;;  %v3918_v14 = vmul.f32 %v8425_v48, %v3875_v60 }
 0xe0b   : > { %v3807_v21 = vrot.slane %v3726_v30, 1  ;;  %v4529_v5 = vadd.f32 %v4513_v61, %v4467_v42  ;;  %v3808_v13 = vrot.slane %v3728_v12, 1  ;;  %v4076_v16 = vmul.f32 %v8940_v39, %v8498_v3  ;;  %v4564_v39 = vld [vmem:[#allocation2 + $0x128] sm:$0xfe]  ;;  %v4566_v30 = vld [vmem:[#allocation2 + $0x138] sm:$0x1] }
 0xe0c   : > { %v3997_v41 = vrot.slane %v3916_v52, 2  ;;  %v5000_v47 = vadd.f32 %v4984_v33, %v8982_v59  ;;  %v3998_v10 = vrot.slane %v3918_v14, 2  ;;  %v4167_v8 = vmul.f32 %v8484_v56, %v4124_v15  ;;  %v4753_v12 = vld [vmem:[#allocation2 + $0x128] sm:$0xfc]  ;;  %v4755_v52 = vld [vmem:[#allocation2 + $0x138] sm:$0x3] }
 0xe0d   : > { %v4169_v63 = vmul.f32 %v8484_v56, %v4126_v57  ;;  %v4718_v29 = vadd.f32 %v4680_v43, %v4529_v5  ;;  %v3809_v24 = vsel %vm3761_vm3, %v3807_v21, %v3808_v13  ;;  %v4356_v48 = vmul.f32 %v8487_v45, %v4313_v25  ;;  %v3682_v57 = vld [vmem:[#allocation2 + $0xe0] sm:$0xfe] }
 0xe0e   : > { %v6864_v46 = vpop.eup %6863  ;;  %v4358_v61 = vmul.f32 %v8487_v45, %v4315_v27  ;;  %v5016_v1 = vmul.f32 0.7978846, %v5000_v47  ;;  %v3841_v50 = vadd.f32 %v3809_v24, %v3635_v36  ;;  %v3999_v3 = vsel %vm3951_vm4, %v3997_v41, %v3998_v10  ;;  %v3684_v27 = vld [vmem:[#allocation2 + $0xf0] sm:$0x1]  ;;  %v3872_v10 = vld [vmem:[#allocation2 + $0xe0] sm:$0xfc] }
 0xe0f   : > { %v5045_v6 = vadd.f32 1.0, %v6864_v46  ;;  %v4907_v31 = vadd.f32 %v4869_v7, %v4718_v29  ;;  %v4247_v60 = vrot.slane %v4167_v8, 1  ;;  %v4248_v38 = vrot.slane %v4169_v63, 1  ;;  %v9017_v7 = vld [vmem:[#allocation2] sm:$0xff] }
 0xe10   : > { %v4436_v55 = vrot.slane %v4356_v48, 2  ;;  %6865 = vtanh.f32 %v5016_v1  ;;  %v4031_v42 = vadd.f32 %v3999_v3, %v3841_v50  ;;  %v4437_v43 = vrot.slane %v4358_v61, 2  ;;  %v4123_v48 = vld [vmem:[#allocation2 + $0x100] sm:$0xfe]  ;;  %v4125_v50 = vld [vmem:[#allocation2 + $0x110] sm:$0x1] }
 0xe11   : > { %v5061_v56 = vmul.f32 0.5, %v5045_v6  ;;  %v9012_v15 = vadd.f32 %v8523_v0, %v4907_v31  ;;  %v4249_v45 = vsel %vm3761_vm3, %v4247_v60, %v4248_v38  ;;  %v4607_v36 = vmul.f32 %v8514_v44, %v4564_v39  ;;  %v4312_v38 = vld [vmem:[#allocation2 + $0x100] sm:$0xfc] }
 0xe12   : > { %v4092_v33 = vadd.f32 %v4076_v16, %v4031_v42  ;;  %v4516_v21 = vmul.f32 %v9017_v7, %v8508_v28  ;;  %v4609_v14 = vmul.f32 %v8514_v44, %v4566_v30  ;;  %v4796_v41 = vmul.f32 %v8520_v35, %v4753_v12  ;;  %v3874_v28 = vld [vmem:[#allocation2 + $0xf0] sm:$0x3] }
 0xe13   : > { %v5077_v25 = vmul.f32 %v5061_v56, %v8948_v34  ;;  %v4951_v5 = vmul.f32 %v9012_v15, %v9012_v15  ;;  %v4687_v13 = vrot.slane %v4607_v36, 1  ;;  %v4798_v47 = vmul.f32 %v8520_v35, %v4755_v52  ;;  %v4314_v12 = vld [vmem:[#allocation2 + $0x110] sm:$0x3] }
 0xe14   : > { %v4281_v34 = vadd.f32 %v4249_v45, %v4092_v33  ;;  %v4438_v16 = vsel %vm3951_vm4, %v4436_v55, %v4437_v43  ;;  %v4688_v8 = vrot.slane %v4609_v14, 1  ;;  %v3725_v63 = vmul.f32 %v8419_v20, %v3682_v57 }
 0xe15   : > { %5212 = vmatmul.mubr.f32.gmra.mrb[58].mxu1 %v5077_v25  ;;  %v4967_v44 = vmul.f32 %v4951_v5, %v9012_v15  ;;  %v4876_v46 = vrot.slane %v4796_v41, 2  ;;  %v4877_v29 = vrot.slane %v4798_v47, 2  ;;  %v3727_v24 = vmul.f32 %v8419_v20, %v3684_v27  ;;  %v4563_v27 = vld [vmem:[#allocation2 + $0x120] sm:$0xfe]  ;;  %v4565_v47 = vld [vmem:[#allocation2 + $0x130] sm:$0x1] }
 0xe16   : > { %v4470_v61 = vadd.f32 %v4438_v16, %v4281_v34  ;;  %v3634_v35 = vmul.f32 %v8907_v32, %v8449_v19  ;;  %v3804_v6 = vrot.slane %v3725_v63, 1  ;;  %v3915_v1 = vmul.f32 %v8433_v62, %v3872_v10  ;;  %v4752_v10 = vld [vmem:[#allocation2 + $0x120] sm:$0xfc]  ;;  %v4754_v34 = vld [vmem:[#allocation2 + $0x130] sm:$0x3] }
 0xe17   : > { %v4983_v3 = vmul.f32 0.044715, %v4967_v44  ;;  %v4689_v39 = vsel %vm3761_vm3, %v4687_v13, %v4688_v8  ;;  %v3805_v31 = vrot.slane %v3727_v24, 1  ;;  %v3917_v60 = vmul.f32 %v8433_v62, %v3874_v28 }
 0xe18   : > { %v4532_v55 = vadd.f32 %v4516_v21, %v4470_v61  ;;  %v4878_v30 = vsel %vm3951_vm4, %v4876_v46, %v4877_v29  ;;  %v3994_v20 = vrot.slane %v3915_v1, 2  ;;  %v4166_v56 = vmul.f32 %v8475_v49, %v4123_v48 }
 0xe19   : > { %v4999_v42 = vadd.f32 %v4983_v3, %v9012_v15  ;;  %v3806_v19 = vsel %vm3761_vm3, %v3804_v6, %v3805_v31  ;;  %v3995_v32 = vrot.slane %v3917_v60, 2  ;;  %v4168_v43 = vmul.f32 %v8475_v49, %v4125_v50 }
 0xe1a   : > { %v6866_v52 = vpop.eup %6865  ;;  %v4721_v45 = vadd.f32 %v4689_v39, %v4532_v55  ;;  %v3840_v36 = vadd.f32 %v3806_v19, %v3634_v35  ;;  %v4244_v57 = vrot.slane %v4166_v56, 1  ;;  %v4355_v62 = vmul.f32 %v8478_v17, %v4312_v38 }
 0xe1b   : > { %v5048_v25 = vadd.f32 1.0, %v6866_v52  ;;  %v5015_v33 = vmul.f32 0.7978846, %v4999_v42  ;;  %v3996_v21 = vsel %vm3951_vm4, %v3994_v20, %v3995_v32  ;;  %v4245_v14 = vrot.slane %v4168_v43, 1 }
 0xe1c   : > { %v4910_v5 = vadd.f32 %v4878_v30, %v4721_v45  ;;  %v4030_v13 = vadd.f32 %v3996_v21, %v3840_v36  ;;  %v4075_v41 = vmul.f32 %v8975_v40, %v8495_v2  ;;  %v4357_v49 = vmul.f32 %v8478_v17, %v4314_v12 }
 0xe1d   : > { %v5064_v16 = vmul.f32 0.5, %v5048_v25  ;;  %6867 = vtanh.f32 %v5015_v33  ;;  %v4246_v8 = vsel %vm3761_vm3, %v4244_v57, %v4245_v14  ;;  %v4433_v63 = vrot.slane %v4355_v62, 2 }
 0xe1e   : > { %v4938_v28 = vadd.f32 %v8526_v37, %v4910_v5  ;;  %v4091_v44 = vadd.f32 %v4075_v41, %v4030_v13  ;;  %v4434_v46 = vrot.slane %v4357_v49, 2  ;;  %v4606_v29 = vmul.f32 %v8511_v4, %v4563_v27  ;;  %v5551_v27 = vld [vmem:[%s9200_s15] ss:$0 sm:$0xff] }
 0xe1f   : > { %v5080_v24 = vmul.f32 %v5064_v16, %v8982_v59  ;;  %v4608_v2 = vmul.f32 %v8511_v4, %v4565_v47  ;;  %v4795_v17 = vmul.f32 %v8517_v58, %v4752_v10  ;;  %v4797_v40 = vmul.f32 %v8517_v58, %v4754_v34 }
 0xe20   : > { %v4954_v48 = vmul.f32 %v4938_v28, %v4938_v28  ;;  %v4280_v61 = vadd.f32 %v4246_v8, %v4091_v44  ;;  %v4515_v35 = vmul.f32 %v9017_v7, %v8505_v23  ;;  %v4684_v6 = vrot.slane %v4606_v29, 1 }
 0xe21   : > { %5216 = vmatprep.mubr.f32.mxu1 %v5080_v24  ;;  %v4435_v37 = vsel %vm3951_vm4, %v4433_v63, %v4434_v46  ;;  %v4685_v1 = vrot.slane %v4608_v2, 1  ;;  %v4873_v50 = vrot.slane %v4795_v17, 2  ;;  %v4874_v3 = vrot.slane %v4797_v40, 2 }
 0xe22   : > { %v4970_v39 = vmul.f32 %v4954_v48, %v4938_v28  ;;  %v4469_v59 = vadd.f32 %v4435_v37, %v4280_v61 }
 0xe23   : > { %v4686_v4 = vsel %vm3761_vm3, %v4684_v6, %v4685_v1  ;;  %v4875_v58 = vsel %vm3951_vm4, %v4873_v50, %v4874_v3 }
 0xe24   : > { %v4986_v31 = vmul.f32 0.044715, %v4970_v39  ;;  %v4531_v60 = vadd.f32 %v4515_v35, %v4469_v59 }
 0xe26   : > { %v5002_v38 = vadd.f32 %v4986_v31, %v4938_v28  ;;  %v4720_v55 = vadd.f32 %v4686_v4, %v4531_v60 }
 0xe27   : > { %v6868_v30 = vpop.eup %6867 }
 0xe28   : > { %v5047_v20 = vadd.f32 1.0, %v6868_v30  ;;  %v5018_v23 = vmul.f32 0.7978846, %v5002_v38  ;;  %v4909_v7 = vadd.f32 %v4875_v58, %v4720_v55 }
 0xe2a   : > { %v5063_v56 = vmul.f32 0.5, %v5047_v20  ;;  %6869 = vtanh.f32 %v5018_v23  ;;  %v4937_v42 = vadd.f32 %v8523_v0, %v4909_v7 }
 0xe2c   : > { %v5079_v19 = vmul.f32 %v5063_v56, %v9012_v15  ;;  %v4953_v32 = vmul.f32 %v4937_v42, %v4937_v42 }
 0xe2e   : > { %5217 = vmatmul.mubr.f32.gmra.mrb[60].mxu1 %v5079_v19  ;;  %v4969_v43 = vmul.f32 %v4953_v32, %v4937_v42 }
 0xe30   : > { %v4985_v12 = vmul.f32 0.044715, %v4969_v43 }
 0xe32   : > { %v5001_v52 = vadd.f32 %v4985_v12, %v4937_v42 }
 0xe34   : > { %v6870_v45 = vpop.eup %6869  ;;  %v5017_v36 = vmul.f32 0.7978846, %v5001_v52 }
 0xe35   : > { %v5050_v57 = vadd.f32 1.0, %v6870_v45 }
 0xe36   : > { %6871 = vtanh.f32 %v5017_v36 }
 0xe37   : > { %v5066_v62 = vmul.f32 0.5, %v5050_v57 }
 0xe39   : > { %v5082_v25 = vmul.f32 %v5066_v62, %v4938_v28 }
 0xe3b   : > { %5221 = vmatprep.mubr.f32.mxu1 %v5082_v25 }
 0xe40   : > { %v6872_v33 = vpop.eup %6871 }
 0xe41   : > { %v5049_v21 = vadd.f32 1.0, %v6872_v33 }
 0xe43   : > { %v5065_v14 = vmul.f32 0.5, %v5049_v21 }
 0xe45   : > { %v5081_v0 = vmul.f32 %v5065_v14, %v4937_v42 }
 0xe47   : > { %5222 = vmatmul.mubr.f32.gmra.mrb[62].mxu1 %v5081_v0 }
 0xe66   : > { %v5791_v15 = vpop.f32.mrb[48].mxu1 }
 0xe67   : > { %v5792_v5 = vpop.f32.mrb[49].mxu1 }
 0xe68   : > { %v5793_v13 = vadd.f32 %v5792_v5, %v5791_v15 }
 0xe6a   : > { %v5189_v41 = vadd.f32 %v5793_v13, %v5551_v27 }
 0xe6c   : > { %v5227_v49 = vadd.f32 %v5189_v41, %v8113_v51 }
 0xe6e   : > { %5235 = vst.msk [vmem:[%s9066_s23] sm:$0xff] %vm566_vm0, %v5227_v49 }
 0xe7f   : > { %v5794_v47 = vpop.f32.mrb[50].mxu1 }
 0xe80   : > { %v5795_v10 = vpop.f32.mrb[51].mxu1 }
 0xe81   : > { %v5796_v34 = vadd.f32 %v5795_v10, %v5794_v47 }
 0xe83   : > { %v5194_v16 = vadd.f32 %v5796_v34, %v5551_v27 }
 0xe85   : > { %v5228_v8 = vadd.f32 %v5194_v16, %v8111_v18 }
 0xe87   : > { %5236 = vst.msk [vmem:[%s9066_s23 + $0x8] sm:$0xff] %vm566_vm0, %v5228_v8 }
 0xe9c   : > { %v5797_v63 = vpop.f32.mrb[52].mxu1 }
 0xe9d   : > { %v5798_v28 = vpop.f32.mrb[53].mxu1 }
 0xe9e   : > { %v5799_v51 = vadd.f32 %v5798_v28, %v5797_v63 }
 0xea0   : > { %v5199_v44 = vadd.f32 %v5799_v51, %v5551_v27 }
 0xea2   : > { %v5229_v46 = vadd.f32 %v5199_v44, %v8123_v9 }
 0xea4   : > { %5237 = vst.msk [vmem:[%s9066_s23 + $0x10] sm:$0xff] %vm566_vm0, %v5229_v46 }
 0xeb4   : > { %v5800_v29 = vpop.f32.mrb[54].mxu1 }
 0xeb5   : > { %v5801_v24 = vpop.f32.mrb[55].mxu1 }
 0xeb6   : > { %v5802_v2 = vadd.f32 %v5801_v24, %v5800_v29 }
 0xeb8   : > { %v5204_v17 = vadd.f32 %v5802_v2, %v5551_v27 }
 0xeba   : > { %v5230_v40 = vadd.f32 %v5204_v17, %v8121_v22 }
 0xebc   : > { %5238 = vst.msk [vmem:[%s9066_s23 + $0x18] sm:$0xff] %vm566_vm0, %v5230_v40 }
 0xece   : > { %v5803_v18 = vpop.f32.mrb[56].mxu1 }
 0xecf   : > { %v5804_v48 = vpop.f32.mrb[57].mxu1 }
 0xed0   : > { %v5805_v61 = vadd.f32 %v5804_v48, %v5803_v18 }
 0xed2   : > { %v5209_v35 = vadd.f32 %v5805_v61, %v5551_v27 }
 0xed4   : > { %v5231_v6 = vadd.f32 %v5209_v35, %v8133_v54 }
 0xed6   : > { %5239 = vst.msk [vmem:[%s9066_s23 + $0x20] sm:$0xff] %vm566_vm0, %v5231_v6 }
 0xee8   : > { %v5806_v9 = vpop.f32.mrb[58].mxu1 }
 0xee9   : > { %v5807_v37 = vpop.f32.mrb[59].mxu1 }
 0xeea   : > { %v5808_v1 = vadd.f32 %v5807_v37, %v5806_v9 }
 0xeec   : > { %v5214_v50 = vadd.f32 %v5808_v1, %v5551_v27 }
 0xeee   : > { %v5232_v3 = vadd.f32 %v5214_v50, %v8131_v26 }
 0xef0   : > { %5240 = vst.msk [vmem:[%s9066_s23 + $0x28] sm:$0xff] %vm566_vm0, %v5232_v3 }
 0xf01   : > { %v5809_v22 = vpop.f32.mrb[60].mxu1 }
 0xf02   : > { %v5810_v39 = vpop.f32.mrb[61].mxu1 }
 0xf03   : > { %v5811_v59 = vadd.f32 %v5810_v39, %v5809_v22 }
 0xf05   : > { %v5219_v4 = vadd.f32 %v5811_v59, %v5551_v27 }
 0xf07   : > { %v5233_v54 = vadd.f32 %v5219_v4, %v8143_v53 }
 0xf09   : > { %5241 = vst.msk [vmem:[%s9066_s23 + $0x30] sm:$0xff] %vm566_vm0, %v5233_v54 }
 0xf1a   : > { %v5812_v31 = vpop.f32.mrb[62].mxu1 }
 0xf1b   : > { %v5813_v60 = vpop.f32.mrb[63].mxu1 }
 0xf1c   : > { %v5814_v58 = vadd.f32 %v5813_v60, %v5812_v31 }
 0xf1e   : > { %v5224_v38 = vadd.f32 %v5814_v58, %v5551_v27 }
 0xf20   : > { %v5234_v26 = vadd.f32 %v5224_v38, %v8141_v11 }
 0xf22   : > { %5242 = vst.msk [vmem:[%s9066_s23 + $0x38] sm:$0xff] %vm566_vm0, %v5234_v26 }
 0xf23   : > { %7035 = shalt.err (!%p7032_p10)
}
 0xf24   : > { %s7036_s14 = scalar_lea.hbm %s9093_s25, 1024  ;;  %s7040_s15 = scalar_lea.hbm %s9202_s16, 2048 }
 0xf25   : > { %p7037_p0 = scmp.ne.s32.totalorder %s9093_s25, %s7036_s14  ;;  %p7041_p4 = scmp.lt.u32.totalorder %s9093_s25, %s9202_s16 }
 0xf26   : > { %p7042_p12 = scmp.lt.u32.totalorder %s7040_s15, %s7036_s14  ;;  %p7044_p8 = scmp.lt.u32.totalorder %s7036_s14, %s9093_s25 }
 0xf27   : > { %p7038_p2 = pnand %p7037_p0, %p9203_p11 }
 0xf28   : > { %p7043_p7 = por %p7042_p12, %p7041_p4 }
 0xf29   : > { %p7039_p3 = pneg %p7038_p2 }
 0xf2a   : > { %p7045_p13 = por %p7044_p8, %p7043_p7 }
 0xf2c   : > { %p7046_p1 = pnand %p7045_p13, %p7039_p3 }
 0xf2e   : > { %7049 = shalt.err (!%p7046_p1)
}
 0xf2f   : > { %s7114_s12 = smov 128   ;;  %s7115_s24 = smov 8  }
 0xf30   : > { %6459 = dma.vmem_to_hbm [thread:$0]  (%p9203_p11), %s9095_s28, 1024, %s9093_s25, %s9102_s27, %s7114_s12, %s7114_s12, %s7115_s24  }
 0xf31 PF: > { %s9204_s29 = sld [smem:[#allocation20_spill]]  ;;  %s9205_s22 = sld [smem:[#allocation17_spill]] }
 0xf32   : > { %s9206_s18 = sld [smem:[#allocation24_spill]] }
 0xf37   : > { %p6491_p6 = scmp.ge.s32.totalorder %s9204_s29, 2  ;;  %s5272_s26 = sand.u32 1, %s9205_s22  }
 0xf38   : > { %p9207_p9 = scmp.ne.s32.totalorder %s9206_s18, 0  ;;  %s5273_s20 = scalar_lea.sflag [#allocation5], %s5272_s26 }
 0xf3a   : > { %p6478_p5 = pnand %p6491_p6, %p9207_p9 }
 0xf3c   : > { %7079 = dma.done.wait (!%p6478_p5), %s5273_s20, 1024  }
 0xf3d   : > { %7081 = vsyncadd (!%p6478_p5), %s5273_s20, 4294966272  ;;  %s9208_s21 = sld [smem:[#allocation21_spill]]  ;;  %s9209_s18 = sld [smem:[#allocation18_spill]] }
 0xf3e   : > { %s9210_s19 = sld [smem:[#allocation19_spill]]  ;;  %s9211_s20 = sld [smem:[#allocation22_spill]] }
 0xf43   : > { %p28_p10 = scmp.ge.s32.totalorder %s9208_s21, 4  }
 0xf45   :  { %30 = sbr.rel (!%p28_p10) target bundleno = 10 (0xa), region = 146 }
 0xf4c   :  { %5278 = vsyncpa [#allocation4], 1 }
 0xf4d   :  { %5280 = vsyncpa [#allocation4 + $0x1], 1 }
 0xf4e   :  { %5281 = vsyncpa [#allocation7], 1 }
 0xf4f   :  { %5282 = vsyncpa [#allocation10], 1 }
 0xf50   :  { %5283 = vsyncpa [#allocation5], 1 }
 0xf51   :  { %5285 = vsyncpa [#allocation5 + $0x1], 1 }

</bundles_post_ra>
